<compile_context>
chip_gen: v6e
topology: v6e:2x2x1
jax: 0.10.0
libtpu: 0.0.40
codegen_flags: <defaults>
</compile_context>

<pallas_src>
import functools

import jax
import jax.numpy as jnp
from jax.experimental import pallas as pl
from jax.experimental.pallas import tpu as pltpu


def _round_up(x, m):
    return (x + m - 1) // m * m


def _tpu_is_v5():
    try:
        return "v5" in jax.devices()[0].device_kind.lower()
    except Exception:
        return False


def _pick_tn(cout_p):
    # cout_p is always a multiple of 128 (lane-dense output tiles).
    if cout_p <= 512:
        return cout_p                      # single N tile: activations read once
    if not _tpu_is_v5() and cout_p % 256 == 0:
        return 256                         # fills the 256-wide MXU on v6e/v7x
    return 128                             # v5e MXU is 128-wide


# ---------------------------------------------------------------------------
# Kernel A: direct NHWC conv (stride==1), per-tap MXU accumulation, fused
#           BatchNorm statistics (per-image sum / sum-of-squares).
#   grid = (batch, cout tiles); whole padded image resident in VMEM per step.
# ---------------------------------------------------------------------------
def _direct_conv_bn_stats_kernel(x_ref, w_ref, out_ref, stats_ref, acc_ref, *,
                                 kh, kw, dil, ho, wo, wo_p):
    first = True
    for ti in range(kh):
        for tj in range(kw):
            # (ho, wo_p, cin) static window of the padded image
            patch = x_ref[0, pl.ds(ti * dil, ho), pl.ds(tj * dil, wo_p), :]
            a = patch.reshape(ho * wo_p, patch.shape[-1])
            contrib = jnp.dot(a, w_ref[ti, tj],
                              preferred_element_type=jnp.float32)
            if first:
                acc_ref[...] = contrib
                first = False
            else:
                acc_ref[...] += contrib

    acc = acc_ref[...]
    if wo_p != wo:
        # zero the junk columns introduced by rounding wo up to a multiple of 16
        col = jax.lax.broadcasted_iota(jnp.int32, acc.shape, 0) % wo_p
        acc = jnp.where(col < wo, acc, 0.0)

    out_ref[0, :, :] = acc.astype(out_ref.dtype)                 # bf16 intermediate
    stats_ref[0, 0:1, :] = jnp.sum(acc, axis=0, keepdims=True)   # per-channel sum
    stats_ref[0, 1:2, :] = jnp.sum(acc * acc, axis=0, keepdims=True)


def _conv_stats_direct(x, weight, cout_p, tn, padding, dilation, ho, wo):
    n, cin, h, w_in = x.shape
    cout, _, kh, kw = weight.shape

    wo_p = _round_up(wo, 16)                       # bf16-sublane friendly width
    hp = h + 2 * padding
    wp_ext = max(w_in + 2 * padding, (kw - 1) * dilation + wo_p)

    x_nhwc = jnp.transpose(x, (0, 2, 3, 1)).astype(jnp.bfloat16)
    x_pad = jnp.pad(
        x_nhwc,
        ((0, 0), (padding, padding), (padding, wp_ext - w_in - padding), (0, 0)),
    )
    w_hwio = jnp.transpose(weight, (2, 3, 1, 0)).astype(jnp.bfloat16)   # (kh,kw,cin,cout)
    w_hwio = jnp.pad(w_hwio, ((0, 0), (0, 0), (0, 0), (0, cout_p - cout)))

    m_img = ho * wo_p
    kernel = functools.partial(
        _direct_conv_bn_stats_kernel,
        kh=kh, kw=kw, dil=dilation, ho=ho, wo=wo, wo_p=wo_p)

    conv_out, stats = pl.pallas_call(
        kernel,
        out_shape=(
            jax.ShapeDtypeStruct((n, m_img, cout_p), jnp.bfloat16),
            jax.ShapeDtypeStruct((n, 2, cout_p), jnp.float32),
        ),
        grid_spec=pltpu.PrefetchScalarGridSpec(
            num_scalar_prefetch=0,
            grid=(n, cout_p // tn),
            in_specs=[
                pl.BlockSpec((1, hp, wp_ext, cin), lambda b, j: (b, 0, 0, 0)),
                pl.BlockSpec((kh, kw, cin, tn), lambda b, j: (0, 0, 0, j)),
            ],
            out_specs=(
                pl.BlockSpec((1, m_img, tn), lambda b, j: (b, 0, j)),
                pl.BlockSpec((1, 2, tn), lambda b, j: (b, 0, j)),
            ),
            scratch_shapes=[pltpu.VMEM((m_img, tn), jnp.float32)],
        ),
        compiler_params=pltpu.CompilerParams(
            dimension_semantics=("parallel", "parallel"),
            vmem_limit_bytes=48 * 1024 * 1024,
        ),
    )(x_pad, w_hwio)

    stats_red = jnp.sum(stats, axis=0)                     # (2, cout_p)
    y = conv_out.reshape(n, ho, wo_p, cout_p)[:, :, :wo, :cout]
    return y, stats_red


# ---------------------------------------------------------------------------
# Kernel B (fallback): tiled im2col matmul + fused BN statistics.
# ---------------------------------------------------------------------------
def _im2col_conv_bn_stats_kernel(xcol_ref, w_ref, out_ref, stats_ref, acc_ref):
    k = pl.program_id(2)

    @pl.when(k == 0)
    def _init():
        acc_ref[...] = jnp.zeros_like(acc_ref)

    acc_ref[...] += jnp.dot(
        xcol_ref[...], w_ref[...], preferred_element_type=jnp.float32
    )

    @pl.when(k == pl.num_programs(2) - 1)
    def _finalize():
        acc = acc_ref[...]
        out_ref[...] = acc.astype(out_ref.dtype)            # bf16 intermediate
        stats_ref[0, 0:1, :] = jnp.sum(acc, axis=0, keepdims=True)
        stats_ref[0, 1:2, :] = jnp.sum(acc * acc, axis=0, keepdims=True)


def _im2col_nchw(x, kh, kw, stride, padding, dilation):
    n, c, h, w = x.shape
    xp = jnp.pad(x, ((0, 0), (0, 0), (padding, padding), (padding, padding)))
    h_out = (h + 2 * padding - dilation * (kh - 1) - 1) // stride + 1
    w_out = (w + 2 * padding - dilation * (kw - 1) - 1) // stride + 1
    cols = []
    for i in range(kh):
        for j in range(kw):
            di, dj = i * dilation, j * dilation
            patch = xp[:, :, di:di + stride * h_out:stride, dj:dj + stride * w_out:stride]
            cols.append(patch)
    col = jnp.stack(cols, axis=2).reshape(n, c * kh * kw, h_out * w_out)
    col = jnp.transpose(col, (0, 2, 1)).reshape(n * h_out * w_out, c * kh * kw)
    return col


def _conv_stats_im2col(x, weight, cout_p, tn, stride, padding, dilation, ho, wo):
    n, cin, h, w_in = x.shape
    cout, _, kh, kw = weight.shape

    xcol = _im2col_nchw(x.astype(jnp.bfloat16), kh, kw, stride, padding, dilation)
    m, k_dim = xcol.shape

    tm = min(1024, _round_up(m, 8))
    m_p = _round_up(m, tm)
    tk_max = 1024
    if k_dim <= tk_max:
        tk, k_p = k_dim, k_dim
    else:
        tk = tk_max
        k_p = _round_up(k_dim, tk)

    xcol = jnp.pad(xcol, ((0, m_p - m), (0, k_p - k_dim)))
    wcol = weight.astype(jnp.bfloat16).reshape(cout, cin * kh * kw).T
    wcol = jnp.pad(wcol, ((0, k_p - k_dim), (0, cout_p - cout)))

    n_m, n_n, n_k = m_p // tm, cout_p // tn, k_p // tk
    conv_out, stats = pl.pallas_call(
        _im2col_conv_bn_stats_kernel,
        out_shape=(
            jax.ShapeDtypeStruct((m_p, cout_p), jnp.bfloat16),
            jax.ShapeDtypeStruct((n_m, 2, cout_p), jnp.float32),
        ),
        grid_spec=pltpu.PrefetchScalarGridSpec(
            num_scalar_prefetch=0,
            grid=(n_m, n_n, n_k),
            in_specs=[
                pl.BlockSpec((tm, tk), lambda i, j, k: (i, k)),
                pl.BlockSpec((tk, tn), lambda i, j, k: (k, j)),
            ],
            out_specs=(
                pl.BlockSpec((tm, tn), lambda i, j, k: (i, j)),
                pl.BlockSpec((1, 2, tn), lambda i, j, k: (i, 0, j)),
            ),
            scratch_shapes=[pltpu.VMEM((tm, tn), jnp.float32)],
        ),
        compiler_params=pltpu.CompilerParams(
            dimension_semantics=("parallel", "parallel", "arbitrary"),
            vmem_limit_bytes=32 * 1024 * 1024,
        ),
    )(xcol, wcol)

    stats_red = jnp.sum(stats, axis=0)                      # (2, cout_p)
    y = conv_out[:m, :cout].reshape(n, ho, wo, cout)
    return y, stats_red


# ---------------------------------------------------------------------------
# BasicConv2d forward: x (N, Cin, H, W) NCHW -> (N, Cout, Ho, Wo) NCHW
# ---------------------------------------------------------------------------
@functools.partial(jax.jit, static_argnames=("stride", "padding", "dilation"))
def basic_conv2d(x, weight, gamma, beta, *, stride=1, padding=0, dilation=1):
    n, cin, h, w_in = x.shape
    cout, _, kh, kw = weight.shape
    eps = 1e-5

    ho = (h + 2 * padding - dilation * (kh - 1) - 1) // stride + 1
    wo = (w_in + 2 * padding - dilation * (kw - 1) - 1) // stride + 1
    m_true = n * ho * wo

    cout_p = _round_up(cout, 128)
    tn = _pick_tn(cout_p)

    # Per-step VMEM estimate for the direct path (incl. double buffering).
    wo_p = _round_up(wo, 16)
    hp = h + 2 * padding
    wp_ext = max(w_in + 2 * padding, (kw - 1) * dilation + wo_p)
    m_img = ho * wo_p
    direct_bytes = (2 * hp * wp_ext * cin * 2        # x image (bf16, double-buffered)
                    + 2 * kh * kw * cin * tn * 2     # weights
                    + 2 * m_img * tn * 2             # bf16 output tile
                    + m_img * tn * 4)                # f32 accumulator scratch
    use_direct = (stride == 1) and direct_bytes <= 40 * 1024 * 1024

    if use_direct:
        y, stats = _conv_stats_direct(x, weight, cout_p, tn, padding, dilation, ho, wo)
    else:
        y, stats = _conv_stats_im2col(x, weight, cout_p, tn, stride, padding,
                                      dilation, ho, wo)

    # Global BatchNorm statistics (training mode, biased variance like PyTorch).
    s1 = stats[0, :cout]
    s2 = stats[1, :cout]
    mean = s1 / m_true
    var = jnp.maximum(s2 / m_true - mean * mean, 0.0)     # clamp E[x^2]-mean^2 >= 0
    inv = jax.lax.rsqrt(var + eps)
    scale = gamma.astype(jnp.float32) * inv
    shift = beta.astype(jnp.float32) - mean * scale

    # BN affine: tiny per-channel vectors, fused by XLA into the NHWC->NCHW
    # transpose epilogue (no extra Pallas pass / HBM round-trip).
    out = y.astype(jnp.float32) * scale + shift           # (N, Ho, Wo, Cout)
    return jnp.transpose(out, (0, 3, 1, 2))


# ---------------------------------------------------------------------------
if __name__ == "__main__":
    key = jax.random.PRNGKey(0)
    k_x, k_w = jax.random.split(key)

    # Small shapes: N=2, Cin=4, H=W=16, Cout=8, 3x3 conv, stride=1, padding=1
    n, cin, h, w = 2, 4, 16, 16
    cout, kh, kw = 8, 3, 3
    stride, padding, dilation = 1, 1, 1

    x = jax.random.normal(k_x, (n, cin, h, w), dtype=jnp.float32)
    weight = 0.1 * jax.random.normal(k_w, (cout, cin, kh, kw), dtype=jnp.float32)
    gamma = jnp.ones((cout,), dtype=jnp.float32)   # BatchNorm2d default weight
    beta = jnp.zeros((cout,), dtype=jnp.float32)   # BatchNorm2d default bias

    y = basic_conv2d(x, weight, gamma, beta,
                     stride=stride, padding=padding, dilation=dilation)
    y = jax.block_until_ready(y)
    assert y.shape == (n, cout, h, w)

    # Reference: f32 conv + training-mode BatchNorm (loose tol: bf16 MXU operands).
    ref_conv = jax.lax.conv_general_dilated(
        x, weight, window_strides=(stride, stride),
        padding=[(padding, padding), (padding, padding)],
        rhs_dilation=(dilation, dilation),
        dimension_numbers=("NCHW", "OIHW", "NCHW"))
    r_mean = ref_conv.mean(axis=(0, 2, 3), keepdims=True)
    r_var = ref_conv.var(axis=(0, 2, 3), keepdims=True)
    ref = (ref_conv - r_mean) * jax.lax.rsqrt(r_var + 1e-5)
    ref = ref * gamma.reshape(1, cout, 1, 1) + beta.reshape(1, cout, 1, 1)
    assert jnp.allclose(y, ref, atol=1e-1, rtol=1e-1), float(jnp.max(jnp.abs(y - ref)))

    print("KERNEL_OK")
</pallas_src>

<mosaic_0001>
module attributes {stable_mosaic.version = 11 : i64} {
  func.func @_direct_conv_bn_stats_kernel(%arg0: i32, %arg1: i32, %arg2: memref<1x18x18x4xbf16, #tpu.memory_space<vmem>>, %arg3: memref<3x3x4x128xbf16, #tpu.memory_space<vmem>>, %arg4: memref<1x256x128xbf16, #tpu.memory_space<vmem>>, %arg5: memref<1x2x128xf32, #tpu.memory_space<vmem>>, %arg6: memref<256x128xf32, #tpu.memory_space<vmem>>) attributes {dimension_semantics = [#tpu.dimension_semantics<parallel>, #tpu.dimension_semantics<parallel>], iteration_bounds = array<i64: 2, 1>, scalar_prefetch = 0 : i64, scratch_operands = 1 : i64, tpu.core_type = #tpu.core_type<tc>, window_params = [{transform_indices = @transform_0, window_bounds = array<i64: 1, 18, 18, 4>}, {transform_indices = @transform_1, window_bounds = array<i64: 3, 3, 4, 128>}, {transform_indices = @transform_2, window_bounds = array<i64: 1, 256, 128>}, {transform_indices = @transform_3, window_bounds = array<i64: 1, 2, 128>}]} {
    %c0 = arith.constant 0 : index
    %c0_0 = arith.constant 0 : index
    %c0_1 = arith.constant 0 : index
    %c0_2 = arith.constant 0 : index
    %0 = vector.load %arg2[%c0, %c0_0, %c0_1, %c0_2] : memref<1x18x18x4xbf16, #tpu.memory_space<vmem>>, vector<1x16x16x4xbf16>
    %1 = vector.shape_cast %0 : vector<1x16x16x4xbf16> to vector<16x16x4xbf16>
    %2 = vector.shape_cast %1 : vector<16x16x4xbf16> to vector<256x4xbf16>
    %c0_3 = arith.constant 0 : index
    %c0_4 = arith.constant 0 : index
    %c0_5 = arith.constant 0 : index
    %c0_6 = arith.constant 0 : index
    %3 = vector.load %arg3[%c0_3, %c0_4, %c0_5, %c0_6] : memref<3x3x4x128xbf16, #tpu.memory_space<vmem>>, vector<1x1x4x128xbf16>
    %4 = vector.shape_cast %3 : vector<1x1x4x128xbf16> to vector<4x128xbf16>
    %cst = arith.constant dense<0.000000e+00> : vector<256x128xf32>
    %5 = tpu.matmul %2, %4, %cst {dimension_numbers = #tpu.dot_dimension_numbers<[1], [0], [0], [1], [0, 0, 1, 1], [], []>} : vector<256x4xbf16>, vector<4x128xbf16>, vector<256x128xf32> -> vector<256x128xf32>
    %c0_7 = arith.constant 0 : index
    %c0_8 = arith.constant 0 : index
    %6 = vector.load %arg6[%c0_7, %c0_8] : memref<256x128xf32, #tpu.memory_space<vmem>>, vector<256x128xf32>
    tpu.vector_store %arg6[%c0_7, %c0_8], %5 {strides = array<i32>} : memref<256x128xf32, #tpu.memory_space<vmem>>, vector<256x128xf32>,
    %c0_9 = arith.constant 0 : index
    %c0_10 = arith.constant 0 : index
    %c1 = arith.constant 1 : index
    %c0_11 = arith.constant 0 : index
    %7 = vector.load %arg2[%c0_9, %c0_10, %c1, %c0_11] : memref<1x18x18x4xbf16, #tpu.memory_space<vmem>>, vector<1x16x16x4xbf16>
    %8 = vector.shape_cast %7 : vector<1x16x16x4xbf16> to vector<16x16x4xbf16>
    %9 = vector.shape_cast %8 : vector<16x16x4xbf16> to vector<256x4xbf16>
    %c0_12 = arith.constant 0 : index
    %c1_13 = arith.constant 1 : index
    %c0_14 = arith.constant 0 : index
    %c0_15 = arith.constant 0 : index
    %10 = vector.load %arg3[%c0_12, %c1_13, %c0_14, %c0_15] : memref<3x3x4x128xbf16, #tpu.memory_space<vmem>>, vector<1x1x4x128xbf16>
    %11 = vector.shape_cast %10 : vector<1x1x4x128xbf16> to vector<4x128xbf16>
    %cst_16 = arith.constant dense<0.000000e+00> : vector<256x128xf32>
    %12 = tpu.matmul %9, %11, %cst_16 {dimension_numbers = #tpu.dot_dimension_numbers<[1], [0], [0], [1], [0, 0, 1, 1], [], []>} : vector<256x4xbf16>, vector<4x128xbf16>, vector<256x128xf32> -> vector<256x128xf32>
    %c0_17 = arith.constant 0 : index
    %c0_18 = arith.constant 0 : index
    %13 = vector.load %arg6[%c0_17, %c0_18] : memref<256x128xf32, #tpu.memory_space<vmem>>, vector<256x128xf32>
    %14 = arith.addf %13, %12 : vector<256x128xf32>
    %c0_19 = arith.constant 0 : index
    %c0_20 = arith.constant 0 : index
    %15 = vector.load %arg6[%c0_19, %c0_20] : memref<256x128xf32, #tpu.memory_space<vmem>>, vector<256x128xf32>
    tpu.vector_store %arg6[%c0_19, %c0_20], %14 {strides = array<i32>} : memref<256x128xf32, #tpu.memory_space<vmem>>, vector<256x128xf32>,
    %c0_21 = arith.constant 0 : index
    %c0_22 = arith.constant 0 : index
    %c2 = arith.constant 2 : index
    %c0_23 = arith.constant 0 : index
    %16 = vector.load %arg2[%c0_21, %c0_22, %c2, %c0_23] : memref<1x18x18x4xbf16, #tpu.memory_space<vmem>>, vector<1x16x16x4xbf16>
    %17 = vector.shape_cast %16 : vector<1x16x16x4xbf16> to vector<16x16x4xbf16>
    %18 = vector.shape_cast %17 : vector<16x16x4xbf16> to vector<256x4xbf16>
    %c0_24 = arith.constant 0 : index
    %c2_25 = arith.constant 2 : index
    %c0_26 = arith.constant 0 : index
    %c0_27 = arith.constant 0 : index
    %19 = vector.load %arg3[%c0_24, %c2_25, %c0_26, %c0_27] : memref<3x3x4x128xbf16, #tpu.memory_space<vmem>>, vector<1x1x4x128xbf16>
    %20 = vector.shape_cast %19 : vector<1x1x4x128xbf16> to vector<4x128xbf16>
    %cst_28 = arith.constant dense<0.000000e+00> : vector<256x128xf32>
    %21 = tpu.matmul %18, %20, %cst_28 {dimension_numbers = #tpu.dot_dimension_numbers<[1], [0], [0], [1], [0, 0, 1, 1], [], []>} : vector<256x4xbf16>, vector<4x128xbf16>, vector<256x128xf32> -> vector<256x128xf32>
    %c0_29 = arith.constant 0 : index
    %c0_30 = arith.constant 0 : index
    %22 = vector.load %arg6[%c0_29, %c0_30] : memref<256x128xf32, #tpu.memory_space<vmem>>, vector<256x128xf32>
    %23 = arith.addf %22, %21 : vector<256x128xf32>
    %c0_31 = arith.constant 0 : index
    %c0_32 = arith.constant 0 : index
    %24 = vector.load %arg6[%c0_31, %c0_32] : memref<256x128xf32, #tpu.memory_space<vmem>>, vector<256x128xf32>
    tpu.vector_store %arg6[%c0_31, %c0_32], %23 {strides = array<i32>} : memref<256x128xf32, #tpu.memory_space<vmem>>, vector<256x128xf32>,
    %c0_33 = arith.constant 0 : index
    %c1_34 = arith.constant 1 : index
    %c0_35 = arith.constant 0 : index
    %c0_36 = arith.constant 0 : index
    %25 = vector.load %arg2[%c0_33, %c1_34, %c0_35, %c0_36] : memref<1x18x18x4xbf16, #tpu.memory_space<vmem>>, vector<1x16x16x4xbf16>
    %26 = vector.shape_cast %25 : vector<1x16x16x4xbf16> to vector<16x16x4xbf16>
    %27 = vector.shape_cast %26 : vector<16x16x4xbf16> to vector<256x4xbf16>
    %c1_37 = arith.constant 1 : index
    %c0_38 = arith.constant 0 : index
    %c0_39 = arith.constant 0 : index
    %c0_40 = arith.constant 0 : index
    %28 = vector.load %arg3[%c1_37, %c0_38, %c0_39, %c0_40] : memref<3x3x4x128xbf16, #tpu.memory_space<vmem>>, vector<1x1x4x128xbf16>
    %29 = vector.shape_cast %28 : vector<1x1x4x128xbf16> to vector<4x128xbf16>
    %cst_41 = arith.constant dense<0.000000e+00> : vector<256x128xf32>
    %30 = tpu.matmul %27, %29, %cst_41 {dimension_numbers = #tpu.dot_dimension_numbers<[1], [0], [0], [1], [0, 0, 1, 1], [], []>} : vector<256x4xbf16>, vector<4x128xbf16>, vector<256x128xf32> -> vector<256x128xf32>
    %c0_42 = arith.constant 0 : index
    %c0_43 = arith.constant 0 : index
    %31 = vector.load %arg6[%c0_42, %c0_43] : memref<256x128xf32, #tpu.memory_space<vmem>>, vector<256x128xf32>
    %32 = arith.addf %31, %30 : vector<256x128xf32>
    %c0_44 = arith.constant 0 : index
    %c0_45 = arith.constant 0 : index
    %33 = vector.load %arg6[%c0_44, %c0_45] : memref<256x128xf32, #tpu.memory_space<vmem>>, vector<256x128xf32>
    tpu.vector_store %arg6[%c0_44, %c0_45], %32 {strides = array<i32>} : memref<256x128xf32, #tpu.memory_space<vmem>>, vector<256x128xf32>,
    %c0_46 = arith.constant 0 : index
    %c1_47 = arith.constant 1 : index
    %c1_48 = arith.constant 1 : index
    %c0_49 = arith.constant 0 : index
    %34 = vector.load %arg2[%c0_46, %c1_47, %c1_48, %c0_49] : memref<1x18x18x4xbf16, #tpu.memory_space<vmem>>, vector<1x16x16x4xbf16>
    %35 = vector.shape_cast %34 : vector<1x16x16x4xbf16> to vector<16x16x4xbf16>
    %36 = vector.shape_cast %35 : vector<16x16x4xbf16> to vector<256x4xbf16>
    %c1_50 = arith.constant 1 : index
    %c1_51 = arith.constant 1 : index
    %c0_52 = arith.constant 0 : index
    %c0_53 = arith.constant 0 : index
    %37 = vector.load %arg3[%c1_50, %c1_51, %c0_52, %c0_53] : memref<3x3x4x128xbf16, #tpu.memory_space<vmem>>, vector<1x1x4x128xbf16>
    %38 = vector.shape_cast %37 : vector<1x1x4x128xbf16> to vector<4x128xbf16>
    %cst_54 = arith.constant dense<0.000000e+00> : vector<256x128xf32>
    %39 = tpu.matmul %36, %38, %cst_54 {dimension_numbers = #tpu.dot_dimension_numbers<[1], [0], [0], [1], [0, 0, 1, 1], [], []>} : vector<256x4xbf16>, vector<4x128xbf16>, vector<256x128xf32> -> vector<256x128xf32>
    %c0_55 = arith.constant 0 : index
    %c0_56 = arith.constant 0 : index
    %40 = vector.load %arg6[%c0_55, %c0_56] : memref<256x128xf32, #tpu.memory_space<vmem>>, vector<256x128xf32>
    %41 = arith.addf %40, %39 : vector<256x128xf32>
    %c0_57 = arith.constant 0 : index
    %c0_58 = arith.constant 0 : index
    %42 = vector.load %arg6[%c0_57, %c0_58] : memref<256x128xf32, #tpu.memory_space<vmem>>, vector<256x128xf32>
    tpu.vector_store %arg6[%c0_57, %c0_58], %41 {strides = array<i32>} : memref<256x128xf32, #tpu.memory_space<vmem>>, vector<256x128xf32>,
    %c0_59 = arith.constant 0 : index
    %c1_60 = arith.constant 1 : index
    %c2_61 = arith.constant 2 : index
    %c0_62 = arith.constant 0 : index
    %43 = vector.load %arg2[%c0_59, %c1_60, %c2_61, %c0_62] : memref<1x18x18x4xbf16, #tpu.memory_space<vmem>>, vector<1x16x16x4xbf16>
    %44 = vector.shape_cast %43 : vector<1x16x16x4xbf16> to vector<16x16x4xbf16>
    %45 = vector.shape_cast %44 : vector<16x16x4xbf16> to vector<256x4xbf16>
    %c1_63 = arith.constant 1 : index
    %c2_64 = arith.constant 2 : index
    %c0_65 = arith.constant 0 : index
    %c0_66 = arith.constant 0 : index
    %46 = vector.load %arg3[%c1_63, %c2_64, %c0_65, %c0_66] : memref<3x3x4x128xbf16, #tpu.memory_space<vmem>>, vector<1x1x4x128xbf16>
    %47 = vector.shape_cast %46 : vector<1x1x4x128xbf16> to vector<4x128xbf16>
    %cst_67 = arith.constant dense<0.000000e+00> : vector<256x128xf32>
    %48 = tpu.matmul %45, %47, %cst_67 {dimension_numbers = #tpu.dot_dimension_numbers<[1], [0], [0], [1], [0, 0, 1, 1], [], []>} : vector<256x4xbf16>, vector<4x128xbf16>, vector<256x128xf32> -> vector<256x128xf32>
    %c0_68 = arith.constant 0 : index
    %c0_69 = arith.constant 0 : index
    %49 = vector.load %arg6[%c0_68, %c0_69] : memref<256x128xf32, #tpu.memory_space<vmem>>, vector<256x128xf32>
    %50 = arith.addf %49, %48 : vector<256x128xf32>
    %c0_70 = arith.constant 0 : index
    %c0_71 = arith.constant 0 : index
    %51 = vector.load %arg6[%c0_70, %c0_71] : memref<256x128xf32, #tpu.memory_space<vmem>>, vector<256x128xf32>
    tpu.vector_store %arg6[%c0_70, %c0_71], %50 {strides = array<i32>} : memref<256x128xf32, #tpu.memory_space<vmem>>, vector<256x128xf32>,
    %c0_72 = arith.constant 0 : index
    %c2_73 = arith.constant 2 : index
    %c0_74 = arith.constant 0 : index
    %c0_75 = arith.constant 0 : index
    %52 = vector.load %arg2[%c0_72, %c2_73, %c0_74, %c0_75] : memref<1x18x18x4xbf16, #tpu.memory_space<vmem>>, vector<1x16x16x4xbf16>
    %53 = vector.shape_cast %52 : vector<1x16x16x4xbf16> to vector<16x16x4xbf16>
    %54 = vector.shape_cast %53 : vector<16x16x4xbf16> to vector<256x4xbf16>
    %c2_76 = arith.constant 2 : index
    %c0_77 = arith.constant 0 : index
    %c0_78 = arith.constant 0 : index
    %c0_79 = arith.constant 0 : index
    %55 = vector.load %arg3[%c2_76, %c0_77, %c0_78, %c0_79] : memref<3x3x4x128xbf16, #tpu.memory_space<vmem>>, vector<1x1x4x128xbf16>
    %56 = vector.shape_cast %55 : vector<1x1x4x128xbf16> to vector<4x128xbf16>
    %cst_80 = arith.constant dense<0.000000e+00> : vector<256x128xf32>
    %57 = tpu.matmul %54, %56, %cst_80 {dimension_numbers = #tpu.dot_dimension_numbers<[1], [0], [0], [1], [0, 0, 1, 1], [], []>} : vector<256x4xbf16>, vector<4x128xbf16>, vector<256x128xf32> -> vector<256x128xf32>
    %c0_81 = arith.constant 0 : index
    %c0_82 = arith.constant 0 : index
    %58 = vector.load %arg6[%c0_81, %c0_82] : memref<256x128xf32, #tpu.memory_space<vmem>>, vector<256x128xf32>
    %59 = arith.addf %58, %57 : vector<256x128xf32>
    %c0_83 = arith.constant 0 : index
    %c0_84 = arith.constant 0 : index
    %60 = vector.load %arg6[%c0_83, %c0_84] : memref<256x128xf32, #tpu.memory_space<vmem>>, vector<256x128xf32>
    tpu.vector_store %arg6[%c0_83, %c0_84], %59 {strides = array<i32>} : memref<256x128xf32, #tpu.memory_space<vmem>>, vector<256x128xf32>,
    %c0_85 = arith.constant 0 : index
    %c2_86 = arith.constant 2 : index
    %c1_87 = arith.constant 1 : index
    %c0_88 = arith.constant 0 : index
    %61 = vector.load %arg2[%c0_85, %c2_86, %c1_87, %c0_88] : memref<1x18x18x4xbf16, #tpu.memory_space<vmem>>, vector<1x16x16x4xbf16>
    %62 = vector.shape_cast %61 : vector<1x16x16x4xbf16> to vector<16x16x4xbf16>
    %63 = vector.shape_cast %62 : vector<16x16x4xbf16> to vector<256x4xbf16>
    %c2_89 = arith.constant 2 : index
    %c1_90 = arith.constant 1 : index
    %c0_91 = arith.constant 0 : index
    %c0_92 = arith.constant 0 : index
    %64 = vector.load %arg3[%c2_89, %c1_90, %c0_91, %c0_92] : memref<3x3x4x128xbf16, #tpu.memory_space<vmem>>, vector<1x1x4x128xbf16>
    %65 = vector.shape_cast %64 : vector<1x1x4x128xbf16> to vector<4x128xbf16>
    %cst_93 = arith.constant dense<0.000000e+00> : vector<256x128xf32>
    %66 = tpu.matmul %63, %65, %cst_93 {dimension_numbers = #tpu.dot_dimension_numbers<[1], [0], [0], [1], [0, 0, 1, 1], [], []>} : vector<256x4xbf16>, vector<4x128xbf16>, vector<256x128xf32> -> vector<256x128xf32>
    %c0_94 = arith.constant 0 : index
    %c0_95 = arith.constant 0 : index
    %67 = vector.load %arg6[%c0_94, %c0_95] : memref<256x128xf32, #tpu.memory_space<vmem>>, vector<256x128xf32>
    %68 = arith.addf %67, %66 : vector<256x128xf32>
    %c0_96 = arith.constant 0 : index
    %c0_97 = arith.constant 0 : index
    %69 = vector.load %arg6[%c0_96, %c0_97] : memref<256x128xf32, #tpu.memory_space<vmem>>, vector<256x128xf32>
    tpu.vector_store %arg6[%c0_96, %c0_97], %68 {strides = array<i32>} : memref<256x128xf32, #tpu.memory_space<vmem>>, vector<256x128xf32>,
    %c0_98 = arith.constant 0 : index
    %c2_99 = arith.constant 2 : index
    %c2_100 = arith.constant 2 : index
    %c0_101 = arith.constant 0 : index
    %70 = vector.load %arg2[%c0_98, %c2_99, %c2_100, %c0_101] : memref<1x18x18x4xbf16, #tpu.memory_space<vmem>>, vector<1x16x16x4xbf16>
    %71 = vector.shape_cast %70 : vector<1x16x16x4xbf16> to vector<16x16x4xbf16>
    %72 = vector.shape_cast %71 : vector<16x16x4xbf16> to vector<256x4xbf16>
    %c2_102 = arith.constant 2 : index
    %c2_103 = arith.constant 2 : index
    %c0_104 = arith.constant 0 : index
    %c0_105 = arith.constant 0 : index
    %73 = vector.load %arg3[%c2_102, %c2_103, %c0_104, %c0_105] : memref<3x3x4x128xbf16, #tpu.memory_space<vmem>>, vector<1x1x4x128xbf16>
    %74 = vector.shape_cast %73 : vector<1x1x4x128xbf16> to vector<4x128xbf16>
    %cst_106 = arith.constant dense<0.000000e+00> : vector<256x128xf32>
    %75 = tpu.matmul %72, %74, %cst_106 {dimension_numbers = #tpu.dot_dimension_numbers<[1], [0], [0], [1], [0, 0, 1, 1], [], []>} : vector<256x4xbf16>, vector<4x128xbf16>, vector<256x128xf32> -> vector<256x128xf32>
    %c0_107 = arith.constant 0 : index
    %c0_108 = arith.constant 0 : index
    %76 = vector.load %arg6[%c0_107, %c0_108] : memref<256x128xf32, #tpu.memory_space<vmem>>, vector<256x128xf32>
    %77 = arith.addf %76, %75 : vector<256x128xf32>
    %c0_109 = arith.constant 0 : index
    %c0_110 = arith.constant 0 : index
    %78 = vector.load %arg6[%c0_109, %c0_110] : memref<256x128xf32, #tpu.memory_space<vmem>>, vector<256x128xf32>
    tpu.vector_store %arg6[%c0_109, %c0_110], %77 {strides = array<i32>} : memref<256x128xf32, #tpu.memory_space<vmem>>, vector<256x128xf32>,
    %c0_111 = arith.constant 0 : index
    %c0_112 = arith.constant 0 : index
    %79 = vector.load %arg6[%c0_111, %c0_112] : memref<256x128xf32, #tpu.memory_space<vmem>>, vector<256x128xf32>
    %80 = arith.truncf %79 : vector<256x128xf32> to vector<256x128xbf16>
    %c0_113 = arith.constant 0 : index
    %c0_114 = arith.constant 0 : index
    %c0_115 = arith.constant 0 : index
    %81 = vector.load %arg4[%c0_113, %c0_114, %c0_115] : memref<1x256x128xbf16, #tpu.memory_space<vmem>>, vector<1x256x128xbf16>
    %82 = vector.shape_cast %81 : vector<1x256x128xbf16> to vector<256x128xbf16>
    %83 = vector.shape_cast %80 : vector<256x128xbf16> to vector<1x256x128xbf16>
    tpu.vector_store %arg4[%c0_113, %c0_114, %c0_115], %83 {strides = array<i32>} : memref<1x256x128xbf16, #tpu.memory_space<vmem>>, vector<1x256x128xbf16>,
    %cst_116 = arith.constant dense<0.000000e+00> : vector<128xf32>
    %84 = vector.multi_reduction <add>, %79, %cst_116 [0] : vector<256x128xf32> to vector<128xf32>
    %85 = vector.shape_cast %84 : vector<128xf32> to vector<1x128xf32>
    %c0_117 = arith.constant 0 : index
    %c0_118 = arith.constant 0 : index
    %c0_119 = arith.constant 0 : index
    %86 = vector.load %arg5[%c0_117, %c0_118, %c0_119] : memref<1x2x128xf32, #tpu.memory_space<vmem>>, vector<1x1x128xf32>
    %87 = vector.shape_cast %86 : vector<1x1x128xf32> to vector<1x128xf32>
    %88 = vector.shape_cast %85 : vector<1x128xf32> to vector<1x1x128xf32>
    tpu.vector_store %arg5[%c0_117, %c0_118, %c0_119], %88 {strides = array<i32>} : memref<1x2x128xf32, #tpu.memory_space<vmem>>, vector<1x1x128xf32>,
    %89 = arith.mulf %79, %79 : vector<256x128xf32>
    %cst_120 = arith.constant dense<0.000000e+00> : vector<128xf32>
    %90 = vector.multi_reduction <add>, %89, %cst_120 [0] : vector<256x128xf32> to vector<128xf32>
    %91 = vector.shape_cast %90 : vector<128xf32> to vector<1x128xf32>
    %c0_121 = arith.constant 0 : index
    %c1_122 = arith.constant 1 : index
    %c0_123 = arith.constant 0 : index
    %92 = vector.load %arg5[%c0_121, %c1_122, %c0_123] : memref<1x2x128xf32, #tpu.memory_space<vmem>>, vector<1x1x128xf32>
    %93 = vector.shape_cast %92 : vector<1x1x128xf32> to vector<1x128xf32>
    %94 = vector.shape_cast %91 : vector<1x128xf32> to vector<1x1x128xf32>
    tpu.vector_store %arg5[%c0_121, %c1_122, %c0_123], %94 {strides = array<i32>} : memref<1x2x128xf32, #tpu.memory_space<vmem>>, vector<1x1x128xf32>,
    return
  }
  func.func @transform_0(%arg0: i32, %arg1: i32) -> (i32, i32, i32, i32) {
    %c0_i32 = arith.constant 0 : i32
    %c0_i32_0 = arith.constant 0 : i32
    %c0_i32_1 = arith.constant 0 : i32
    %c0_i32_2 = arith.constant 0 : i32
    return %arg0, %c0_i32, %c0_i32_0, %c0_i32_1 : i32, i32, i32, i32
  }
  func.func @transform_1(%arg0: i32, %arg1: i32) -> (i32, i32, i32, i32) {
    %c0_i32 = arith.constant 0 : i32
    %c0_i32_0 = arith.constant 0 : i32
    %c0_i32_1 = arith.constant 0 : i32
    %c0_i32_2 = arith.constant 0 : i32
    return %c0_i32, %c0_i32_0, %c0_i32_1, %arg1 : i32, i32, i32, i32
  }
  func.func @transform_2(%arg0: i32, %arg1: i32) -> (i32, i32, i32) {
    %c0_i32 = arith.constant 0 : i32
    %c0_i32_0 = arith.constant 0 : i32
    return %arg0, %c0_i32, %arg1 : i32, i32, i32
  }
  func.func @transform_3(%arg0: i32, %arg1: i32) -> (i32, i32, i32) {
    %c0_i32 = arith.constant 0 : i32
    %c0_i32_0 = arith.constant 0 : i32
    return %arg0, %c0_i32, %arg1 : i32, i32, i32
  }
}

</mosaic_0001>

<bundles_post_ra>
// kernel: basic_conv2d.1
= control target key start
LH: loop header
LB: loop body
LE: loop exit
PB: predicated region body
PF: predicated region fallthrough
CT: control target
= control target key end

     0   :  { %s7301_s12 = smov 0   ;;  %s7303_s13 = smov 0   ;;  %s8948_s0 = inlined_call_operand.vmem [shape: bf16[2,18,18,4], index: 0, kind: input, shape index: {}]   ;;  %s8949_s1 = inlined_call_operand.vmem [shape: bf16[3,3,4,128], index: 1, kind: input, shape index: {}]   ;;  %s8950_s2 = inlined_call_operand.vmem [shape: bf16[2,256,128], index: 2, kind: output, shape index: {0}]   ;;  %s8951_s3 = inlined_call_operand.vmem [shape: f32[2,2,128], index: 3, kind: output, shape index: {1}]  }
   0x1   :  { %s7305_s14 = smov 0  }
   0x2 LB: > { %s26_s15 = sadd.s32 1, %s7275_s13  ;;  %p5946_p0 = scmp.ge.s32.totalorder %s7279_s14, 1  ;;  %s7279_s14 = sphi %s7305_s14, %s14_s14   ;;  %s7275_s13 = sphi %s7303_s13, %s9011_s13   ;;  %s7271_s12 = sphi %s7301_s12, %s9010_s12  }
   0x3   : > { %p28_p1 = scmp.ge.s32.totalorder %s26_s15, 2  ;;  %p165_p2 = scmp.lt.s32.totalorder %s7279_s14, 3 }
   0x5   : > { %s9013_s15 = smov (%p28_p1, %s26_s15), 0  ;;  %p166_p3 = pnand %p5946_p0, %p165_p2 }
   0x7   : > { %169 = sbr.rel (%p166_p3) target bundleno = 565 (0x235), region = 28 }
   0xc   : > { %v260_v0 = vld [vmem:[%s8949_s1] sm:$0x3]  ;;  %vm390_vm0 = vcmask 1041408   ;;  %p203_p4 = scmp.lt.s32.totalorder %s7271_s12, 1  ;;  %v5983_v2 = vld [vmem:[%s8949_s1 + $0x2] sm:$0x3] }
   0xd   : > { %7175 = vmatprep.subr.msk.bf16.mxu1 %vm390_vm0, %v260_v0  ;;  %7174 = vmatprep.subr.msk.bf16.mxu0 %vm390_vm0, %v260_v0  ;;  %v392_v1 = vsel %vm390_vm0, %v260_v0, 0  ;;  %v6032_v3 = vld [vmem:[%s8949_s1 + $0x4] sm:$0x3]  ;;  %vm341_vm1 = vcmask 31744   ;;  %v6097_v8 = vld [vmem:[%s8949_s1 + $0x6] sm:$0x3] }
   0xe   : > { %7173 = vmatpush3.bf16.msra.mxu1 %v392_v1  ;;  %6867 = vmatpush3.bf16.msra.mxu0 %v392_v1  ;;  %s9015_s12 = smov (!%p203_p4, %s7271_s12), 1  ;;  %v1690_v7 = vsel %vm390_vm0, %v6032_v3, 0  ;;  %v1121_v10 = vsel %vm390_vm0, %v5983_v2, 0  ;;  %v6178_v11 = vld [vmem:[%s8949_s1 + $0x8] sm:$0x3]  ;;  %vm1476_vm2 = vcmask 1042432  }
   0xf   : > { %7176 = vmatprep.subr.msk.bf16.mxu1 %vm390_vm0, %v5983_v2  ;;  %7177 = vmatprep.subr.msk.bf16.mxu0 %vm390_vm0, %v6032_v3  ;;  %s7184_s22 = smul.u32 216, %s9015_s12  ;;  %vm635_vm3 = vsmask.f32 3328  ;;  %vm636_vm4 = vsmask.f32 7440  ;;  %vm1477_vm5 = vcmask 1046532  }
  0x10   : > { %v7371_v18 = vld [vmem:[%s8949_s1 + $0xa] sm:$0x3]  ;;  %v7376_v19 = vsel %vm390_vm0, %v6097_v8, 0  ;;  %v7381_v21 = vsel %vm390_vm0, %v6178_v11, 0  ;;  %vm7398_vm6 = vmor %vm1476_vm2, %vm1477_vm5  ;;  %s6585_s11 = sshll.u32 %s9015_s12, 7  ;;  %s5950_s19 = sshll.u32 %s9015_s12, 1 }
  0x11   : > { %s7339_s25 = scalar_lea.vmem %s8948_s0, %s7184_s22  ;;  %v7387_v24 = vsel %vm390_vm0, %v7371_v18, 0  ;;  %vm7412_vm7 = vmor %vm635_vm3, %vm636_vm4  ;;  %s8873_s18 = scalar_lea.vmem %s8950_s2, %s6585_s11 }
  0x12   : > { %v7209_v4 = vld [vmem:[%s7339_s25] sm:$0xff]   ;;  %v7211_v6 = vld [vmem:[%s7339_s25 + $0xc] sm:$0xff]   ;;  %v7213_v12 = vld [vmem:[%s7339_s25 + $0x18] sm:$0xff]   ;;  %s226_s22 = scalar_lea.vmem %s8951_s3, %s5950_s19 }
  0x13   : > { %v7210_v5 = vld [vmem:[%s7339_s25 + $0x60] sm:$0xff]   ;;  %6868 = vmatprep.mubr.msk.bf16.mxu0 %vm341_vm1, %v7209_v4  ;;  %v7212_v9 = vld [vmem:[%s7339_s25 + $0x6c] sm:$0xff]   ;;  %v7214_v13 = vld [vmem:[%s7339_s25 + $0x78] sm:$0xff]  }
  0x14   : > { %6884 = vmatprep.mubr.msk.bf16.mxu1 %vm341_vm1, %v7210_v5  ;;  %6869 = vmatmul.mubr.msk.bf16.vlgmr.msra.gmra.mxu0 %vm341_vm1, %v7211_v6  ;;  %v7215_v14 = vld [vmem:[%s7339_s25 + $0x24] sm:$0xff]   ;;  %v7217_v16 = vld [vmem:[%s7339_s25 + $0x30] sm:$0xff]   ;;  %v7219_v20 = vld [vmem:[%s7339_s25 + $0x3c] sm:$0xff]  }
  0x15   : > { %6885 = vmatmul.mubr.msk.bf16.vlgmr.msra.gmra.mxu1 %vm341_vm1, %v7212_v9  ;;  %6935 = vmatpush3.bf16.msra.mxu0 %v1690_v7  ;;  %v7216_v15 = vld [vmem:[%s7339_s25 + $0x84] sm:$0xff]   ;;  %v7218_v17 = vld [vmem:[%s7339_s25 + $0x90] sm:$0xff]   ;;  %v7220_v22 = vld [vmem:[%s7339_s25 + $0x9c] sm:$0xff]  }
  0x16   : > { %6901 = vmatpush3.bf16.msra.mxu1 %v1121_v10  ;;  %6872 = vmatprep.mubr.msk.bf16.mxu0 %vm341_vm1, %v7213_v12  ;;  %v7221_v23 = vld [vmem:[%s7339_s25 + $0x48] sm:$0xff]   ;;  %v587_v26 = vld [vmem:[%s7339_s25] sm:$0xf]  ;;  %v588_v27 = vld [vmem:[%s7339_s25 + $0x4] sm:$0xf] }
  0x17   : > { %6888 = vmatprep.mubr.msk.bf16.mxu1 %vm341_vm1, %v7214_v13  ;;  %7178 = vmatprep.subr.msk.bf16.mxu1 %vm390_vm0, %v6097_v8  ;;  %v7222_v25 = vld [vmem:[%s7339_s25 + $0xa8] sm:$0xff]   ;;  %v639_v29 = vshrl.u32 %v587_v26, 16  ;;  %v642_v30 = vshll.u32 %v587_v26, 16  ;;  %v648_v31 = vshll.u32 %v588_v27, 16  ;;  %v652_v32 = vshrl.u32 %v588_v27, 16  ;;  %v7223_v2 = vld [vmem:[%s7339_s25 + $0x54] sm:$0xff]  }
  0x18   : > { %7179 = vmatprep.subr.msk.bf16.mxu0 %vm390_vm0, %v6178_v11  ;;  %v589_v28 = vld [vmem:[%s7339_s25 + $0x8] sm:$0x1]  ;;  %v1380_v33 = vld [vmem:[%s7339_s25] sm:$0xe]  ;;  %v1381_v35 = vld [vmem:[%s7339_s25 + $0x4] sm:$0xf] }
  0x19   : > { %v658_v34 = vshll.u32 %v589_v28, 16  ;;  %v1382_v36 = vld [vmem:[%s7339_s25 + $0x8] sm:$0x1]  ;;  %v6016_v37 = vrot.slane %v1380_v33, 9  ;;  %v641_v38 = vrot.slane %v639_v29, 4  ;;  %v644_v39 = vrot.slane %v642_v30, 5 }
  0x1a   : > { %v650_v40 = vrot.slane %v648_v31, 5  ;;  %v654_v41 = vrot.slane %v652_v32, 4  ;;  %v590_v43 = vld [vmem:[%s7339_s25 + $0xc] sm:$0xf]  ;;  %v1481_v45 = vrot.slane %v1381_v35, 5  ;;  %v1484_v46 = vrot.slane %v1382_v36, 5 }
  0x1b   : > { %v660_v44 = vrot.slane %v658_v34, 5  ;;  %v591_v47 = vld [vmem:[%s7339_s25 + $0x10] sm:$0xf]  ;;  %v663_v48 = vshrl.u32 %v590_v43, 16  ;;  %v645_v49 = vor.u32 %v644_v39, %v641_v38  ;;  %v592_v51 = vld [vmem:[%s7339_s25 + $0x14] sm:$0x1] }
  0x1c   : > { %6873 = vmatmul.mubr.msk.bf16.gmra.mxu0 %vm341_vm1, %v7215_v14  ;;  %v655_v50 = vor.u32 %v654_v41, %v650_v40  ;;  %v666_v52 = vshll.u32 %v590_v43, 16  ;;  %v672_v53 = vshll.u32 %v591_v47, 16  ;;  %v1383_v54 = vld [vmem:[%s7339_s25 + $0xc] sm:$0xe]  ;;  %v1482_v56 = vsel %vm7398_vm6, %v6016_v37, %v1481_v45  ;;  %v1384_v60 = vld [vmem:[%s7339_s25 + $0x10] sm:$0xf] }
  0x1d   : > { %6889 = vmatmul.mubr.msk.bf16.gmra.mxu1 %vm341_vm1, %v7216_v15  ;;  %6876 = vmatprep.mubr.msk.bf16.mxu0 %vm341_vm1, %v7217_v16  ;;  %v1483_v57 = vrot.slane %v1481_v45, 4  ;;  %v665_v58 = vrot.slane %v663_v48, 4  ;;  %v676_v59 = vshrl.u32 %v591_v47, 16  ;;  %v646_v61 = vrot.slane %v645_v49, 4  ;;  %v1385_v1 = vld [vmem:[%s7339_s25 + $0x14] sm:$0x1] }
  0x1e   : > { %6892 = vmatprep.mubr.msk.bf16.mxu1 %vm341_vm1, %v7218_v17  ;;  %v656_v62 = vrot.slane %v655_v50, 4  ;;  %v668_v63 = vrot.slane %v666_v52, 5  ;;  %v674_v0 = vrot.slane %v672_v53, 5  ;;  %v682_v5 = vshll.u32 %v592_v51, 16  ;;  %v593_v7 = vld [vmem:[%s7339_s25 + $0x18] sm:$0xf] }
  0x1f   : > { %v1485_v3 = vsel %vm7398_vm6, %v1483_v57, %v1484_v46  ;;  %v678_v4 = vrot.slane %v676_v59, 4  ;;  %v6017_v6 = vrot.slane %v1383_v54, 9  ;;  %v7224_v8 = vld [vmem:[%s7339_s25 + $0xb4] sm:$0xff]   ;;  %v651_v9 = vsel %vm7412_vm7, %v646_v61, %v650_v40  ;;  %v594_v13 = vld [vmem:[%s7339_s25 + $0x1c] sm:$0xf] }
  0x20   : > { %v661_v10 = vsel %vm7412_vm7, %v656_v62, %v660_v44  ;;  %v6033_v11 = vcombine.low %v1482_v56, %v1485_v3  ;;  %v669_v12 = vor.u32 %v668_v63, %v665_v58  ;;  %v684_v16 = vrot.slane %v682_v5, 5  ;;  %v1386_v27 = vld [vmem:[%s7339_s25 + $0x18] sm:$0xe]  ;;  %v1387_v32 = vld [vmem:[%s7339_s25 + $0x1c] sm:$0xf] }
  0x21   : > { %v5984_v14 = vcombine.low %v651_v9, %v661_v10  ;;  %v679_v15 = vor.u32 %v678_v4, %v674_v0  ;;  %v1488_v17 = vrot.slane %v1384_v60, 5  ;;  %v690_v26 = vshll.u32 %v593_v7, 16  ;;  %v1388_v37 = vld [vmem:[%s7339_s25 + $0x20] sm:$0x1]  ;;  %v596_v43 = vld [vmem:[%s7339_s25 + $0x24] sm:$0xf] }
  0x22   : > { %v696_v31 = vshll.u32 %v594_v13, 16  ;;  %v700_v36 = vshrl.u32 %v594_v13, 16  ;;  %v597_v48 = vld [vmem:[%s7339_s25 + $0x28] sm:$0xf]  ;;  %v6018_v50 = vrot.slane %v1386_v27, 9  ;;  %v1495_v51 = vrot.slane %v1387_v32, 5 }
  0x23   : > { %v680_v28 = vrot.slane %v679_v15, 4  ;;  %v1489_v29 = vsel %vm7398_vm6, %v6017_v6, %v1488_v17  ;;  %v1490_v30 = vrot.slane %v1488_v17, 4  ;;  %v692_v35 = vrot.slane %v690_v26, 5  ;;  %v598_v53 = vld [vmem:[%s7339_s25 + $0x2c] sm:$0x1] }
  0x24   : > { %6877 = vmatmul.mubr.msk.bf16.gmra.mxu0 %vm341_vm1, %v7219_v20  ;;  %v595_v20 = vld [vmem:[%s7339_s25 + $0x20] sm:$0x1]  ;;  %v698_v40 = vrot.slane %v696_v31, 5  ;;  %v702_v47 = vrot.slane %v700_v36, 4  ;;  %v1498_v52 = vrot.slane %v1388_v37, 5  ;;  %v711_v57 = vshrl.u32 %v596_v43, 16 }
  0x25   : > { %6893 = vmatmul.mubr.msk.bf16.gmra.mxu1 %vm341_vm1, %v7220_v22  ;;  %6880 = vmatprep.mubr.msk.bf16.mxu0 %vm341_vm1, %v7221_v23  ;;  %v670_v22 = vrot.slane %v669_v12, 4  ;;  %v1491_v23 = vrot.slane %v1385_v1, 5  ;;  %v685_v38 = vsel %vm7412_vm7, %v680_v28, %v684_v16  ;;  %v706_v41 = vshll.u32 %v595_v20, 16  ;;  %v1389_v59 = vld [vmem:[%s7339_s25 + $0x24] sm:$0xe] }
  0x26   : > { %6896 = vmatprep.mubr.msk.bf16.mxu1 %vm341_vm1, %v7222_v25  ;;  %v687_v25 = vshrl.u32 %v593_v7, 16  ;;  %v703_v56 = vor.u32 %v702_v47, %v698_v40  ;;  %v714_v58 = vshll.u32 %v596_v43, 16  ;;  %v1496_v60 = vsel %vm7398_vm6, %v6018_v50, %v1495_v51  ;;  %v1391_v5 = vld [vmem:[%s7339_s25 + $0x2c] sm:$0x1]  ;;  %v599_v10 = vld [vmem:[%s7339_s25 + $0x30] sm:$0xf] }
  0x27   : > { %v675_v33 = vsel %vm7412_vm7, %v670_v22, %v674_v0  ;;  %v1492_v39 = vsel %vm7398_vm6, %v1490_v30, %v1491_v23  ;;  %v708_v49 = vrot.slane %v706_v41, 5  ;;  %v1497_v61 = vrot.slane %v1495_v51, 4  ;;  %v1390_v0 = vld [vmem:[%s7339_s25 + $0x28] sm:$0xf]  ;;  %v600_v15 = vld [vmem:[%s7339_s25 + $0x34] sm:$0xf] }
  0x28   : > { %v689_v34 = vrot.slane %v687_v25, 4  ;;  %v5985_v44 = vcombine.low %v675_v33, %v685_v38  ;;  %v6034_v45 = vcombine.low %v1489_v29, %v1492_v39  ;;  %v720_v62 = vshll.u32 %v597_v48, 16  ;;  %v601_v23 = vld [vmem:[%s7339_s25 + $0x38] sm:$0x1]  ;;  %v1392_v28 = vld [vmem:[%s7339_s25 + $0x30] sm:$0xe] }
  0x29   : > { %v724_v63 = vshrl.u32 %v597_v48, 16  ;;  %v713_v3 = vrot.slane %v711_v57, 4  ;;  %v716_v4 = vrot.slane %v714_v58, 5  ;;  %v1499_v6 = vsel %vm7398_vm6, %v1497_v61, %v1498_v52  ;;  %v1393_v32 = vld [vmem:[%s7339_s25 + $0x34] sm:$0xf] }
  0x2a   : > { %v693_v46 = vor.u32 %v692_v35, %v689_v34  ;;  %v722_v7 = vrot.slane %v720_v62, 5  ;;  %v730_v9 = vshll.u32 %v598_v53, 16  ;;  %v6035_v12 = vcombine.low %v1496_v60, %v1499_v6  ;;  %v1394_v37 = vld [vmem:[%s7339_s25 + $0x38] sm:$0x1]  ;;  %v602_v41 = vld [vmem:[%s7339_s25 + $0x3c] sm:$0xf] }
  0x2b   : > { %v717_v13 = vor.u32 %v716_v4, %v713_v3  ;;  %v1502_v22 = vrot.slane %v1390_v0, 5  ;;  %v735_v26 = vshrl.u32 %v599_v10, 16  ;;  %v738_v27 = vshll.u32 %v599_v10, 16  ;;  %v603_v47 = vld [vmem:[%s7339_s25 + $0x40] sm:$0xf] }
  0x2c   : > { %6881 = vmatmul.mubr.msk.bf16.gmra.mxu0 %vm341_vm1, %v7223_v2  ;;  %v694_v54 = vrot.slane %v693_v46, 4  ;;  %v704_v2 = vrot.slane %v703_v56, 4  ;;  %v732_v20 = vrot.slane %v730_v9, 5  ;;  %v744_v31 = vshll.u32 %v600_v15, 16  ;;  %v604_v52 = vld [vmem:[%s7339_s25 + $0x44] sm:$0x1] }
  0x2d   : > { %6897 = vmatmul.mubr.msk.bf16.gmra.mxu1 %vm341_vm1, %v7224_v8  ;;  %6936 = vmatprep.mubr.msk.bf16.mxu0 %vm341_vm1, %v6033_v11  ;;  %v726_v8 = vrot.slane %v724_v63, 4  ;;  %v718_v25 = vrot.slane %v717_v13, 4  ;;  %v1504_v30 = vrot.slane %v1502_v22, 4  ;;  %v737_v34 = vrot.slane %v735_v26, 4  ;;  %v1395_v58 = vld [vmem:[%s7339_s25 + $0x3c] sm:$0xe] }
  0x2e   : > { %6902 = vmatprep.mubr.msk.bf16.mxu1 %vm341_vm1, %v5984_v14  ;;  %v699_v1 = vsel %vm7412_vm7, %v694_v54, %v698_v40  ;;  %v709_v11 = vsel %vm7412_vm7, %v704_v2, %v708_v49  ;;  %v6019_v14 = vrot.slane %v1389_v59, 9  ;;  %v740_v35 = vrot.slane %v738_v27, 5  ;;  %v1396_v63 = vld [vmem:[%s7339_s25 + $0x40] sm:$0xf]  ;;  %v1397_v4 = vld [vmem:[%s7339_s25 + $0x44] sm:$0x1] }
  0x2f   : > { %v5986_v16 = vcombine.low %v699_v1, %v709_v11  ;;  %v727_v17 = vor.u32 %v726_v8, %v722_v7  ;;  %v723_v33 = vsel %vm7412_vm7, %v718_v25, %v722_v7  ;;  %v748_v36 = vshrl.u32 %v600_v15, 16  ;;  %v605_v9 = vld [vmem:[%s7339_s25 + $0x48] sm:$0xf] }
  0x30   : > { %v1503_v29 = vsel %vm7398_vm6, %v6019_v14, %v1502_v22  ;;  %v746_v39 = vrot.slane %v744_v31, 5  ;;  %v754_v40 = vshll.u32 %v601_v23, 16  ;;  %v6020_v49 = vrot.slane %v1392_v28, 9  ;;  %v606_v14 = vld [vmem:[%s7339_s25 + $0x4c] sm:$0xf] }
  0x31   : > { %v750_v46 = vrot.slane %v748_v36, 4  ;;  %v1509_v50 = vrot.slane %v1393_v32, 5  ;;  %v1512_v51 = vrot.slane %v1394_v37, 5  ;;  %v759_v56 = vshrl.u32 %v602_v41, 16  ;;  %v607_v22 = vld [vmem:[%s7339_s25 + $0x50] sm:$0x1] }
  0x32   : > { %v756_v48 = vrot.slane %v754_v40, 5  ;;  %v762_v57 = vshll.u32 %v602_v41, 16  ;;  %v768_v61 = vshll.u32 %v603_v47, 16  ;;  %v772_v62 = vshrl.u32 %v603_v47, 16  ;;  %v1398_v27 = vld [vmem:[%s7339_s25 + $0x48] sm:$0xe] }
  0x33   : > { %v751_v54 = vor.u32 %v750_v46, %v746_v39  ;;  %v1510_v59 = vsel %vm7398_vm6, %v6020_v49, %v1509_v50  ;;  %v1511_v60 = vrot.slane %v1509_v50, 4  ;;  %v761_v2 = vrot.slane %v759_v56, 4  ;;  %v1399_v31 = vld [vmem:[%s7339_s25 + $0x4c] sm:$0xf]  ;;  %v1400_v36 = vld [vmem:[%s7339_s25 + $0x50] sm:$0x1] }
  0x34   : > { %6937 = vmatmul.mubr.msk.bf16.vlgmr.msra.gmra.mxu0 %vm341_vm1, %v6034_v45  ;;  %v741_v45 = vor.u32 %v740_v35, %v737_v34  ;;  %v764_v3 = vrot.slane %v762_v57, 5  ;;  %v770_v6 = vrot.slane %v768_v61, 5  ;;  %v774_v7 = vrot.slane %v772_v62, 4  ;;  %v608_v40 = vld [vmem:[%s7339_s25 + $0x54] sm:$0xf] }
  0x35   : > { %6903 = vmatmul.mubr.msk.bf16.vlgmr.msra.gmra.mxu1 %vm341_vm1, %v5985_v44  ;;  %7003 = vmatpush3.bf16.msra.mxu0 %v7381_v21  ;;  %v1505_v21 = vrot.slane %v1391_v5, 5  ;;  %v752_v1 = vrot.slane %v751_v54, 4  ;;  %v1513_v5 = vsel %vm7398_vm6, %v1511_v60, %v1512_v51  ;;  %v778_v8 = vshll.u32 %v604_v52, 16  ;;  %v609_v46 = vld [vmem:[%s7339_s25 + $0x58] sm:$0xf] }
  0x36   : > { %6969 = vmatpush3.bf16.msra.mxu1 %v7376_v19  ;;  %6940 = vmatprep.mubr.msk.bf16.mxu0 %vm341_vm1, %v6035_v12  ;;  %v728_v19 = vrot.slane %v727_v17, 4  ;;  %v742_v53 = vrot.slane %v741_v45, 4  ;;  %v6037_v11 = vcombine.low %v1510_v59, %v1513_v5  ;;  %v765_v12 = vor.u32 %v764_v3, %v761_v2  ;;  %v610_v51 = vld [vmem:[%s7339_s25 + $0x5c] sm:$0x1]  ;;  %v1401_v57 = vld [vmem:[%s7339_s25 + $0x54] sm:$0xe] }
  0x37   : > { %7180 = vmatprep.subr.msk.bf16.mxu1 %vm390_vm0, %v7371_v18  ;;  %6906 = vmatprep.mubr.msk.bf16.mxu1 %vm341_vm1, %v5986_v16  ;;  %v1506_v38 = vsel %vm7398_vm6, %v1504_v30, %v1505_v21  ;;  %v757_v10 = vsel %vm7412_vm7, %v752_v1, %v756_v48  ;;  %v6021_v13 = vrot.slane %v1395_v58, 9  ;;  %v775_v16 = vor.u32 %v774_v7, %v770_v6  ;;  %v1402_v62 = vld [vmem:[%s7339_s25 + $0x58] sm:$0xf]  ;;  %v1403_v3 = vld [vmem:[%s7339_s25 + $0x5c] sm:$0x1] }
  0x38   : > { %v733_v18 = vsel %vm7412_vm7, %v728_v19, %v732_v20  ;;  %v6036_v44 = vcombine.low %v1503_v29, %v1506_v38  ;;  %v747_v0 = vsel %vm7412_vm7, %v742_v53, %v746_v39  ;;  %v780_v17 = vrot.slane %v778_v8, 5  ;;  %v611_v8 = vld [vmem:[%s7339_s25 + $0x60] sm:$0xf] }
  0x39   : > { %v5987_v43 = vcombine.low %v723_v33, %v733_v18  ;;  %v5988_v15 = vcombine.low %v747_v0, %v757_v10  ;;  %v1516_v20 = vrot.slane %v1396_v63, 5  ;;  %v766_v23 = vrot.slane %v765_v12, 4 }
  0x3a   : > { %v1519_v25 = vrot.slane %v1397_v4, 5  ;;  %v783_v21 = vshrl.u32 %v605_v9, 16  ;;  %v786_v26 = vshll.u32 %v605_v9, 16  ;;  %v776_v28 = vrot.slane %v775_v16, 4 }
  0x3b   : > { %v1517_v19 = vsel %vm7398_vm6, %v6021_v13, %v1516_v20  ;;  %v1518_v29 = vrot.slane %v1516_v20, 4  ;;  %v792_v30 = vshll.u32 %v606_v14, 16  ;;  %v771_v32 = vsel %vm7412_vm7, %v766_v23, %v770_v6  ;;  %v612_v13 = vld [vmem:[%s7339_s25 + $0x64] sm:$0xf]  ;;  %v613_v20 = vld [vmem:[%s7339_s25 + $0x68] sm:$0x1] }
  0x3c   : > { %6941 = vmatmul.mubr.msk.bf16.gmra.mxu0 %vm341_vm1, %v6036_v44  ;;  %v785_v33 = vrot.slane %v783_v21, 4  ;;  %v788_v34 = vrot.slane %v786_v26, 5  ;;  %v796_v35 = vshrl.u32 %v606_v14, 16  ;;  %v781_v37 = vsel %vm7412_vm7, %v776_v28, %v780_v17  ;;  %v1404_v26 = vld [vmem:[%s7339_s25 + $0x60] sm:$0xe] }
  0x3d   : > { %6907 = vmatmul.mubr.msk.bf16.gmra.mxu1 %vm341_vm1, %v5987_v43  ;;  %6944 = vmatprep.mubr.msk.bf16.mxu0 %vm341_vm1, %v6037_v11  ;;  %v1520_v18 = vsel %vm7398_vm6, %v1518_v29, %v1519_v25  ;;  %v794_v38 = vrot.slane %v792_v30, 5  ;;  %v802_v39 = vshll.u32 %v607_v22, 16  ;;  %v5989_v41 = vcombine.low %v771_v32, %v781_v37  ;;  %v1405_v30 = vld [vmem:[%s7339_s25 + $0x64] sm:$0xf] }
  0x3e   : > { %6910 = vmatprep.mubr.msk.bf16.mxu1 %vm341_vm1, %v5988_v15  ;;  %v6038_v43 = vcombine.low %v1517_v19, %v1520_v18  ;;  %v789_v44 = vor.u32 %v788_v34, %v785_v33  ;;  %v798_v45 = vrot.slane %v796_v35, 4  ;;  %v6022_v48 = vrot.slane %v1398_v27, 9  ;;  %v1406_v35 = vld [vmem:[%s7339_s25 + $0x68] sm:$0x1] }
  0x3f   : > { %v804_v47 = vrot.slane %v802_v39, 5  ;;  %v1523_v49 = vrot.slane %v1399_v31, 5  ;;  %v1526_v50 = vrot.slane %v1400_v36, 5  ;;  %v807_v54 = vshrl.u32 %v608_v40, 16  ;;  %v614_v39 = vld [vmem:[%s7339_s25 + $0x6c] sm:$0xf] }
  0x40   : > { %v790_v52 = vrot.slane %v789_v44, 4  ;;  %v799_v53 = vor.u32 %v798_v45, %v794_v38  ;;  %v810_v56 = vshll.u32 %v608_v40, 16  ;;  %v816_v60 = vshll.u32 %v609_v46, 16  ;;  %v615_v45 = vld [vmem:[%s7339_s25 + $0x70] sm:$0xf] }
  0x41   : > { %v1524_v58 = vsel %vm7398_vm6, %v6022_v48, %v1523_v49  ;;  %v1525_v59 = vrot.slane %v1523_v49, 4  ;;  %v820_v61 = vshrl.u32 %v609_v46, 16  ;;  %v809_v1 = vrot.slane %v807_v54, 4 }
  0x42   : > { %v795_v63 = vsel %vm7412_vm7, %v790_v52, %v794_v38  ;;  %v800_v0 = vrot.slane %v799_v53, 4  ;;  %v812_v2 = vrot.slane %v810_v56, 5  ;;  %v818_v5 = vrot.slane %v816_v60, 5  ;;  %v1407_v56 = vld [vmem:[%s7339_s25 + $0x6c] sm:$0xe] }
  0x43   : > { %v1527_v4 = vsel %vm7398_vm6, %v1525_v59, %v1526_v50  ;;  %v822_v6 = vrot.slane %v820_v61, 4  ;;  %v826_v7 = vshll.u32 %v610_v51, 16  ;;  %v6023_v12 = vrot.slane %v1401_v57, 9  ;;  %v616_v50 = vld [vmem:[%s7339_s25 + $0x74] sm:$0x1] }
  0x44   : > { %6945 = vmatmul.mubr.msk.bf16.gmra.mxu0 %vm341_vm1, %v6038_v43  ;;  %v805_v9 = vsel %vm7412_vm7, %v800_v0, %v804_v47  ;;  %v6039_v10 = vcombine.low %v1524_v58, %v1527_v4  ;;  %v813_v11 = vor.u32 %v812_v2, %v809_v1  ;;  %v1530_v17 = vrot.slane %v1402_v62, 5  ;;  %v1408_v61 = vld [vmem:[%s7339_s25 + $0x70] sm:$0xf]  ;;  %v1409_v2 = vld [vmem:[%s7339_s25 + $0x74] sm:$0x1] }
  0x45   : > { %6911 = vmatmul.mubr.msk.bf16.gmra.mxu1 %vm341_vm1, %v5989_v41  ;;  %v5990_v14 = vcombine.low %v795_v63, %v805_v9  ;;  %v823_v15 = vor.u32 %v822_v6, %v818_v5  ;;  %v828_v16 = vrot.slane %v826_v7, 5  ;;  %v1533_v23 = vrot.slane %v1403_v3, 5  ;;  %v617_v7 = vld [vmem:[%s7339_s25 + $0x78] sm:$0xf] }
  0x46   : > { %6948 = vmatprep.mubr.msk.bf16.mxu0 %vm341_vm1, %v6039_v10  ;;  %v814_v22 = vrot.slane %v813_v11, 4  ;;  %v831_v25 = vshrl.u32 %v611_v8, 16  ;;  %v834_v21 = vshll.u32 %v611_v8, 16  ;;  %v1531_v28 = vsel %vm7398_vm6, %v6023_v12, %v1530_v17  ;;  %v618_v12 = vld [vmem:[%s7339_s25 + $0x7c] sm:$0xf] }
  0x47   : > { %6914 = vmatprep.mubr.msk.bf16.mxu1 %vm341_vm1, %v5990_v14  ;;  %v824_v27 = vrot.slane %v823_v15, 4  ;;  %v1532_v19 = vrot.slane %v1530_v17, 4  ;;  %v840_v29 = vshll.u32 %v612_v13, 16  ;;  %v844_v34 = vshrl.u32 %v612_v13, 16  ;;  %v619_v17 = vld [vmem:[%s7339_s25 + $0x80] sm:$0x1] }
  0x48   : > { %v819_v31 = vsel %vm7412_vm7, %v814_v22, %v818_v5  ;;  %v833_v32 = vrot.slane %v831_v25, 4  ;;  %v836_v33 = vrot.slane %v834_v21, 5  ;;  %v850_v38 = vshll.u32 %v613_v20, 16  ;;  %v1410_v21 = vld [vmem:[%s7339_s25 + $0x78] sm:$0xe] }
  0x49   : > { %v829_v36 = vsel %vm7412_vm7, %v824_v27, %v828_v16  ;;  %v1534_v37 = vsel %vm7398_vm6, %v1532_v19, %v1533_v23  ;;  %v842_v18 = vrot.slane %v840_v29, 5  ;;  %v846_v44 = vrot.slane %v844_v34, 4  ;;  %v1411_v29 = vld [vmem:[%s7339_s25 + $0x7c] sm:$0xf]  ;;  %v1412_v34 = vld [vmem:[%s7339_s25 + $0x80] sm:$0x1] }
  0x4a   : > { %v5991_v40 = vcombine.low %v819_v31, %v829_v36  ;;  %v6040_v41 = vcombine.low %v1531_v28, %v1534_v37  ;;  %v837_v43 = vor.u32 %v836_v33, %v833_v32  ;;  %v852_v46 = vrot.slane %v850_v38, 5  ;;  %v620_v38 = vld [vmem:[%s7339_s25 + $0x84] sm:$0xf] }
  0x4b   : > { %v6024_v47 = vrot.slane %v1404_v26, 9  ;;  %v1537_v48 = vrot.slane %v1405_v30, 5  ;;  %v1540_v49 = vrot.slane %v1406_v35, 5  ;;  %v847_v52 = vor.u32 %v846_v44, %v842_v18  ;;  %v621_v44 = vld [vmem:[%s7339_s25 + $0x88] sm:$0xf] }
  0x4c   : > { %6949 = vmatmul.mubr.msk.bf16.gmra.mxu0 %vm341_vm1, %v6040_v41  ;;  %v838_v51 = vrot.slane %v837_v43, 4  ;;  %v855_v53 = vshrl.u32 %v614_v39, 16  ;;  %v858_v54 = vshll.u32 %v614_v39, 16  ;;  %v864_v59 = vshll.u32 %v615_v45, 16 }
  0x4d   : > { %6915 = vmatmul.mubr.msk.bf16.gmra.mxu1 %vm341_vm1, %v5991_v40  ;;  %v1538_v57 = vsel %vm7398_vm6, %v6024_v47, %v1537_v48  ;;  %v1539_v58 = vrot.slane %v1537_v48, 4  ;;  %v868_v60 = vshrl.u32 %v615_v45, 16  ;;  %v848_v63 = vrot.slane %v847_v52, 4 }
  0x4e   : > { %v843_v62 = vsel %vm7412_vm7, %v838_v51, %v842_v18  ;;  %v857_v0 = vrot.slane %v855_v53, 4  ;;  %v860_v1 = vrot.slane %v858_v54, 5  ;;  %v866_v4 = vrot.slane %v864_v59, 5  ;;  %v1413_v54 = vld [vmem:[%s7339_s25 + $0x84] sm:$0xe] }
  0x4f   : > { %v1541_v3 = vsel %vm7398_vm6, %v1539_v58, %v1540_v49  ;;  %v870_v5 = vrot.slane %v868_v60, 4  ;;  %v874_v6 = vshll.u32 %v616_v50, 16  ;;  %v853_v8 = vsel %vm7412_vm7, %v848_v63, %v852_v46  ;;  %v622_v49 = vld [vmem:[%s7339_s25 + $0x8c] sm:$0x1]  ;;  %v1414_v60 = vld [vmem:[%s7339_s25 + $0x88] sm:$0xf] }
  0x50   : > { %v6041_v9 = vcombine.low %v1538_v57, %v1541_v3  ;;  %v861_v10 = vor.u32 %v860_v1, %v857_v0  ;;  %v6025_v11 = vrot.slane %v1407_v56, 9  ;;  %v5992_v13 = vcombine.low %v843_v62, %v853_v8  ;;  %v1415_v1 = vld [vmem:[%s7339_s25 + $0x8c] sm:$0x1] }
  0x51   : > { %v871_v14 = vor.u32 %v870_v5, %v866_v4  ;;  %v876_v15 = vrot.slane %v874_v6, 5  ;;  %v1544_v16 = vrot.slane %v1408_v61, 5  ;;  %v1547_v22 = vrot.slane %v1409_v2, 5  ;;  %v623_v6 = vld [vmem:[%s7339_s25 + $0x90] sm:$0xf] }
  0x52   : > { %6952 = vmatprep.mubr.msk.bf16.mxu0 %vm341_vm1, %v6041_v9  ;;  %v862_v20 = vrot.slane %v861_v10, 4  ;;  %v879_v23 = vshrl.u32 %v617_v7, 16  ;;  %v882_v25 = vshll.u32 %v617_v7, 16  ;;  %6918 = vmatprep.mubr.msk.bf16.mxu1 %vm341_vm1, %v5992_v13  ;;  %v888_v19 = vshll.u32 %v618_v12, 16 }
  0x53   : > { %v872_v26 = vrot.slane %v871_v14, 4  ;;  %v1545_v27 = vsel %vm7398_vm6, %v6025_v11, %v1544_v16  ;;  %v1546_v28 = vrot.slane %v1544_v16, 4  ;;  %v892_v33 = vshrl.u32 %v618_v12, 16  ;;  %v624_v11 = vld [vmem:[%s7339_s25 + $0x94] sm:$0xf] }
  0x54   : > { %v867_v30 = vsel %vm7412_vm7, %v862_v20, %v866_v4  ;;  %v881_v31 = vrot.slane %v879_v23, 4  ;;  %v884_v32 = vrot.slane %v882_v25, 5  ;;  %v890_v37 = vrot.slane %v888_v19, 5  ;;  %v625_v12 = vld [vmem:[%s7339_s25 + $0x98] sm:$0x1] }
  0x55   : > { %v877_v35 = vsel %vm7412_vm7, %v872_v26, %v876_v15  ;;  %v1548_v36 = vsel %vm7398_vm6, %v1546_v28, %v1547_v22  ;;  %v898_v18 = vshll.u32 %v619_v17, 16  ;;  %v894_v43 = vrot.slane %v892_v33, 4  ;;  %v1416_v25 = vld [vmem:[%s7339_s25 + $0x90] sm:$0xe] }
  0x56   : > { %v5993_v39 = vcombine.low %v867_v30, %v877_v35  ;;  %v6042_v40 = vcombine.low %v1545_v27, %v1548_v36  ;;  %v885_v41 = vor.u32 %v884_v32, %v881_v31  ;;  %v6026_v46 = vrot.slane %v1410_v21, 9  ;;  %v1417_v21 = vld [vmem:[%s7339_s25 + $0x94] sm:$0xf] }
  0x57   : > { %v900_v45 = vrot.slane %v898_v18, 5  ;;  %v1551_v47 = vrot.slane %v1411_v29, 5  ;;  %v1554_v48 = vrot.slane %v1412_v34, 5  ;;  %v895_v51 = vor.u32 %v894_v43, %v890_v37  ;;  %v1418_v29 = vld [vmem:[%s7339_s25 + $0x98] sm:$0x1] }
  0x58   : > { %6919 = vmatmul.mubr.msk.bf16.gmra.mxu1 %vm341_vm1, %v5993_v39  ;;  %6953 = vmatmul.mubr.msk.bf16.gmra.mxu0 %vm341_vm1, %v6042_v40  ;;  %v886_v50 = vrot.slane %v885_v41, 4  ;;  %v903_v52 = vshrl.u32 %v620_v38, 16  ;;  %v906_v53 = vshll.u32 %v620_v38, 16  ;;  %v912_v58 = vshll.u32 %v621_v44, 16  ;;  %v626_v34 = vld [vmem:[%s7339_s25 + $0x9c] sm:$0xf] }
  0x59   : > { %v1552_v56 = vsel %vm7398_vm6, %v6026_v46, %v1551_v47  ;;  %v1553_v57 = vrot.slane %v1551_v47, 4  ;;  %v916_v59 = vshrl.u32 %v621_v44, 16  ;;  %v896_v62 = vrot.slane %v895_v51, 4  ;;  %v627_v43 = vld [vmem:[%s7339_s25 + $0xa0] sm:$0xf] }
  0x5a   : > { %v891_v61 = vsel %vm7412_vm7, %v886_v50, %v890_v37  ;;  %v905_v63 = vrot.slane %v903_v52, 4  ;;  %v908_v0 = vrot.slane %v906_v53, 5  ;;  %v914_v3 = vrot.slane %v912_v58, 5  ;;  %v628_v44 = vld [vmem:[%s7339_s25 + $0xa4] sm:$0x1] }
  0x5b   : > { %v1555_v2 = vsel %vm7398_vm6, %v1553_v57, %v1554_v48  ;;  %v918_v4 = vrot.slane %v916_v59, 4  ;;  %v922_v5 = vshll.u32 %v622_v49, 16  ;;  %v901_v7 = vsel %vm7412_vm7, %v896_v62, %v900_v45  ;;  %v1419_v49 = vld [vmem:[%s7339_s25 + $0x9c] sm:$0xe] }
  0x5c   : > { %v6043_v8 = vcombine.low %v1552_v56, %v1555_v2  ;;  %v909_v9 = vor.u32 %v908_v0, %v905_v63  ;;  %v6027_v10 = vrot.slane %v1413_v54, 9  ;;  %v5994_v13 = vcombine.low %v891_v61, %v901_v7  ;;  %v1420_v54 = vld [vmem:[%s7339_s25 + $0xa0] sm:$0xf]  ;;  %v7620_v56 = vld [vmem:[%s8949_s1 + $0xc] sm:$0x3] }
  0x5d   : > { %v919_v14 = vor.u32 %v918_v4, %v914_v3  ;;  %v924_v15 = vrot.slane %v922_v5, 5  ;;  %v1558_v16 = vrot.slane %v1414_v60, 5  ;;  %v1561_v20 = vrot.slane %v1415_v1, 5  ;;  %v1421_v61 = vld [vmem:[%s7339_s25 + $0xa4] sm:$0x1]  ;;  %7181 = vmatprep.subr.msk.bf16.mxu0 %vm390_vm0, %v7620_v56 }
  0x5e   : > { %6956 = vmatprep.mubr.msk.bf16.mxu0 %vm341_vm1, %v6043_v8  ;;  %v910_v17 = vrot.slane %v909_v9, 4  ;;  %v927_v22 = vshrl.u32 %v623_v6, 16  ;;  %v930_v23 = vshll.u32 %v623_v6, 16  ;;  %6922 = vmatprep.mubr.msk.bf16.mxu1 %vm341_vm1, %v5994_v13  ;;  %v936_v19 = vshll.u32 %v624_v11, 16  ;;  %v629_v6 = vld [vmem:[%s7339_s25 + $0xa8] sm:$0xf] }
  0x5f   : > { %v920_v26 = vrot.slane %v919_v14, 4  ;;  %v1559_v27 = vsel %vm7398_vm6, %v6027_v10, %v1558_v16  ;;  %v1560_v28 = vrot.slane %v1558_v16, 4  ;;  %v940_v33 = vshrl.u32 %v624_v11, 16  ;;  %v630_v11 = vld [vmem:[%s7339_s25 + $0xac] sm:$0xf] }
  0x60   : > { %v915_v30 = vsel %vm7412_vm7, %v910_v17, %v914_v3  ;;  %v929_v31 = vrot.slane %v927_v22, 4  ;;  %v932_v32 = vrot.slane %v930_v23, 5  ;;  %v938_v37 = vrot.slane %v936_v19, 5 }
  0x61   : > { %v925_v35 = vsel %vm7412_vm7, %v920_v26, %v924_v15  ;;  %v1562_v36 = vsel %vm7398_vm6, %v1560_v28, %v1561_v20  ;;  %v946_v18 = vshll.u32 %v625_v12, 16  ;;  %v942_v41 = vrot.slane %v940_v33, 4  ;;  %v631_v12 = vld [vmem:[%s7339_s25 + $0xb0] sm:$0x1] }
  0x62   : > { %v5995_v38 = vcombine.low %v915_v30, %v925_v35  ;;  %v6044_v39 = vcombine.low %v1559_v27, %v1562_v36  ;;  %v933_v40 = vor.u32 %v932_v32, %v929_v31  ;;  %v6028_v46 = vrot.slane %v1416_v25, 9  ;;  %v1422_v25 = vld [vmem:[%s7339_s25 + $0xa8] sm:$0xe] }
  0x63   : > { %v948_v45 = vrot.slane %v946_v18, 5  ;;  %v1565_v47 = vrot.slane %v1417_v21, 5  ;;  %v1568_v48 = vrot.slane %v1418_v29, 5  ;;  %v943_v51 = vor.u32 %v942_v41, %v938_v37  ;;  %v1423_v21 = vld [vmem:[%s7339_s25 + $0xac] sm:$0xf] }
  0x64   : > { %6923 = vmatmul.mubr.msk.bf16.gmra.mxu1 %vm341_vm1, %v5995_v38  ;;  %6957 = vmatmul.mubr.msk.bf16.gmra.mxu0 %vm341_vm1, %v6044_v39  ;;  %v934_v50 = vrot.slane %v933_v40, 4  ;;  %v951_v52 = vshrl.u32 %v626_v34, 16  ;;  %v954_v53 = vshll.u32 %v626_v34, 16  ;;  %v960_v59 = vshll.u32 %v627_v43, 16  ;;  %v1424_v29 = vld [vmem:[%s7339_s25 + $0xb0] sm:$0x1] }
  0x65   : > { %v1566_v57 = vsel %vm7398_vm6, %v6028_v46, %v1565_v47  ;;  %v1567_v58 = vrot.slane %v1565_v47, 4  ;;  %v964_v60 = vshrl.u32 %v627_v43, 16  ;;  %v944_v63 = vrot.slane %v943_v51, 4  ;;  %v632_v34 = vld [vmem:[%s7339_s25 + $0xb4] sm:$0xf] }
  0x66   : > { %v939_v62 = vsel %vm7412_vm7, %v934_v50, %v938_v37  ;;  %v953_v0 = vrot.slane %v951_v52, 4  ;;  %v956_v1 = vrot.slane %v954_v53, 5  ;;  %v962_v3 = vrot.slane %v960_v59, 5  ;;  %v633_v43 = vld [vmem:[%s7339_s25 + $0xb8] sm:$0xf] }
  0x67   : > { %v1569_v2 = vsel %vm7398_vm6, %v1567_v58, %v1568_v48  ;;  %v966_v4 = vrot.slane %v964_v60, 4  ;;  %v970_v5 = vshll.u32 %v628_v44, 16  ;;  %v949_v7 = vsel %vm7412_vm7, %v944_v63, %v948_v45  ;;  %v634_v44 = vld [vmem:[%s7339_s25 + $0xbc] sm:$0x1] }
  0x68   : > { %v6045_v8 = vcombine.low %v1566_v57, %v1569_v2  ;;  %v957_v9 = vor.u32 %v956_v1, %v953_v0  ;;  %v6029_v10 = vrot.slane %v1419_v49, 9  ;;  %v5996_v13 = vcombine.low %v939_v62, %v949_v7  ;;  %v1425_v49 = vld [vmem:[%s7339_s25 + $0xb4] sm:$0xe]  ;;  %v1427_v1 = vld [vmem:[%s7339_s25 + $0xbc] sm:$0x1] }
  0x69   : > { %v967_v14 = vor.u32 %v966_v4, %v962_v3  ;;  %v972_v15 = vrot.slane %v970_v5, 5  ;;  %v1572_v16 = vrot.slane %v1420_v54, 5  ;;  %v1575_v20 = vrot.slane %v1421_v61, 5  ;;  %v1426_v54 = vld [vmem:[%s7339_s25 + $0xb8] sm:$0xf] }
  0x6a   : > { %6960 = vmatprep.mubr.msk.bf16.mxu0 %vm341_vm1, %v6045_v8  ;;  %v958_v17 = vrot.slane %v957_v9, 4  ;;  %v975_v22 = vshrl.u32 %v629_v6, 16  ;;  %v978_v23 = vshll.u32 %v629_v6, 16  ;;  %6926 = vmatprep.mubr.msk.bf16.mxu1 %vm341_vm1, %v5996_v13  ;;  %v984_v19 = vshll.u32 %v630_v11, 16  ;;  %v6130_v6 = vld [vmem:[%s7339_s25 + $0xc] sm:$0xf] }
  0x6b   : > { %v968_v26 = vrot.slane %v967_v14, 4  ;;  %v1573_v27 = vsel %vm7398_vm6, %v6029_v10, %v1572_v16  ;;  %v1574_v28 = vrot.slane %v1572_v16, 4  ;;  %v988_v33 = vshrl.u32 %v630_v11, 16  ;;  %v6131_v11 = vld [vmem:[%s7339_s25 + $0x10] sm:$0xf] }
  0x6c   : > { %v963_v30 = vsel %vm7412_vm7, %v958_v17, %v962_v3  ;;  %v977_v31 = vrot.slane %v975_v22, 4  ;;  %v980_v32 = vrot.slane %v978_v23, 5  ;;  %v986_v37 = vrot.slane %v984_v19, 5  ;;  %v6132_v16 = vld [vmem:[%s7339_s25 + $0x14] sm:$0x1] }
  0x6d   : > { %v973_v35 = vsel %vm7412_vm7, %v968_v26, %v972_v15  ;;  %v1576_v36 = vsel %vm7398_vm6, %v1574_v28, %v1575_v20  ;;  %v994_v18 = vshll.u32 %v631_v12, 16  ;;  %v990_v41 = vrot.slane %v988_v33, 4  ;;  %v6134_v19 = vld [vmem:[%s7339_s25 + $0x1c] sm:$0xf] }
  0x6e   : > { %v5997_v38 = vcombine.low %v963_v30, %v973_v35  ;;  %v6046_v39 = vcombine.low %v1573_v27, %v1576_v36  ;;  %v981_v40 = vor.u32 %v980_v32, %v977_v31  ;;  %v6030_v46 = vrot.slane %v1422_v25, 9  ;;  %v6133_v25 = vld [vmem:[%s7339_s25 + $0x18] sm:$0xf]  ;;  %v7225_v30 = vld [vmem:[%s7339_s25 + $0xc] sm:$0xff]  }
  0x6f   : > { %v996_v45 = vrot.slane %v994_v18, 5  ;;  %v1579_v47 = vrot.slane %v1423_v21, 5  ;;  %v1582_v48 = vrot.slane %v1424_v29, 5  ;;  %v991_v51 = vor.u32 %v990_v41, %v986_v37  ;;  %v6135_v18 = vld [vmem:[%s7339_s25 + $0x20] sm:$0x1] }
  0x70   : > { %6927 = vmatmul.mubr.msk.bf16.gmra.mxu1 %vm341_vm1, %v5997_v38  ;;  %6961 = vmatmul.mubr.msk.bf16.gmra.mxu0 %vm341_vm1, %v6046_v39  ;;  %v982_v50 = vrot.slane %v981_v40, 4  ;;  %v999_v52 = vshrl.u32 %v632_v34, 16  ;;  %v1002_v53 = vshll.u32 %v632_v34, 16  ;;  %v1008_v59 = vshll.u32 %v633_v43, 16 }
  0x71   : > { %v1580_v57 = vsel %vm7398_vm6, %v6030_v46, %v1579_v47  ;;  %v1581_v58 = vrot.slane %v1579_v47, 4  ;;  %v1012_v60 = vshrl.u32 %v633_v43, 16  ;;  %v992_v62 = vrot.slane %v991_v51, 4  ;;  %v6136_v43 = vld [vmem:[%s7339_s25 + $0x24] sm:$0xf] }
  0x72   : > { %v987_v61 = vsel %vm7412_vm7, %v982_v50, %v986_v37  ;;  %v1001_v63 = vrot.slane %v999_v52, 4  ;;  %v1004_v0 = vrot.slane %v1002_v53, 5  ;;  %v1010_v3 = vrot.slane %v1008_v59, 5  ;;  %v6138_v59 = vld [vmem:[%s7339_s25 + $0x2c] sm:$0x1] }
  0x73   : > { %v1583_v2 = vsel %vm7398_vm6, %v1581_v58, %v1582_v48  ;;  %v1014_v4 = vrot.slane %v1012_v60, 4  ;;  %v1018_v5 = vshll.u32 %v634_v44, 16  ;;  %v997_v7 = vsel %vm7412_vm7, %v992_v62, %v996_v45  ;;  %v6137_v44 = vld [vmem:[%s7339_s25 + $0x28] sm:$0xf] }
  0x74   : > { %v6047_v8 = vcombine.low %v1580_v57, %v1583_v2  ;;  %v1005_v9 = vor.u32 %v1004_v0, %v1001_v63  ;;  %v6031_v10 = vrot.slane %v1425_v49, 9  ;;  %v5998_v12 = vcombine.low %v987_v61, %v997_v7  ;;  %v7226_v0 = vld [vmem:[%s7339_s25 + $0x18] sm:$0xff]  }
  0x75   : > { %v1015_v13 = vor.u32 %v1014_v4, %v1010_v3  ;;  %v1020_v14 = vrot.slane %v1018_v5, 5  ;;  %v1586_v15 = vrot.slane %v1426_v54, 5  ;;  %v1589_v20 = vrot.slane %v1427_v1, 5  ;;  %v6139_v5 = vld [vmem:[%s7339_s25 + $0x30] sm:$0xf] }
  0x76   : > { %6964 = vmatprep.mubr.msk.bf16.mxu0 %vm341_vm1, %v6047_v8  ;;  %v1006_v17 = vrot.slane %v1005_v9, 4  ;;  %v2421_v22 = vshrl.u32 %v6130_v6, 16  ;;  %v2424_v23 = vshll.u32 %v6130_v6, 16  ;;  %6930 = vmatprep.mubr.msk.bf16.mxu1 %vm341_vm1, %v5998_v12  ;;  %v2430_v28 = vshll.u32 %v6131_v11, 16 }
  0x77   : > { %v1016_v21 = vrot.slane %v1015_v13, 4  ;;  %v1587_v26 = vsel %vm7398_vm6, %v6031_v10, %v1586_v15  ;;  %v1588_v27 = vrot.slane %v1586_v15, 4  ;;  %v2434_v33 = vshrl.u32 %v6131_v11, 16  ;;  %v7227_v11 = vld [vmem:[%s7339_s25 + $0x24] sm:$0xff]  }
  0x78   : > { %v1011_v29 = vsel %vm7412_vm7, %v1006_v17, %v1010_v3  ;;  %v2423_v31 = vrot.slane %v2421_v22, 4  ;;  %v2426_v32 = vrot.slane %v2424_v23, 5  ;;  %v2432_v36 = vrot.slane %v2430_v28, 5 }
  0x79   : > { %v1021_v34 = vsel %vm7412_vm7, %v1016_v21, %v1020_v14  ;;  %v1590_v35 = vsel %vm7398_vm6, %v1588_v27, %v1589_v20  ;;  %v2440_v37 = vshll.u32 %v6132_v16, 16  ;;  %v2436_v41 = vrot.slane %v2434_v33, 4  ;;  %v6140_v14 = vld [vmem:[%s7339_s25 + $0x34] sm:$0xf] }
  0x7a   : > { %v5999_v38 = vcombine.low %v1011_v29, %v1021_v34  ;;  %v6048_v39 = vcombine.low %v1587_v26, %v1590_v35  ;;  %v2427_v40 = vor.u32 %v2426_v32, %v2423_v31  ;;  %v2445_v46 = vshrl.u32 %v6133_v25, 16  ;;  %v6143_v35 = vld [vmem:[%s7339_s25 + $0x40] sm:$0xf] }
  0x7b   : > { %v2442_v45 = vrot.slane %v2440_v37, 5  ;;  %v2448_v47 = vshll.u32 %v6133_v25, 16  ;;  %v2454_v48 = vshll.u32 %v6134_v19, 16  ;;  %v2437_v50 = vor.u32 %v2436_v41, %v2432_v36  ;;  %v6141_v25 = vld [vmem:[%s7339_s25 + $0x38] sm:$0x1] }
  0x7c   : > { %6931 = vmatmul.mubr.msk.bf16.gmra.mxu1 %vm341_vm1, %v5999_v38  ;;  %6965 = vmatmul.mubr.msk.bf16.gmra.mxu0 %vm341_vm1, %v6048_v39  ;;  %v2428_v49 = vrot.slane %v2427_v40, 4  ;;  %v2458_v51 = vshrl.u32 %v6134_v19, 16  ;;  %v2464_v52 = vshll.u32 %v6135_v18, 16  ;;  %v2447_v53 = vrot.slane %v2445_v46, 4  ;;  %v6144_v39 = vld [vmem:[%s7339_s25 + $0x44] sm:$0x1] }
  0x7d   : > { %6970 = vmatprep.mubr.msk.bf16.mxu1 %vm341_vm1, %v7225_v30  ;;  %v2450_v54 = vrot.slane %v2448_v47, 5  ;;  %v2456_v57 = vrot.slane %v2454_v48, 5  ;;  %v3892_v58 = vsel %vm390_vm0, %v7620_v56, 0  ;;  %v2438_v61 = vrot.slane %v2437_v50, 4  ;;  %v6142_v30 = vld [vmem:[%s7339_s25 + $0x3c] sm:$0xf] }
  0x7e   : > { %v2433_v60 = vsel %vm7412_vm7, %v2428_v49, %v2432_v36  ;;  %v2460_v62 = vrot.slane %v2458_v51, 4  ;;  %v2466_v63 = vrot.slane %v2464_v52, 5  ;;  %v2469_v2 = vshrl.u32 %v6136_v43, 16  ;;  %v6145_v49 = vld [vmem:[%s7339_s25 + $0x48] sm:$0xf]  ;;  %v7229_v52 = vld [vmem:[%s7339_s25 + $0x3c] sm:$0xff]  }
  0x7f   : > { %v2451_v1 = vor.u32 %v2450_v54, %v2447_v53  ;;  %v2472_v3 = vshll.u32 %v6136_v43, 16  ;;  %v2478_v4 = vshll.u32 %v6137_v44, 16  ;;  %v2443_v6 = vsel %vm7412_vm7, %v2438_v61, %v2442_v45  ;;  %v7228_v45 = vld [vmem:[%s7339_s25 + $0x30] sm:$0xff]  }
  0x80   : > { %v2461_v7 = vor.u32 %v2460_v62, %v2456_v57  ;;  %v2482_v56 = vshrl.u32 %v6137_v44, 16  ;;  %v2488_v8 = vshll.u32 %v6138_v59, 16  ;;  %v6179_v9 = vcombine.low %v2433_v60, %v2443_v6 }
  0x81   : > { %v2452_v10 = vrot.slane %v2451_v1, 4  ;;  %v2471_v12 = vrot.slane %v2469_v2, 4  ;;  %v2474_v13 = vrot.slane %v2472_v3, 5  ;;  %v2480_v16 = vrot.slane %v2478_v4, 5 }
  0x82   : > { %v2462_v15 = vrot.slane %v2461_v7, 4  ;;  %v2484_v17 = vrot.slane %v2482_v56, 4  ;;  %v2490_v20 = vrot.slane %v2488_v8, 5  ;;  %7004 = vmatprep.mubr.msk.bf16.mxu0 %vm341_vm1, %v6179_v9  ;;  %v2493_v21 = vshrl.u32 %v6139_v5, 16  ;;  %v6148_v7 = vld [vmem:[%s7339_s25 + $0x54] sm:$0xf] }
  0x83   : > { %v2457_v22 = vsel %vm7412_vm7, %v2452_v10, %v2456_v57  ;;  %v2475_v23 = vor.u32 %v2474_v13, %v2471_v12  ;;  %v2496_v26 = vshll.u32 %v6139_v5, 16  ;;  %v2502_v19 = vshll.u32 %v6140_v14, 16  ;;  %v6146_v57 = vld [vmem:[%s7339_s25 + $0x4c] sm:$0xf] }
  0x84   : > { %6971 = vmatmul.mubr.msk.bf16.vlgmr.msra.gmra.mxu1 %vm341_vm1, %v7226_v0  ;;  %v2467_v27 = vsel %vm7412_vm7, %v2462_v15, %v2466_v63  ;;  %v2485_v28 = vor.u32 %v2484_v17, %v2480_v16  ;;  %v2506_v29 = vshrl.u32 %v6140_v14, 16  ;;  %v2495_v33 = vrot.slane %v2493_v21, 4  ;;  %v6147_v0 = vld [vmem:[%s7339_s25 + $0x50] sm:$0x1]  ;;  %v7230_v13 = vld [vmem:[%s7339_s25 + $0x48] sm:$0xff]  }
  0x85   : > { %v6180_v31 = vcombine.low %v2457_v22, %v2467_v27  ;;  %7037 = vmatpush3.bf16.msra.mxu1 %v7387_v24  ;;  %6974 = vmatprep.mubr.msk.bf16.mxu1 %vm341_vm1, %v7227_v11  ;;  %v2476_v32 = vrot.slane %v2475_v23, 4  ;;  %v2498_v34 = vrot.slane %v2496_v26, 5  ;;  %v2504_v37 = vrot.slane %v2502_v19, 5  ;;  %v6149_v11 = vld [vmem:[%s7339_s25 + $0x58] sm:$0xf] }
  0x86   : > { %v2486_v36 = vrot.slane %v2485_v28, 4  ;;  %v2508_v18 = vrot.slane %v2506_v29, 4  ;;  %v2512_v38 = vshll.u32 %v6141_v25, 16  ;;  %v2517_v41 = vshrl.u32 %v6142_v30, 16  ;;  %v7231_v22 = vld [vmem:[%s7339_s25 + $0x54] sm:$0xff]  }
  0x87   : > { %7005 = vmatmul.mubr.msk.bf16.vlgmr.msra.gmra.mxu0 %vm341_vm1, %v6180_v31  ;;  %v2481_v40 = vsel %vm7412_vm7, %v2476_v32, %v2480_v16  ;;  %v2499_v24 = vor.u32 %v2498_v34, %v2495_v33  ;;  %v2520_v43 = vshll.u32 %v6142_v30, 16  ;;  %v2526_v48 = vshll.u32 %v6143_v35, 16  ;;  %v6150_v23 = vld [vmem:[%s7339_s25 + $0x5c] sm:$0x1]  ;;  %v6151_v29 = vld [vmem:[%s7339_s25 + $0x60] sm:$0xf] }
  0x88   : > { %7071 = vmatpush3.bf16.msra.mxu0 %v3892_v58  ;;  %v2491_v44 = vsel %vm7412_vm7, %v2486_v36, %v2490_v20  ;;  %v2509_v46 = vor.u32 %v2508_v18, %v2504_v37  ;;  %v2514_v47 = vrot.slane %v2512_v38, 5  ;;  %v2519_v53 = vrot.slane %v2517_v41, 4  ;;  %v6152_v34 = vld [vmem:[%s7339_s25 + $0x64] sm:$0xf]  ;;  %v6153_v41 = vld [vmem:[%s7339_s25 + $0x68] sm:$0x1] }
  0x89   : > { %v6181_v50 = vcombine.low %v2481_v40, %v2491_v44  ;;  %v2500_v51 = vrot.slane %v2499_v24, 4  ;;  %v2522_v54 = vrot.slane %v2520_v43, 5  ;;  %v2528_v60 = vrot.slane %v2526_v48, 5  ;;  %v6154_v43 = vld [vmem:[%s7339_s25 + $0x6c] sm:$0xf] }
  0x8a   : > { %v2510_v59 = vrot.slane %v2509_v46, 4  ;;  %v2530_v61 = vshrl.u32 %v6143_v35, 16  ;;  %v2536_v58 = vshll.u32 %v6144_v39, 16  ;;  %v2541_v1 = vshrl.u32 %v6145_v49, 16  ;;  %v6155_v48 = vld [vmem:[%s7339_s25 + $0x70] sm:$0xf] }
  0x8b   : > { %7008 = vmatprep.mubr.msk.bf16.mxu0 %vm341_vm1, %v6181_v50  ;;  %v2505_v62 = vsel %vm7412_vm7, %v2500_v51, %v2504_v37  ;;  %v2523_v63 = vor.u32 %v2522_v54, %v2519_v53  ;;  %v2544_v2 = vshll.u32 %v6145_v49, 16  ;;  %v2550_v6 = vshll.u32 %v6146_v57, 16 }
  0x8c   : > { %6975 = vmatmul.mubr.msk.bf16.gmra.mxu1 %vm341_vm1, %v7228_v45  ;;  %v2515_v3 = vsel %vm7412_vm7, %v2510_v59, %v2514_v47  ;;  %v2532_v4 = vrot.slane %v2530_v61, 4  ;;  %v2538_v5 = vrot.slane %v2536_v58, 5  ;;  %v2543_v9 = vrot.slane %v2541_v1, 4 }
  0x8d   : > { %v6182_v56 = vcombine.low %v2505_v62, %v2515_v3  ;;  %6978 = vmatprep.mubr.msk.bf16.mxu1 %vm341_vm1, %v7229_v52  ;;  %v2524_v8 = vrot.slane %v2523_v63, 4  ;;  %v2546_v10 = vrot.slane %v2544_v2, 5  ;;  %v2552_v14 = vrot.slane %v2550_v6, 5  ;;  %v7232_v63 = vld [vmem:[%s7339_s25 + $0x60] sm:$0xff]   ;;  %v6156_v3 = vld [vmem:[%s7339_s25 + $0x74] sm:$0x1] }
  0x8e   : > { %v2533_v12 = vor.u32 %v2532_v4, %v2528_v60  ;;  %v2554_v15 = vshrl.u32 %v6146_v57, 16  ;;  %v2560_v16 = vshll.u32 %v6147_v0, 16  ;;  %v2565_v25 = vshrl.u32 %v6148_v7, 16  ;;  %v7233_v6 = vld [vmem:[%s7339_s25 + $0x6c] sm:$0xff]  }
  0x8f   : > { %7009 = vmatmul.mubr.msk.bf16.gmra.mxu0 %vm341_vm1, %v6182_v56  ;;  %v2529_v17 = vsel %vm7412_vm7, %v2524_v8, %v2528_v60  ;;  %v2547_v20 = vor.u32 %v2546_v10, %v2543_v9  ;;  %v2568_v21 = vshll.u32 %v6148_v7, 16  ;;  %v2574_v19 = vshll.u32 %v6149_v11, 16  ;;  %v6157_v9 = vld [vmem:[%s7339_s25 + $0x78] sm:$0xf] }
  0x90   : > { %v2534_v26 = vrot.slane %v2533_v12, 4  ;;  %v2556_v27 = vrot.slane %v2554_v15, 4  ;;  %v2562_v28 = vrot.slane %v2560_v16, 5  ;;  %v2567_v31 = vrot.slane %v2565_v25, 4 }
  0x91   : > { %v2548_v30 = vrot.slane %v2547_v20, 4  ;;  %v2570_v32 = vrot.slane %v2568_v21, 5  ;;  %v2578_v33 = vshrl.u32 %v6149_v11, 16  ;;  %v2576_v37 = vrot.slane %v2574_v19, 5 }
  0x92   : > { %v2539_v35 = vsel %vm7412_vm7, %v2534_v26, %v2538_v5  ;;  %v2557_v36 = vor.u32 %v2556_v27, %v2552_v14  ;;  %v2584_v18 = vshll.u32 %v6150_v23, 16  ;;  %v2589_v46 = vshrl.u32 %v6151_v29, 16 }
  0x93   : > { %v6183_v38 = vcombine.low %v2529_v17, %v2539_v35  ;;  %v2553_v39 = vsel %vm7412_vm7, %v2548_v30, %v2552_v14  ;;  %v2571_v40 = vor.u32 %v2570_v32, %v2567_v31  ;;  %v2580_v24 = vrot.slane %v2578_v33, 4  ;;  %v6158_v14 = vld [vmem:[%s7339_s25 + $0x7c] sm:$0xf]  ;;  %v6160_v30 = vld [vmem:[%s7339_s25 + $0x84] sm:$0xf] }
  0x94   : > { %6979 = vmatmul.mubr.msk.bf16.gmra.mxu1 %vm341_vm1, %v7230_v13  ;;  %v2558_v44 = vrot.slane %v2557_v36, 4  ;;  %v2586_v45 = vrot.slane %v2584_v18, 5  ;;  %v2592_v47 = vshll.u32 %v6151_v29, 16  ;;  %v2598_v51 = vshll.u32 %v6152_v34, 16  ;;  %v7769_v31 = vld [vmem:[%s8949_s1 + $0xe] sm:$0x3] }
  0x95   : > { %7012 = vmatprep.mubr.msk.bf16.mxu0 %vm341_vm1, %v6183_v38  ;;  %6982 = vmatprep.mubr.msk.bf16.mxu1 %vm341_vm1, %v7231_v22  ;;  %v2572_v49 = vrot.slane %v2571_v40, 4  ;;  %v2581_v50 = vor.u32 %v2580_v24, %v2576_v37  ;;  %v2602_v52 = vshrl.u32 %v6152_v34, 16  ;;  %v2591_v54 = vrot.slane %v2589_v46, 4  ;;  %v6159_v22 = vld [vmem:[%s7339_s25 + $0x80] sm:$0x1]  ;;  %v7235_v46 = vld [vmem:[%s7339_s25 + $0x84] sm:$0xff]  }
  0x96   : > { %v2563_v53 = vsel %vm7412_vm7, %v2558_v44, %v2562_v28  ;;  %v2594_v57 = vrot.slane %v2592_v47, 5  ;;  %v2608_v59 = vshll.u32 %v6153_v41, 16  ;;  %v2600_v62 = vrot.slane %v2598_v51, 5  ;;  %v6161_v36 = vld [vmem:[%s7339_s25 + $0x88] sm:$0xf]  ;;  %7182 = vmatprep.subr.msk.bf16.mxu1 %vm390_vm0, %v7769_v31 }
  0x97   : > { %v6184_v60 = vcombine.low %v2553_v39, %v2563_v53  ;;  %v2577_v61 = vsel %vm7412_vm7, %v2572_v49, %v2576_v37  ;;  %v2582_v58 = vrot.slane %v2581_v50, 4  ;;  %v2604_v1 = vrot.slane %v2602_v52, 4  ;;  %v7234_v39 = vld [vmem:[%s7339_s25 + $0x78] sm:$0xff]   ;;  %v6162_v24 = vld [vmem:[%s7339_s25 + $0x8c] sm:$0x1] }
  0x98   : > { %v2595_v0 = vor.u32 %v2594_v57, %v2591_v54  ;;  %v2610_v2 = vrot.slane %v2608_v59, 5  ;;  %v2613_v4 = vshrl.u32 %v6154_v43, 16  ;;  %v2616_v7 = vshll.u32 %v6154_v43, 16  ;;  %v6163_v41 = vld [vmem:[%s7339_s25 + $0x90] sm:$0xf] }
  0x99   : > { %7013 = vmatmul.mubr.msk.bf16.gmra.mxu0 %vm341_vm1, %v6184_v60  ;;  %v2587_v5 = vsel %vm7412_vm7, %v2582_v58, %v2586_v45  ;;  %v2622_v56 = vshll.u32 %v6155_v48, 16  ;;  %v2626_v8 = vshrl.u32 %v6155_v48, 16  ;;  %v2605_v12 = vor.u32 %v2604_v1, %v2600_v62  ;;  %v7788_v52 = vld [vmem:[%s8949_s1 + $0x10] sm:$0x3]  ;;  %v6164_v60 = vld [vmem:[%s7339_s25 + $0x94] sm:$0xf] }
  0x9a   : > { %v6185_v10 = vcombine.low %v2577_v61, %v2587_v5  ;;  %v2596_v11 = vrot.slane %v2595_v0, 4  ;;  %v2615_v13 = vrot.slane %v2613_v4, 4  ;;  %v2618_v15 = vrot.slane %v2616_v7, 5  ;;  %7183 = vmatprep.subr.msk.bf16.mxu0 %vm390_vm0, %v7788_v52  ;;  %v6165_v0 = vld [vmem:[%s7339_s25 + $0x98] sm:$0x1] }
  0x9b   : > { %v2624_v16 = vrot.slane %v2622_v56, 5  ;;  %v2628_v17 = vrot.slane %v2626_v8, 4  ;;  %v2632_v20 = vshll.u32 %v6156_v3, 16  ;;  %v2606_v25 = vrot.slane %v2605_v12, 4  ;;  %v6166_v1 = vld [vmem:[%s7339_s25 + $0x9c] sm:$0xf] }
  0x9c   : > { %7016 = vmatprep.mubr.msk.bf16.mxu0 %vm341_vm1, %v6185_v10  ;;  %6983 = vmatmul.mubr.msk.bf16.gmra.mxu1 %vm341_vm1, %v7232_v63  ;;  %v2601_v23 = vsel %vm7412_vm7, %v2596_v11, %v2600_v62  ;;  %v2637_v21 = vshrl.u32 %v6157_v9, 16  ;;  %v2640_v26 = vshll.u32 %v6157_v9, 16  ;;  %v2619_v27 = vor.u32 %v2618_v15, %v2615_v13 }
  0x9d   : > { %6986 = vmatprep.mubr.msk.bf16.mxu1 %vm341_vm1, %v7233_v6  ;;  %v2629_v28 = vor.u32 %v2628_v17, %v2624_v16  ;;  %v2634_v19 = vrot.slane %v2632_v20, 5  ;;  %v2646_v29 = vshll.u32 %v6158_v14, 16  ;;  %v2611_v32 = vsel %vm7412_vm7, %v2606_v25, %v2610_v2  ;;  %v7237_v20 = vld [vmem:[%s7339_s25 + $0x9c] sm:$0xff]  }
  0x9e   : > { %v2639_v33 = vrot.slane %v2637_v21, 4  ;;  %v2642_v34 = vrot.slane %v2640_v26, 5  ;;  %v2650_v35 = vshrl.u32 %v6158_v14, 16  ;;  %v6186_v37 = vcombine.low %v2601_v23, %v2611_v32 }
  0x9f   : > { %v2620_v18 = vrot.slane %v2619_v27, 4  ;;  %v2630_v38 = vrot.slane %v2629_v28, 4  ;;  %v2648_v40 = vrot.slane %v2646_v29, 5  ;;  %v2656_v45 = vshll.u32 %v6159_v22, 16  ;;  %v6167_v22 = vld [vmem:[%s7339_s25 + $0xa0] sm:$0xf] }
  0xa0   : > { %v2643_v43 = vor.u32 %v2642_v34, %v2639_v33  ;;  %v2652_v44 = vrot.slane %v2650_v35, 4  ;;  %v2661_v47 = vshrl.u32 %v6160_v30, 16  ;;  %v2664_v50 = vshll.u32 %v6160_v30, 16  ;;  %v6168_v29 = vld [vmem:[%s7339_s25 + $0xa4] sm:$0x1] }
  0xa1   : > { %7017 = vmatmul.mubr.msk.bf16.gmra.mxu0 %vm341_vm1, %v6186_v37  ;;  %v2625_v48 = vsel %vm7412_vm7, %v2620_v18, %v2624_v16  ;;  %v2635_v49 = vsel %vm7412_vm7, %v2630_v38, %v2634_v19  ;;  %v2670_v51 = vshll.u32 %v6161_v36, 16  ;;  %v2658_v59 = vrot.slane %v2656_v45, 5  ;;  %v7236_v16 = vld [vmem:[%s7339_s25 + $0x90] sm:$0xff]  }
  0xa2   : > { %v6187_v53 = vcombine.low %v2625_v48, %v2635_v49  ;;  %v2644_v54 = vrot.slane %v2643_v43, 4  ;;  %v2653_v57 = vor.u32 %v2652_v44, %v2648_v40  ;;  %v2663_v61 = vrot.slane %v2661_v47, 4  ;;  %v6171_v48 = vld [vmem:[%s7339_s25 + $0xb0] sm:$0x1] }
  0xa3   : > { %v2666_v58 = vrot.slane %v2664_v50, 5  ;;  %v2672_v62 = vrot.slane %v2670_v51, 5  ;;  %v2674_v63 = vshrl.u32 %v6161_v36, 16  ;;  %v2680_v4 = vshll.u32 %v6162_v24, 16  ;;  %v6169_v36 = vld [vmem:[%s7339_s25 + $0xa8] sm:$0xf] }
  0xa4   : > { %7020 = vmatprep.mubr.msk.bf16.mxu0 %vm341_vm1, %v6187_v53  ;;  %6987 = vmatmul.mubr.msk.bf16.gmra.mxu1 %vm341_vm1, %v7234_v39  ;;  %v2649_v2 = vsel %vm7412_vm7, %v2644_v54, %v2648_v40  ;;  %v2654_v3 = vrot.slane %v2653_v57, 4  ;;  %v2685_v5 = vshrl.u32 %v6163_v41, 16  ;;  %v2688_v56 = vshll.u32 %v6163_v41, 16  ;;  %v6170_v40 = vld [vmem:[%s7339_s25 + $0xac] sm:$0xf] }
  0xa5   : > { %6990 = vmatprep.mubr.msk.bf16.mxu1 %vm341_vm1, %v7235_v46  ;;  %v2667_v6 = vor.u32 %v2666_v58, %v2663_v61  ;;  %v2676_v7 = vrot.slane %v2674_v63, 4  ;;  %v2694_v8 = vshll.u32 %v6164_v60, 16  ;;  %v2682_v10 = vrot.slane %v2680_v4, 5  ;;  %v7238_v53 = vld [vmem:[%s7339_s25 + $0xa8] sm:$0xff]   ;;  %v6173_v63 = vld [vmem:[%s7339_s25 + $0xb8] sm:$0xf] }
  0xa6   : > { %v2659_v9 = vsel %vm7412_vm7, %v2654_v3, %v2658_v59  ;;  %v2687_v11 = vrot.slane %v2685_v5, 4  ;;  %v2698_v12 = vshrl.u32 %v6164_v60, 16  ;;  %v2690_v17 = vrot.slane %v2688_v56, 5  ;;  %v6172_v59 = vld [vmem:[%s7339_s25 + $0xb4] sm:$0xf] }
  0xa7   : > { %v6188_v13 = vcombine.low %v2649_v2, %v2659_v9  ;;  %v2668_v14 = vrot.slane %v2667_v6, 4  ;;  %v2677_v15 = vor.u32 %v2676_v7, %v2672_v62  ;;  %v2696_v23 = vrot.slane %v2694_v8, 5  ;;  %v7239_v6 = vld [vmem:[%s7339_s25 + $0xb4] sm:$0xff]   ;;  %v6174_v7 = vld [vmem:[%s7339_s25 + $0xbc] sm:$0x1] }
  0xa8   : > { %v2700_v25 = vrot.slane %v2698_v12, 4  ;;  %v2704_v21 = vshll.u32 %v6165_v0, 16  ;;  %v2709_v26 = vshrl.u32 %v6166_v1, 16  ;;  %v2691_v19 = vor.u32 %v2690_v17, %v2687_v11 }
  0xa9   : > { %7021 = vmatmul.mubr.msk.bf16.gmra.mxu0 %vm341_vm1, %v6188_v13  ;;  %v2673_v27 = vsel %vm7412_vm7, %v2668_v14, %v2672_v62  ;;  %v2678_v28 = vrot.slane %v2677_v15, 4  ;;  %v2712_v30 = vshll.u32 %v6166_v1, 16  ;;  %v2718_v35 = vshll.u32 %v6167_v22, 16  ;;  %v6175_v13 = vld [vmem:[%s7339_s25 + $0xc0] sm:$0xf] }
  0xaa   : > { %v2701_v32 = vor.u32 %v2700_v25, %v2696_v23  ;;  %v2706_v33 = vrot.slane %v2704_v21, 5  ;;  %v2711_v34 = vrot.slane %v2709_v26, 4  ;;  %v2692_v18 = vrot.slane %v2691_v19, 4  ;;  %v6177_v26 = vld [vmem:[%s7339_s25 + $0xc8] sm:$0x1] }
  0xab   : > { %v2683_v37 = vsel %vm7412_vm7, %v2678_v28, %v2682_v10  ;;  %v2714_v38 = vrot.slane %v2712_v30, 5  ;;  %v2722_v39 = vshrl.u32 %v6167_v22, 16  ;;  %v2720_v43 = vrot.slane %v2718_v35, 5  ;;  %v6211_v30 = vld [vmem:[%s7339_s25 + $0xc] sm:$0xe] }
  0xac   : > { %v6189_v24 = vcombine.low %v2673_v27, %v2683_v37  ;;  %6991 = vmatmul.mubr.msk.bf16.gmra.mxu1 %vm341_vm1, %v7236_v16  ;;  %v2702_v41 = vrot.slane %v2701_v32, 4  ;;  %v2728_v44 = vshll.u32 %v6168_v29, 16  ;;  %v2697_v45 = vsel %vm7412_vm7, %v2692_v18, %v2696_v23  ;;  %v6212_v32 = vld [vmem:[%s7339_s25 + $0x10] sm:$0xf]  ;;  %v6213_v37 = vld [vmem:[%s7339_s25 + $0x14] sm:$0x1] }
  0xad   : > { %6994 = vmatprep.mubr.msk.bf16.mxu1 %vm341_vm1, %v7237_v20  ;;  %v2715_v46 = vor.u32 %v2714_v38, %v2711_v34  ;;  %v2724_v47 = vrot.slane %v2722_v39, 4  ;;  %v2733_v49 = vshrl.u32 %v6169_v36, 16  ;;  %v2736_v54 = vshll.u32 %v6169_v36, 16  ;;  %v6176_v20 = vld [vmem:[%s7339_s25 + $0xc4] sm:$0xf] }
  0xae   : > { %7024 = vmatprep.mubr.msk.bf16.mxu0 %vm341_vm1, %v6189_v24  ;;  %v2707_v50 = vsel %vm7412_vm7, %v2702_v41, %v2706_v33  ;;  %v2730_v51 = vrot.slane %v2728_v44, 5  ;;  %v2742_v57 = vshll.u32 %v6170_v40, 16  ;;  %v2746_v2 = vshrl.u32 %v6170_v40, 16  ;;  %v6214_v24 = vld [vmem:[%s7339_s25 + $0x18] sm:$0xe] }
  0xaf   : > { %v6190_v60 = vcombine.low %v2697_v45, %v2707_v50  ;;  %v2716_v61 = vrot.slane %v2715_v46, 4  ;;  %v2725_v58 = vor.u32 %v2724_v47, %v2720_v43  ;;  %v2735_v62 = vrot.slane %v2733_v49, 4  ;;  %v6215_v47 = vld [vmem:[%s7339_s25 + $0x1c] sm:$0xf] }
  0xb0   : > { %v2738_v0 = vrot.slane %v2736_v54, 5  ;;  %v2744_v1 = vrot.slane %v2742_v57, 5  ;;  %v2752_v3 = vshll.u32 %v6171_v48, 16  ;;  %v2757_v56 = vshrl.u32 %v6172_v59, 16  ;;  %v6216_v48 = vld [vmem:[%s7339_s25 + $0x20] sm:$0x1] }
  0xb1   : > { %7025 = vmatmul.mubr.msk.bf16.gmra.mxu0 %vm341_vm1, %v6190_v60  ;;  %v2721_v4 = vsel %vm7412_vm7, %v2716_v61, %v2720_v43  ;;  %v2726_v5 = vrot.slane %v2725_v58, 4  ;;  %v2760_v8 = vshll.u32 %v6172_v59, 16  ;;  %v2748_v10 = vrot.slane %v2746_v2, 4  ;;  %v7240_v43 = vld [vmem:[%s7339_s25 + $0xc0] sm:$0xff]   ;;  %v6218_v58 = vld [vmem:[%s7339_s25 + $0x28] sm:$0xf] }
  0xb2   : > { %v2739_v9 = vor.u32 %v2738_v0, %v2735_v62  ;;  %v2754_v11 = vrot.slane %v2752_v3, 5  ;;  %v2766_v12 = vshll.u32 %v6173_v63, 16  ;;  %v2759_v15 = vrot.slane %v2757_v56, 4  ;;  %v6217_v54 = vld [vmem:[%s7339_s25 + $0x24] sm:$0xe] }
  0xb3   : > { %v2731_v14 = vsel %vm7412_vm7, %v2726_v5, %v2730_v51  ;;  %v2762_v16 = vrot.slane %v2760_v8, 5  ;;  %v2770_v17 = vshrl.u32 %v6173_v63, 16  ;;  %v2749_v25 = vor.u32 %v2748_v10, %v2744_v1  ;;  %v6219_v2 = vld [vmem:[%s7339_s25 + $0x2c] sm:$0x1]  ;;  %v6220_v3 = vld [vmem:[%s7339_s25 + $0x30] sm:$0xe] }
  0xb4   : > { %v6191_v22 = vcombine.low %v2721_v4, %v2731_v14  ;;  %6995 = vmatmul.mubr.msk.bf16.gmra.mxu1 %vm341_vm1, %v7238_v53  ;;  %v2740_v23 = vrot.slane %v2739_v9, 4  ;;  %v2768_v21 = vrot.slane %v2766_v12, 5  ;;  %v2776_v19 = vshll.u32 %v6174_v7, 16  ;;  %v6222_v12 = vld [vmem:[%s7339_s25 + $0x38] sm:$0x1] }
  0xb5   : > { %6998 = vmatprep.mubr.msk.bf16.mxu1 %vm341_vm1, %v7239_v6  ;;  %v2763_v27 = vor.u32 %v2762_v16, %v2759_v15  ;;  %v2772_v28 = vrot.slane %v2770_v17, 4  ;;  %v2781_v29 = vshrl.u32 %v6175_v13, 16  ;;  %v2750_v34 = vrot.slane %v2749_v25, 4  ;;  %v7241_v16 = vld [vmem:[%s7339_s25 + $0x18] sm:$0xff]  }
  0xb6   : > { %7028 = vmatprep.mubr.msk.bf16.mxu0 %vm341_vm1, %v6191_v22  ;;  %v2745_v33 = vsel %vm7412_vm7, %v2740_v23, %v2744_v1  ;;  %v2784_v35 = vshll.u32 %v6175_v13, 16  ;;  %v2790_v36 = vshll.u32 %v6176_v20, 16  ;;  %v2778_v39 = vrot.slane %v2776_v19, 5  ;;  %v6223_v13 = vld [vmem:[%s7339_s25 + $0x3c] sm:$0xe] }
  0xb7   : > { %v2764_v18 = vrot.slane %v2763_v27, 4  ;;  %v2773_v38 = vor.u32 %v2772_v28, %v2768_v21  ;;  %v2783_v40 = vrot.slane %v2781_v29, 4  ;;  %v2755_v41 = vsel %vm7412_vm7, %v2750_v34, %v2754_v11  ;;  %v6221_v11 = vld [vmem:[%s7339_s25 + $0x34] sm:$0xf]  ;;  %v6224_v22 = vld [vmem:[%s7339_s25 + $0x40] sm:$0xf] }
  0xb8   : > { %v2786_v44 = vrot.slane %v2784_v35, 5  ;;  %v2792_v45 = vrot.slane %v2790_v36, 5  ;;  %v2794_v46 = vshrl.u32 %v6176_v20, 16  ;;  %v6192_v49 = vcombine.low %v2745_v33, %v2755_v41  ;;  %v6225_v23 = vld [vmem:[%s7339_s25 + $0x44] sm:$0x1] }
  0xb9   : > { %v2769_v50 = vsel %vm7412_vm7, %v2764_v18, %v2768_v21  ;;  %v2774_v51 = vrot.slane %v2773_v38, 4  ;;  %v2800_v53 = vshll.u32 %v6177_v26, 16  ;;  %v6259_v60 = vrot.slane %v6211_v30, 9  ;;  %v6227_v28 = vld [vmem:[%s7339_s25 + $0x4c] sm:$0xf] }
  0xba   : > { %v2787_v57 = vor.u32 %v2786_v44, %v2783_v40  ;;  %v2796_v59 = vrot.slane %v2794_v46, 4  ;;  %v3260_v61 = vrot.slane %v6212_v32, 5  ;;  %7029 = vmatmul.mubr.msk.bf16.gmra.mxu0 %vm341_vm1, %v6192_v49  ;;  %v3263_v0 = vrot.slane %v6213_v37, 5  ;;  %v6228_v32 = vld [vmem:[%s7339_s25 + $0x50] sm:$0x1] }
  0xbb   : > { %v2779_v62 = vsel %vm7412_vm7, %v2774_v51, %v2778_v39  ;;  %v2802_v63 = vrot.slane %v2800_v53, 5  ;;  %v6260_v1 = vrot.slane %v6214_v24, 9  ;;  %v3267_v8 = vrot.slane %v6215_v47, 5  ;;  %v6229_v37 = vld [vmem:[%s7339_s25 + $0x54] sm:$0xe] }
  0xbc   : > { %v6193_v4 = vcombine.low %v2769_v50, %v2779_v62  ;;  %6999 = vmatmul.mubr.msk.bf16.gmra.mxu1 %vm341_vm1, %v7240_v43  ;;  %v2788_v5 = vrot.slane %v2787_v57, 4  ;;  %v2797_v6 = vor.u32 %v2796_v59, %v2792_v45  ;;  %v3261_v7 = vsel %vm7398_vm6, %v6259_v60, %v3260_v61  ;;  %v6230_v18 = vld [vmem:[%s7339_s25 + $0x58] sm:$0xf]  ;;  %v6231_v41 = vld [vmem:[%s7339_s25 + $0x5c] sm:$0x1]  ;;  %v7242_v59 = vld [vmem:[%s7339_s25 + $0x24] sm:$0xff]  }
  0xbd   : > { %v3262_v56 = vrot.slane %v3260_v61, 4  ;;  %v3270_v9 = vrot.slane %v6216_v48, 5  ;;  %v4682_v10 = vsel %vm390_vm0, %v7769_v31, 0  ;;  %v7871_v17 = vsel %vm390_vm0, %v7788_v52, 0  ;;  %v6226_v31 = vld [vmem:[%s7339_s25 + $0x48] sm:$0xe] }
  0xbe   : > { %7032 = vmatprep.mubr.msk.bf16.mxu0 %vm341_vm1, %v6193_v4  ;;  %v2793_v14 = vsel %vm7412_vm7, %v2788_v5, %v2792_v45  ;;  %v2798_v15 = vrot.slane %v2797_v6, 4  ;;  %v6261_v20 = vrot.slane %v6217_v54, 9  ;;  %v3268_v21 = vsel %vm7398_vm6, %v6260_v1, %v3267_v8  ;;  %v6232_v43 = vld [vmem:[%s7339_s25 + $0x60] sm:$0xe]  ;;  %v6233_v53 = vld [vmem:[%s7339_s25 + $0x64] sm:$0xf] }
  0xbf   : > { %v3264_v25 = vsel %vm7398_vm6, %v3262_v56, %v3263_v0  ;;  %v3269_v26 = vrot.slane %v3267_v8, 4  ;;  %v3274_v27 = vrot.slane %v6218_v58, 5  ;;  %v3277_v29 = vrot.slane %v6219_v2, 5  ;;  %v6234_v54 = vld [vmem:[%s7339_s25 + $0x68] sm:$0x1] }
  0xc0   : > { %v2803_v19 = vsel %vm7412_vm7, %v2798_v15, %v2802_v63  ;;  %v6276_v52 = vcombine.low %v3261_v7, %v3264_v25  ;;  %v6262_v30 = vrot.slane %v6220_v3, 9  ;;  %v3281_v39 = vrot.slane %v6221_v11, 5  ;;  %v6235_v57 = vld [vmem:[%s7339_s25 + $0x6c] sm:$0xe]  ;;  %v6236_v63 = vld [vmem:[%s7339_s25 + $0x70] sm:$0xf] }
  0xc1   : > { %v6194_v33 = vcombine.low %v2793_v14, %v2803_v19  ;;  %v3271_v34 = vsel %vm7398_vm6, %v3269_v26, %v3270_v9  ;;  %v3275_v35 = vsel %vm7398_vm6, %v6261_v20, %v3274_v27  ;;  %v3276_v36 = vrot.slane %v3274_v27, 4  ;;  %v6237_v0 = vld [vmem:[%s7339_s25 + $0x74] sm:$0x1]  ;;  %v6238_v1 = vld [vmem:[%s7339_s25 + $0x78] sm:$0xe] }
  0xc2   : > { %7038 = vmatprep.mubr.msk.bf16.mxu1 %vm341_vm1, %v6276_v52  ;;  %v6277_v38 = vcombine.low %v3268_v21, %v3271_v34  ;;  %v3284_v40 = vrot.slane %v6222_v12, 5  ;;  %v6263_v24 = vrot.slane %v6223_v13, 9  ;;  %v3288_v45 = vrot.slane %v6224_v22, 5  ;;  %v6239_v6 = vld [vmem:[%s7339_s25 + $0x7c] sm:$0xf]  ;;  %v7243_v12 = vld [vmem:[%s7339_s25 + $0x30] sm:$0xff]  }
  0xc3   : > { %7033 = vmatmul.mubr.msk.bf16.gmra.mxu0 %vm341_vm1, %v6194_v33  ;;  %v3278_v44 = vsel %vm7398_vm6, %v3276_v36, %v3277_v29  ;;  %v3291_v46 = vrot.slane %v6225_v23, 5  ;;  %v6264_v47 = vrot.slane %v6226_v31, 9  ;;  %v7900_v49 = vsel %vm7398_vm6, %v6262_v30, %v3281_v39  ;;  %v6241_v11 = vld [vmem:[%s7339_s25 + $0x84] sm:$0xe]  ;;  %v6242_v20 = vld [vmem:[%s7339_s25 + $0x88] sm:$0xf] }
  0xc4   : > { %7072 = vmatprep.mubr.msk.bf16.mxu0 %vm341_vm1, %v7241_v16  ;;  %7039 = vmatmul.mubr.msk.bf16.vlgmr.msra.gmra.mxu1 %vm341_vm1, %v6277_v38  ;;  %v6278_v48 = vcombine.low %v3275_v35, %v3278_v44  ;;  %v3283_v50 = vrot.slane %v3281_v39, 4  ;;  %v3295_v51 = vrot.slane %v6227_v28, 5  ;;  %v3289_v60 = vsel %vm7398_vm6, %v6263_v24, %v3288_v45  ;;  %v6243_v21 = vld [vmem:[%s7339_s25 + $0x8c] sm:$0x1]  ;;  %v6244_v52 = vld [vmem:[%s7339_s25 + $0x90] sm:$0xe] }
  0xc5   : > { %7105 = vmatpush3.bf16.msra.mxu1 %v4682_v10  ;;  %v3290_v61 = vrot.slane %v3288_v45, 4  ;;  %v3298_v58 = vrot.slane %v6228_v32, 5  ;;  %v6265_v62 = vrot.slane %v6229_v37, 9  ;;  %v3302_v5 = vrot.slane %v6230_v18, 5  ;;  %v6240_v10 = vld [vmem:[%s7339_s25 + $0x80] sm:$0x1] }
  0xc6   : > { %7042 = vmatprep.mubr.msk.bf16.mxu1 %vm341_vm1, %v6278_v48  ;;  %v3285_v2 = vsel %vm7398_vm6, %v3283_v50, %v3284_v40  ;;  %v7916_v3 = vsel %vm7398_vm6, %v6264_v47, %v3295_v51  ;;  %v3297_v4 = vrot.slane %v3295_v51, 4  ;;  %v3305_v8 = vrot.slane %v6231_v41, 5  ;;  %v6245_v35 = vld [vmem:[%s7339_s25 + $0x94] sm:$0xf]  ;;  %v7953_v36 = vld [vmem:[%s7339_s25 + $0x98] sm:$0x1] }
  0xc7   : > { %v6279_v7 = vcombine.low %v7900_v49, %v3285_v2  ;;  %v3292_v56 = vsel %vm7398_vm6, %v3290_v61, %v3291_v46  ;;  %v6266_v9 = vrot.slane %v6232_v43, 9  ;;  %v7931_v15 = vsel %vm7398_vm6, %v6265_v62, %v3302_v5  ;;  %v6247_v37 = vld [vmem:[%s7339_s25 + $0x9c] sm:$0xe]  ;;  %v6248_v41 = vld [vmem:[%s7339_s25 + $0xa0] sm:$0xf] }
  0xc8   : > { %v6280_v13 = vcombine.low %v3289_v60, %v3292_v56  ;;  %v7927_v14 = vsel %vm7398_vm6, %v3297_v4, %v3298_v58  ;;  %v3304_v16 = vrot.slane %v3302_v5, 4  ;;  %v3309_v23 = vrot.slane %v6233_v53, 5  ;;  %v6249_v43 = vld [vmem:[%s7339_s25 + $0xa4] sm:$0x1]  ;;  %v6250_v44 = vld [vmem:[%s7339_s25 + $0xa8] sm:$0xe] }
  0xc9   : > { %v6281_v22 = vcombine.low %v7916_v3, %v7927_v14  ;;  %v3312_v31 = vrot.slane %v6234_v54, 5  ;;  %v6267_v25 = vrot.slane %v6235_v57, 9  ;;  %v3316_v27 = vrot.slane %v6236_v63, 5  ;;  %v6251_v49 = vld [vmem:[%s7339_s25 + $0xac] sm:$0xf]  ;;  %v7244_v61 = vld [vmem:[%s7339_s25 + $0x3c] sm:$0xff]  }
  0xca   : > { %v7939_v26 = vsel %vm7398_vm6, %v3304_v16, %v3305_v8  ;;  %v3319_v28 = vrot.slane %v6237_v0, 5  ;;  %v6268_v19 = vrot.slane %v6238_v1, 9  ;;  %v7947_v30 = vsel %vm7398_vm6, %v6266_v9, %v3309_v23  ;;  %v6253_v60 = vld [vmem:[%s7339_s25 + $0xb4] sm:$0xe]  ;;  %v6254_v2 = vld [vmem:[%s7339_s25 + $0xb8] sm:$0xf] }
  0xcb   : > { %7073 = vmatmul.mubr.msk.bf16.vlgmr.msra.gmra.mxu0 %vm341_vm1, %v7242_v59  ;;  %v6282_v29 = vcombine.low %v7931_v15, %v7939_v26  ;;  %v3311_v32 = vrot.slane %v3309_v23, 4  ;;  %v3323_v34 = vrot.slane %v6239_v6, 5  ;;  %v7960_v18 = vsel %vm7398_vm6, %v6267_v25, %v3316_v27  ;;  %v6252_v59 = vld [vmem:[%s7339_s25 + $0xb0] sm:$0x1]  ;;  %v7245_v4 = vld [vmem:[%s7339_s25 + $0x48] sm:$0xff]   ;;  %v7246_v26 = vld [vmem:[%s7339_s25 + $0x54] sm:$0xff]  }
  0xcc   : > { %7139 = vmatpush3.bf16.msra.mxu0 %v7871_v17  ;;  %7076 = vmatprep.mubr.msk.bf16.mxu0 %vm341_vm1, %v7243_v12  ;;  %v3318_v38 = vrot.slane %v3316_v27, 4  ;;  %v3326_v40 = vrot.slane %v6240_v10, 5  ;;  %v6269_v24 = vrot.slane %v6241_v11, 9  ;;  %v3330_v48 = vrot.slane %v6242_v20, 5  ;;  %v6255_v9 = vld [vmem:[%s7339_s25 + $0xbc] sm:$0x1] }
  0xcd   : > { %7043 = vmatmul.mubr.msk.bf16.gmra.mxu1 %vm341_vm1, %v6279_v7  ;;  %v7970_v17 = vsel %vm7398_vm6, %v3311_v32, %v3312_v31  ;;  %v7974_v45 = vsel %vm7398_vm6, %v6268_v19, %v3323_v34  ;;  %v3325_v46 = vrot.slane %v3323_v34, 4  ;;  %v3333_v54 = vrot.slane %v6243_v21, 5  ;;  %v6256_v20 = vld [vmem:[%s7339_s25 + $0xc0] sm:$0xe]  ;;  %v6454_v15 = vld [vmem:[%s7339_s25 + $0x18] sm:$0xe] }
  0xce   : > { %7046 = vmatprep.mubr.msk.bf16.mxu1 %vm341_vm1, %v6280_v13  ;;  %v6283_v50 = vcombine.low %v7947_v30, %v7970_v17  ;;  %v7984_v51 = vsel %vm7398_vm6, %v3318_v38, %v3319_v28  ;;  %v6270_v57 = vrot.slane %v6244_v52, 9  ;;  %v8001_v0 = vsel %vm7398_vm6, %v6269_v24, %v3330_v48  ;;  %v6257_v28 = vld [vmem:[%s7339_s25 + $0xc4] sm:$0xf]  ;;  %v6378_v14 = vld [vmem:[%s7339_s25 + $0x2c] sm:$0x1] }
  0xcf   : > { %v6284_v58 = vcombine.low %v7960_v18, %v7984_v51  ;;  %v7995_v62 = vsel %vm7398_vm6, %v3325_v46, %v3326_v40  ;;  %v3332_v1 = vrot.slane %v3330_v48, 4  ;;  %v3337_v7 = vrot.slane %v6245_v35, 5  ;;  %v6379_v51 = vld [vmem:[%s7339_s25 + $0x30] sm:$0xf] }
  0xd0   : > { %v3340_v56 = vrot.slane %v7953_v36, 5  ;;  %v6271_v8 = vrot.slane %v6247_v37, 9  ;;  %v3344_v12 = vrot.slane %v6248_v41, 5  ;;  %v3347_v13 = vrot.slane %v6249_v43, 5  ;;  %v6258_v41 = vld [vmem:[%s7339_s25 + $0xc8] sm:$0x1] }
  0xd1   : > { %v8015_v11 = vsel %vm7398_vm6, %v3332_v1, %v3333_v54  ;;  %v6272_v16 = vrot.slane %v6250_v44, 9  ;;  %v8024_v25 = vsel %vm7398_vm6, %v6270_v57, %v3337_v7  ;;  %v3339_v21 = vrot.slane %v3337_v7, 4  ;;  %v6373_v43 = vld [vmem:[%s7339_s25 + $0x18] sm:$0xf]  ;;  %v6374_v57 = vld [vmem:[%s7339_s25 + $0x1c] sm:$0xf] }
  0xd2   : > { %v3351_v27 = vrot.slane %v6251_v49, 5  ;;  %v8032_v52 = vsel %vm7398_vm6, %v6271_v8, %v3344_v12  ;;  %v3346_v32 = vrot.slane %v3344_v12, 4  ;;  %v3354_v34 = vrot.slane %v6252_v59, 5  ;;  %v7247_v8 = vld [vmem:[%s7339_s25 + $0x60] sm:$0xff]  }
  0xd3   : > { %7077 = vmatmul.mubr.msk.bf16.gmra.mxu0 %vm341_vm1, %v7244_v61  ;;  %v6273_v35 = vrot.slane %v6253_v60, 9  ;;  %v8039_v37 = vsel %vm7398_vm6, %v3339_v21, %v3340_v56  ;;  %v3358_v24 = vrot.slane %v6254_v2, 5  ;;  %v3361_v49 = vrot.slane %v6255_v9, 5  ;;  %v6375_v61 = vld [vmem:[%s7339_s25 + $0x20] sm:$0x1] }
  0xd4   : > { %v7949_v33 = vpop.f32.mrf.mxu0  ;;  %7080 = vmatprep.mubr.msk.bf16.mxu0 %vm341_vm1, %v7245_v4  ;;  %v8043_v38 = vsel %vm7398_vm6, %v6272_v16, %v3351_v27  ;;  %v3353_v40 = vrot.slane %v3351_v27, 4  ;;  %v8057_v48 = vsel %vm7398_vm6, %v3346_v32, %v3347_v13  ;;  %v6274_v54 = vrot.slane %v6256_v20, 9  ;;  %v6455_v56 = vld [vmem:[%s7339_s25 + $0x1c] sm:$0xf]  ;;  %v6456_v21 = vld [vmem:[%s7339_s25 + $0x20] sm:$0x1] }
  0xd5   : > { %v7962_v39 = vpop.f32.mrf.mxu1  ;;  %7047 = vmatmul.mubr.msk.bf16.gmra.mxu1 %vm341_vm1, %v6281_v22  ;;  %v8074_v59 = vsel %vm7398_vm6, %v6273_v35, %v3358_v24  ;;  %v3360_v60 = vrot.slane %v3358_v24, 4  ;;  %v3365_v2 = vrot.slane %v6257_v28, 5  ;;  %v3368_v4 = vrot.slane %v6258_v41, 5 }
  0xd6   : > { %v7976_v47 = vpop.f32.mrf.mxu0  ;;  %7050 = vmatprep.mubr.msk.bf16.mxu1 %vm341_vm1, %v6282_v29  ;;  %v8070_v22 = vsel %vm7398_vm6, %v3353_v40, %v3354_v34  ;;  %v4200_v7 = vshrl.u32 %v6373_v43, 16  ;;  %v4203_v13 = vshll.u32 %v6373_v43, 16  ;;  %v4209_v16 = vshll.u32 %v6374_v57, 16 }
  0xd7   : > { %v7986_v53 = vpop.f32.mrf.mxu1  ;;  %v8089_v12 = vsel %vm7398_vm6, %v3360_v60, %v3361_v49  ;;  %v4213_v20 = vshrl.u32 %v6374_v57, 16  ;;  %v8098_v32 = vsel %vm7398_vm6, %v6274_v54, %v3365_v2  ;;  %v3367_v34 = vrot.slane %v3365_v2, 4  ;;  %v6376_v57 = vld [vmem:[%s7339_s25 + $0x24] sm:$0xf] }
  0xd8   : > { %v7997_v63 = vpop.f32.mrf.mxu0  ;;  %v4202_v35 = vrot.slane %v4200_v7, 4  ;;  %v4205_v24 = vrot.slane %v4203_v13, 5  ;;  %v4211_v41 = vrot.slane %v4209_v16, 5  ;;  %v4219_v49 = vshll.u32 %v6375_v61, 16  ;;  %v6377_v7 = vld [vmem:[%s7339_s25 + $0x28] sm:$0xf] }
  0xd9   : > { %v8007_v6 = vpop.f32.mrf.mxu1  ;;  %v4215_v43 = vrot.slane %v4213_v20, 4  ;;  %v8108_v28 = vsel %vm7398_vm6, %v3367_v34, %v3368_v4  ;;  %v6502_v54 = vrot.slane %v6454_v15, 9  ;;  %v5039_v29 = vrot.slane %v6455_v56, 5  ;;  %v6457_v34 = vld [vmem:[%s7339_s25 + $0x24] sm:$0xe] }
  0xda   : > { %v8011_v10 = vpop.f32.mrf.mxu0  ;;  %v5042_v2 = vrot.slane %v6456_v21, 5  ;;  %v4221_v20 = vrot.slane %v4219_v49, 5  ;;  %v4227_v21 = vshll.u32 %v6376_v57, 16  ;;  %v6459_v49 = vld [vmem:[%s7339_s25 + $0x2c] sm:$0x1]  ;;  %v4243_v18 = vshll.u32 %v6378_v14, 16 }
  0xdb   : > { %v8018_v23 = vpop.f32.mrf.mxu1  ;;  %7081 = vmatmul.mubr.msk.bf16.gmra.mxu0 %vm341_vm1, %v7246_v26  ;;  %v4206_v26 = vor.u32 %v4205_v24, %v4202_v35  ;;  %v4216_v16 = vor.u32 %v4215_v43, %v4211_v41  ;;  %v8125_v4 = vsel %vm7398_vm6, %v6502_v54, %v5039_v29  ;;  %v5041_v56 = vrot.slane %v5039_v29, 4  ;;  %v6458_v35 = vld [vmem:[%s7339_s25 + $0x28] sm:$0xf]  ;;  %v7248_v29 = vld [vmem:[%s7339_s25 + $0x6c] sm:$0xff]  }
  0xdc   : > { %8956 = vst [vmem:[#allocation3_spill] sm:$0xff] %v8018_v23  ;;  %v8028_v19 = vpop.f32.mrf.mxu0  ;;  %7084 = vmatprep.mubr.msk.bf16.mxu0 %vm341_vm1, %v7247_v8  ;;  %v4224_v8 = vshrl.u32 %v6376_v57, 16  ;;  %v4233_v24 = vshll.u32 %v6377_v7, 16  ;;  %v4237_v43 = vshrl.u32 %v6377_v7, 16  ;;  %v4229_v44 = vrot.slane %v4227_v21, 5 }
  0xdd   : > { %v8035_v36 = vpop.f32.mrf.mxu1  ;;  %7051 = vmatmul.mubr.msk.bf16.gmra.mxu1 %vm341_vm1, %v6283_v50  ;;  %v4207_v17 = vrot.slane %v4206_v26, 4  ;;  %v4217_v50 = vrot.slane %v4216_v16, 4  ;;  %v8141_v57 = vsel %vm7398_vm6, %v5041_v56, %v5042_v2  ;;  %v6380_v2 = vld [vmem:[%s7339_s25 + $0x34] sm:$0xf] }
  0xde   : > { %8957 = vst [vmem:[#allocation4_spill] sm:$0xff] %v8035_v36  ;;  %v8053_v46 = vpop.f32.mrf.mxu0  ;;  %7054 = vmatprep.mubr.msk.bf16.mxu1 %vm341_vm1, %v6284_v58  ;;  %v4226_v61 = vrot.slane %v4224_v8, 4  ;;  %v7249_v58 = vld [vmem:[%s7339_s25 + $0x78] sm:$0xff]   ;;  %v4235_v5 = vrot.slane %v4233_v24, 5  ;;  %v4239_v21 = vrot.slane %v4237_v43, 4 }
  0xdf   : > { %v8064_v3 = vpop.f32.mrf.mxu1  ;;  %v4212_v26 = vsel %vm7412_vm7, %v4207_v17, %v4211_v41  ;;  %v4222_v7 = vsel %vm7412_vm7, %v4217_v50, %v4221_v20  ;;  %v5046_v41 = vrot.slane %v6458_v35, 5  ;;  %v5049_v17 = vrot.slane %v6459_v49, 5  ;;  %v6381_v20 = vld [vmem:[%s7339_s25 + $0x38] sm:$0x1] }
  0xe0   : > { %8958 = vst [vmem:[#allocation5_spill] sm:$0xff] %v8064_v3  ;;  %v8079_v1 = vpop.f32.mrf.mxu0  ;;  %v8156_v8 = vcombine.low %v4212_v26, %v4222_v7  ;;  %v4230_v14 = vor.u32 %v4229_v44, %v4226_v61  ;;  %v4248_v50 = vshrl.u32 %v6379_v51, 16  ;;  %v4251_v26 = vshll.u32 %v6379_v51, 16  ;;  %v6460_v44 = vld [vmem:[%s7339_s25 + $0x30] sm:$0xe] }
  0xe1   : > { %v8085_v9 = vpop.f32.mrf.mxu1  ;;  %v4257_v7 = vshll.u32 %v6380_v2, 16  ;;  %v5048_v35 = vrot.slane %v5046_v41, 4  ;;  %v4261_v49 = vshrl.u32 %v6380_v2, 16  ;;  %v8967_v2 = vcombine.low %v8001_v0, %v8015_v11 }
  0xe2   : > { %8959 = vst [vmem:[#allocation6_spill] sm:$0xff] %v8085_v9  ;;  %v8092_v27 = vpop.f32.mrf.mxu0  ;;  %v4231_v16 = vrot.slane %v4230_v14, 4  ;;  %v4250_v43 = vrot.slane %v4248_v50, 4 }
  0xe3   : > { %v8100_v40 = vpop.f32.mrf.mxu1  ;;  %7085 = vmatmul.mubr.msk.bf16.gmra.mxu0 %vm341_vm1, %v7248_v29  ;;  %v6461_v29 = vld [vmem:[%s7339_s25 + $0x34] sm:$0xf] }
  0xe4   : > { %8960 = vst [vmem:[#allocation7_spill] sm:$0xff] %v8100_v40  ;;  %v8104_v60 = vpop.f32.mrf.mxu0  ;;  %v4240_v40 = vor.u32 %v4239_v21, %v4235_v5  ;;  %7088 = vmatprep.mubr.msk.bf16.mxu0 %vm341_vm1, %v7249_v58  ;;  %v4236_v58 = vsel %vm7412_vm7, %v4231_v16, %v4235_v5  ;;  %v4253_v21 = vrot.slane %v4251_v26, 5  ;;  %v6504_v5 = vrot.slane %v6460_v44, 9  ;;  %v7250_v16 = vld [vmem:[%s7339_s25 + $0x84] sm:$0xff]  }
  0xe5   : > { %v8112_v13 = vpop.f32.mrf.mxu1 }
  0xe6   : > { %8961 = vst [vmem:[#allocation8_spill] sm:$0xff] %v8112_v13  ;;  %v8121_v15 = vpop.f32.mrf.mxu0  ;;  %v6503_v13 = vrot.slane %v6457_v34, 9  ;;  %v4241_v14 = vrot.slane %v4240_v40, 4  ;;  %v6382_v40 = vld [vmem:[%s7339_s25 + $0x3c] sm:$0xf]  ;;  %v4254_v11 = vor.u32 %v4253_v21, %v4250_v43 }
  0xe7   : > { %v8133_v30 = vpop.f32.mrf.mxu1 }
  0xe8   : > { %8962 = vst [vmem:[#allocation9_spill] sm:$0xff] %v8133_v30  ;;  %v8137_v54 = vpop.f32.mrf.mxu0  ;;  %v4245_v30 = vrot.slane %v4243_v18, 5  ;;  %v8170_v34 = vsel %vm7398_vm6, %v6503_v13, %v5046_v41  ;;  %v8966_v18 = vcombine.low %v7974_v45, %v7995_v62  ;;  %v4259_v13 = vrot.slane %v4257_v7, 5  ;;  %v6462_v41 = vld [vmem:[%s7339_s25 + $0x38] sm:$0x1] }
  0xe9   : > { %v8145_v31 = vpop.f32.mrf.mxu1  ;;  %v8190_v45 = vsel %vm7398_vm6, %v5048_v35, %v5049_v17  ;;  %v4263_v62 = vrot.slane %v4261_v49, 4  ;;  %v5056_v49 = vrot.slane %v6462_v41, 5  ;;  %v4255_v3 = vrot.slane %v4254_v11, 4  ;;  %v6463_v41 = vld [vmem:[%s7339_s25 + $0x3c] sm:$0xe] }
  0xea   : > { %8963 = vst [vmem:[#allocation10_spill] sm:$0xff] %v8145_v31  ;;  %v8154_v56 = vpop.f32.mrf.mxu0  ;;  %7055 = vmatmul.mubr.msk.bf16.gmra.mxu1 %vm341_vm1, %v8966_v18  ;;  %v4267_v18 = vshll.u32 %v6381_v20, 16  ;;  %v4246_v7 = vsel %vm7412_vm7, %v4241_v14, %v4245_v30 }
  0xeb   : > { %v8158_v31 = vpop.f32.mrf.mxu1  ;;  %7058 = vmatprep.mubr.msk.bf16.mxu1 %vm341_vm1, %v8967_v2  ;;  %v5053_v2 = vrot.slane %v6461_v29, 5  ;;  %v8204_v20 = vcombine.low %v4236_v58, %v4246_v7  ;;  %v4264_v44 = vor.u32 %v4263_v62, %v4259_v13  ;;  %v4272_v29 = vshrl.u32 %v6382_v40, 16  ;;  %7089 = vmatmul.mubr.msk.bf16.gmra.mxu0 %vm341_vm1, %v7250_v16 }
  0xec   : > { %8964 = vst [vmem:[#allocation11_spill] sm:$0xff] %v8158_v31  ;;  %v8162_v24 = vpop.f32.mrf.mxu0  ;;  %v4269_v35 = vrot.slane %v4267_v18, 5  ;;  %v6384_v31 = vld [vmem:[%s7339_s25 + $0x44] sm:$0x1]  ;;  %v4275_v58 = vshll.u32 %v6382_v40, 16  ;;  %v4260_v11 = vsel %vm7412_vm7, %v4255_v3, %v4259_v13  ;;  %v6505_v16 = vrot.slane %v6463_v41, 9 }
  0xed   : > { %v8166_v61 = vpop.f32.mrf.mxu1  ;;  %v8211_v30 = vsel %vm7398_vm6, %v6504_v5, %v5053_v2  ;;  %v5055_v43 = vrot.slane %v5053_v2, 4  ;;  %v4265_v21 = vrot.slane %v4264_v44, 4  ;;  %v4274_v2 = vrot.slane %v4272_v29, 4  ;;  %v6385_v13 = vld [vmem:[%s7339_s25 + $0x48] sm:$0xf] }
  0xee   : > { %8965 = vst [vmem:[#allocation12_spill] sm:$0xff] %v8166_v61  ;;  %v8177_v51 = vpop.f32.mrf.mxu0  ;;  %v7251_v61 = vld [vmem:[%s7339_s25 + $0x90] sm:$0xff]   ;;  %v4291_v0 = vshll.u32 %v6384_v31, 16  ;;  %v4277_v44 = vrot.slane %v4275_v58, 5 }
  0xef   : > { %v8186_v50 = vpop.f32.mrf.mxu1  ;;  %v8221_v5 = vsel %vm7398_vm6, %v5055_v43, %v5056_v49  ;;  %7092 = vmatprep.mubr.msk.bf16.mxu0 %vm341_vm1, %v7251_v61  ;;  %v8971_v49 = vcombine.low %v8024_v25, %v8039_v37 }
  0xf0   : > { %8968 = vst [vmem:[#allocation13_spill] sm:$0xff] %v8186_v50  ;;  %v8194_v26 = vpop.f32.mrf.mxu0  ;;  %v6383_v50 = vld [vmem:[%s7339_s25 + $0x40] sm:$0xf]  ;;  %v4293_v29 = vrot.slane %v4291_v0, 5  ;;  %v4296_v0 = vshrl.u32 %v6385_v13, 16 }
  0xf1   : > { %v8202_v17 = vpop.f32.mrf.mxu1  ;;  %v4281_v7 = vshll.u32 %v6383_v50, 16  ;;  %v4285_v62 = vshrl.u32 %v6383_v50, 16  ;;  %v4270_v50 = vsel %vm7412_vm7, %v4265_v21, %v4269_v35  ;;  %v8972_v21 = vcombine.low %v8032_v52, %v8057_v48 }
  0xf2   : > { %8969 = vst [vmem:[#allocation14_spill] sm:$0xff] %v8202_v17  ;;  %v8207_v9 = vpop.f32.mrf.mxu0  ;;  %v6464_v17 = vld [vmem:[%s7339_s25 + $0x40] sm:$0xf]  ;;  %7059 = vmatmul.mubr.msk.bf16.gmra.mxu1 %vm341_vm1, %v8971_v49  ;;  %v8236_v43 = vcombine.low %v4260_v11, %v4270_v50  ;;  %v6386_v50 = vld [vmem:[%s7339_s25 + $0x4c] sm:$0xf] }
  0xf3   : > { %v8213_v14 = vpop.f32.mrf.mxu1  ;;  %v4283_v3 = vrot.slane %v4281_v7, 5  ;;  %v4287_v35 = vrot.slane %v4285_v62, 4  ;;  %7062 = vmatprep.mubr.msk.bf16.mxu1 %vm341_vm1, %v8972_v21  ;;  %v4278_v7 = vor.u32 %v4277_v44, %v4274_v2  ;;  %v5060_v25 = vrot.slane %v6464_v17, 5  ;;  %v7252_v49 = vld [vmem:[%s7339_s25 + $0x9c] sm:$0xff]   ;;  %v7253_v62 = vld [vmem:[%s7339_s25 + $0xa8] sm:$0xff]  }
  0xf4   : > { %8970 = vst [vmem:[#allocation15_spill] sm:$0xff] %v8213_v14  ;;  %v6938_v18 = vpop.f32.mrf.mxu0  ;;  %v6465_v14 = vld [vmem:[%s7339_s25 + $0x44] sm:$0x1]  ;;  %v4298_v44 = vrot.slane %v4296_v0, 4  ;;  %7093 = vmatmul.mubr.msk.bf16.gmra.mxu0 %vm341_vm1, %v7252_v49 }
  0xf5   : > { %v6904_v40 = vpop.f32.mrf.mxu1  ;;  %v5063_v37 = vrot.slane %v6465_v14, 5  ;;  %v4279_v52 = vrot.slane %v4278_v7, 4  ;;  %v8250_v48 = vsel %vm7398_vm6, %v6505_v16, %v5060_v25  ;;  %v5062_v17 = vrot.slane %v5060_v25, 4  ;;  %v6387_v16 = vld [vmem:[%s7339_s25 + $0x50] sm:$0x1]  ;;  %7096 = vmatprep.mubr.msk.bf16.mxu0 %vm341_vm1, %v7253_v62 }
  0xf6   : > { %v1318_v31 = vadd.f32 %v6904_v40, %v7949_v33  ;;  %v1726_v61 = vpop.f32.mrf.mxu0  ;;  %v4288_v40 = vor.u32 %v4287_v35, %v4283_v3  ;;  %v4299_v14 = vshll.u32 %v6385_v13, 16  ;;  %v4305_v13 = vshll.u32 %v6386_v50, 16  ;;  %v6467_v25 = vld [vmem:[%s7339_s25 + $0x4c] sm:$0xf] }
  0xf7   : > { %v1157_v58 = vpop.f32.mrf.mxu1  ;;  %v4284_v35 = vsel %vm7412_vm7, %v4279_v52, %v4283_v3  ;;  %v8259_v21 = vsel %vm7398_vm6, %v5062_v17, %v5063_v37  ;;  %v6468_v37 = vld [vmem:[%s7339_s25 + $0x50] sm:$0x1]  ;;  %v6388_v17 = vld [vmem:[%s7339_s25 + $0x54] sm:$0xf]  ;;  %v4315_v62 = vshll.u32 %v6387_v16, 16 }
  0xf8   : > { %v8243_v36 = vadd.f32 %v6938_v18, %v1318_v31  ;;  %v1316_v33 = vadd.f32 %v1157_v58, %v7976_v47  ;;  %v6939_v11 = vpop.f32.mrf.mxu0  ;;  %v4289_v2 = vrot.slane %v4288_v40, 4  ;;  %v4301_v58 = vrot.slane %v4299_v14, 5 }
  0xf9   : > { %v6905_v23 = vpop.f32.mrf.mxu1  ;;  %v6522_v3 = vcombine.low %v8250_v48, %v8259_v21  ;;  %v4307_v49 = vrot.slane %v4305_v13, 5  ;;  %v4317_v16 = vrot.slane %v4315_v62, 5  ;;  %v6389_v13 = vld [vmem:[%s7339_s25 + $0x58] sm:$0xf] }
  0xfa   : > { %v8252_v41 = vadd.f32 %v1726_v61, %v1316_v33  ;;  %v1319_v18 = vadd.f32 %v6905_v23, %v7997_v63  ;;  %v1729_v47 = vpop.f32.mrf.mxu0  ;;  %v6466_v61 = vld [vmem:[%s7339_s25 + $0x48] sm:$0xe]  ;;  %v4294_v7 = vsel %vm7412_vm7, %v4289_v2, %v4293_v29  ;;  %v4302_v52 = vor.u32 %v4301_v58, %v4298_v44  ;;  %v7254_v58 = vld [vmem:[%s7339_s25 + $0xb4] sm:$0xff]  }
  0xfb   : > { %v1160_v31 = vpop.f32.mrf.mxu1  ;;  %v8274_v0 = vcombine.low %v4284_v35, %v4294_v7  ;;  %v8974_v2 = vcombine.low %v8074_v59, %v8089_v12 }
  0xfc   : > { %v8264_v63 = vadd.f32 %v6939_v11, %v1319_v18  ;;  %v1317_v23 = vadd.f32 %v1160_v31, %v8011_v10  ;;  %v6942_v40 = vpop.f32.mrf.mxu0  ;;  %v4309_v11 = vshrl.u32 %v6386_v50, 16  ;;  %v8973_v10 = vcombine.low %v8043_v38, %v8070_v22  ;;  %7097 = vmatmul.mubr.msk.bf16.gmra.mxu0 %vm341_vm1, %v7254_v58 }
  0xfd   : > { %v6908_v33 = vpop.f32.mrf.mxu1  ;;  %v6506_v18 = vrot.slane %v6466_v61, 9  ;;  %v4303_v31 = vrot.slane %v4302_v52, 4  ;;  %v5067_v38 = vrot.slane %v6467_v25, 5  ;;  %v5070_v22 = vrot.slane %v6468_v37, 5  ;;  %v6390_v52 = vld [vmem:[%s7339_s25 + $0x5c] sm:$0x1] }
  0xfe   : > { %7063 = vmatmul.mubr.msk.bf16.gmra.mxu1 %vm341_vm1, %v8973_v10  ;;  %v8281_v29 = vadd.f32 %v1729_v47, %v1317_v23  ;;  %v1322_v14 = vadd.f32 %v6908_v33, %v8028_v19  ;;  %v1742_v44 = vpop.f32.mrf.mxu0  ;;  %v4311_v35 = vrot.slane %v4309_v11, 4  ;;  %v4320_v61 = vshrl.u32 %v6388_v17, 16  ;;  %v7255_v23 = vld [vmem:[%s7339_s25 + $0xc0] sm:$0xff]  }
  0xff   : > { %7066 = vmatprep.mubr.msk.bf16.mxu1 %vm341_vm1, %v8974_v2  ;;  %v1173_v50 = vpop.f32.mrf.mxu1  ;;  %v4308_v7 = vsel %vm7412_vm7, %v4303_v31, %v4307_v49  ;;  %v8298_v25 = vsel %vm7398_vm6, %v6506_v18, %v5067_v38  ;;  %v5069_v37 = vrot.slane %v5067_v38, 4  ;;  %v4323_v10 = vshll.u32 %v6388_v17, 16  ;;  %v6470_v31 = vld [vmem:[%s7339_s25 + $0x58] sm:$0xf]  ;;  %v6471_v38 = vld [vmem:[%s7339_s25 + $0x5c] sm:$0x1]  ;;  %7100 = vmatprep.mubr.msk.bf16.mxu0 %vm341_vm1, %v7255_v23 }
 0x100   : > { %v8289_v47 = vadd.f32 %v6942_v40, %v1322_v14  ;;  %v1320_v19 = vadd.f32 %v1173_v50, %v8053_v46  ;;  %v6943_v12 = vpop.f32.mrf.mxu0  ;;  %v4312_v33 = vor.u32 %v4311_v35, %v4307_v49  ;;  %v4322_v11 = vrot.slane %v4320_v61, 4  ;;  %v6469_v14 = vld [vmem:[%s7339_s25 + $0x54] sm:$0xe] }
 0x101   : > { %v6909_v59 = vpop.f32.mrf.mxu1  ;;  %v8307_v49 = vsel %vm7398_vm6, %v5069_v37, %v5070_v22  ;;  %v4329_v50 = vshll.u32 %v6389_v13, 16  ;;  %v4333_v18 = vshrl.u32 %v6389_v13, 16  ;;  %v4325_v35 = vrot.slane %v4323_v10, 5 }
 0x102   : > { %v8300_v40 = vadd.f32 %v1742_v44, %v1320_v19  ;;  %v1323_v46 = vadd.f32 %v6909_v59, %v8079_v1  ;;  %v4313_v2 = vrot.slane %v4312_v33, 4  ;;  %v6523_v17 = vcombine.low %v8298_v25, %v8307_v49  ;;  %v6391_v19 = vld [vmem:[%s7339_s25 + $0x60] sm:$0xf]  ;;  %v1745_v22 = vpop.f32.mrf.mxu0 }
 0x103   : > { %v1176_v62 = vpop.f32.mrf.mxu1  ;;  %v4331_v61 = vrot.slane %v4329_v50, 5  ;;  %v4335_v59 = vrot.slane %v4333_v18, 4  ;;  %v4339_v58 = vshll.u32 %v6390_v52, 16  ;;  %v6507_v23 = vrot.slane %v6469_v14, 9 }
 0x104   : > { %v8311_v44 = vadd.f32 %v6943_v12, %v1323_v46  ;;  %v1321_v1 = vadd.f32 %v1176_v62, %v8092_v27  ;;  %v4318_v13 = vsel %vm7412_vm7, %v4313_v2, %v4317_v16  ;;  %v6392_v12 = vld [vmem:[%s7339_s25 + $0x64] sm:$0xf]  ;;  %v8975_v27 = vcombine.low %v8098_v32, %v8108_v28  ;;  %v7256_v2 = vld [vmem:[%s7339_s25 + $0xcc] sm:$0xff]  }
 0x105   : > { %v8328_v37 = vcombine.low %v4308_v7, %v4318_v13  ;;  %v4326_v46 = vor.u32 %v4325_v35, %v4322_v11  ;;  %v4336_v10 = vor.u32 %v4335_v59, %v4331_v61  ;;  %v4341_v16 = vrot.slane %v4339_v58, 5  ;;  %v6472_v59 = vld [vmem:[%s7339_s25 + $0x60] sm:$0xe]  ;;  %7101 = vmatmul.mubr.msk.bf16.gmra.mxu0 %vm341_vm1, %v7256_v2 }
 0x106   : > { %7067 = vmatmul.mubr.msk.bf16.gmra.mxu1 %vm341_vm1, %v8975_v27  ;;  %v8326_v33 = vadd.f32 %v1745_v22, %v1321_v1  ;;  %v5074_v62 = vrot.slane %v6470_v31, 5  ;;  %v5077_v52 = vrot.slane %v6471_v38, 5  ;;  %v4344_v28 = vshrl.u32 %v6391_v19, 16  ;;  %v6912_v1 = vpop.f32.mrf.mxu1  ;;  %v6946_v22 = vpop.f32.mrf.mxu0  ;;  %v6393_v38 = vld [vmem:[%s7339_s25 + $0x68] sm:$0x1] }
 0x107   : > { %7106 = vmatprep.mubr.msk.bf16.mxu1 %vm341_vm1, %v8156_v8  ;;  %v4327_v50 = vrot.slane %v4326_v46, 4  ;;  %v4347_v32 = vshll.u32 %v6391_v19, 16  ;;  %v4353_v18 = vshll.u32 %v6392_v12, 16  ;;  %v4337_v7 = vrot.slane %v4336_v10, 4 }
 0x108   : > { %v8335_v11 = vsel %vm7398_vm6, %v6507_v23, %v5074_v62  ;;  %v5076_v8 = vrot.slane %v5074_v62, 4  ;;  %v4357_v14 = vshrl.u32 %v6392_v12, 16  ;;  %v1326_v31 = vadd.f32 %v6912_v1, %v8104_v60  ;;  %v1189_v46 = vpop.f32.mrf.mxu1  ;;  %v1758_v23 = vpop.f32.mrf.mxu0  ;;  %v6473_v60 = vld [vmem:[%s7339_s25 + $0x64] sm:$0xf]  ;;  %v6474_v62 = vld [vmem:[%s7339_s25 + $0x68] sm:$0x1] }
 0x109   : > { %v4332_v35 = vsel %vm7412_vm7, %v4327_v50, %v4331_v61  ;;  %v4346_v13 = vrot.slane %v4344_v28, 4  ;;  %v4349_v19 = vrot.slane %v4347_v32, 5  ;;  %v4342_v58 = vsel %vm7412_vm7, %v4337_v7, %v4341_v16  ;;  %v6394_v32 = vld [vmem:[%s7339_s25 + $0x6c] sm:$0xf] }
 0x10a   : > { %v8346_v27 = vsel %vm7398_vm6, %v5076_v8, %v5077_v52  ;;  %v4355_v12 = vrot.slane %v4353_v18, 5  ;;  %v4359_v10 = vrot.slane %v4357_v14, 4  ;;  %v8351_v61 = vadd.f32 %v6946_v22, %v1326_v31  ;;  %v6913_v18 = vpop.f32.mrf.mxu1  ;;  %v6947_v1 = vpop.f32.mrf.mxu0 }
 0x10b   : > { %v8353_v50 = vcombine.low %v4332_v35, %v4342_v58  ;;  %v6524_v28 = vcombine.low %v8335_v11, %v8346_v27  ;;  %v1324_v16 = vadd.f32 %v1189_v46, %v8121_v15  ;;  %v8976_v52 = vcombine.low %v8125_v4, %v8141_v57 }
 0x10c   : > { %v4350_v7 = vor.u32 %v4349_v19, %v4346_v13  ;;  %v4360_v2 = vor.u32 %v4359_v10, %v4355_v12  ;;  %v4363_v22 = vshll.u32 %v6393_v38, 16  ;;  %v6508_v8 = vrot.slane %v6472_v59, 9  ;;  %v1192_v57 = vpop.f32.mrf.mxu1  ;;  %v6395_v19 = vld [vmem:[%s7339_s25 + $0x70] sm:$0xf]  ;;  %v1761_v10 = vpop.f32.mrf.mxu0 }
 0x10d   : > { %7140 = vmatprep.mubr.msk.bf16.mxu0 %vm341_vm1, %v8976_v52  ;;  %v8365_v14 = vadd.f32 %v1758_v23, %v1324_v16  ;;  %v1327_v15 = vadd.f32 %v6913_v18, %v8137_v54  ;;  %v5081_v31 = vrot.slane %v6473_v60, 5  ;;  %v5084_v4 = vrot.slane %v6474_v62, 5  ;;  %v6396_v23 = vld [vmem:[%s7339_s25 + $0x74] sm:$0x1]  ;;  %v6476_v18 = vld [vmem:[%s7339_s25 + $0x70] sm:$0xf] }
 0x10e   : > { %7107 = vmatmul.mubr.msk.bf16.vlgmr.msra.gmra.mxu1 %vm341_vm1, %v8204_v20  ;;  %v4351_v35 = vrot.slane %v4350_v7, 4  ;;  %v4361_v13 = vrot.slane %v4360_v2, 4  ;;  %v4365_v38 = vrot.slane %v4363_v22, 5  ;;  %v4368_v59 = vshrl.u32 %v6394_v32, 16 }
 0x10f   : > { %7110 = vmatprep.mubr.msk.bf16.mxu1 %vm341_vm1, %v8236_v43  ;;  %v8371_v20 = vadd.f32 %v6947_v1, %v1327_v15  ;;  %v1325_v58 = vadd.f32 %v1192_v57, %v8154_v56  ;;  %v8376_v54 = vsel %vm7398_vm6, %v6508_v8, %v5081_v31  ;;  %v5083_v46 = vrot.slane %v5081_v31, 4  ;;  %v6475_v43 = vld [vmem:[%s7339_s25 + $0x6c] sm:$0xe]  ;;  %v6477_v56 = vld [vmem:[%s7339_s25 + $0x74] sm:$0x1] }
 0x110   : > { %v4356_v60 = vsel %vm7412_vm7, %v4351_v35, %v4355_v12  ;;  %v4366_v62 = vsel %vm7412_vm7, %v4361_v13, %v4365_v38  ;;  %v4370_v16 = vrot.slane %v4368_v59, 4  ;;  %v4371_v52 = vshll.u32 %v6394_v32, 16  ;;  %v6397_v8 = vld [vmem:[%s7339_s25 + $0x78] sm:$0xf] }
 0x111   : > { %v8386_v1 = vadd.f32 %v1761_v10, %v1325_v58  ;;  %v8388_v7 = vcombine.low %v4356_v60, %v4366_v62  ;;  %v8392_v2 = vsel %vm7398_vm6, %v5083_v46, %v5084_v4  ;;  %v4377_v22 = vshll.u32 %v6395_v19, 16  ;;  %v6398_v58 = vld [vmem:[%s7339_s25 + $0x7c] sm:$0xf]  ;;  %v6916_v46 = vpop.f32.mrf.mxu1  ;;  %v6950_v10 = vpop.f32.mrf.mxu0 }
 0x112   : > { %v6525_v12 = vcombine.low %v8376_v54, %v8392_v2  ;;  %v4373_v15 = vrot.slane %v4371_v52, 5  ;;  %v4381_v31 = vshrl.u32 %v6395_v19, 16  ;;  %v4387_v57 = vshll.u32 %v6396_v23, 16 }
 0x113   : > { %v8977_v32 = vcombine.low %v8170_v34, %v8190_v45  ;;  %v4379_v35 = vrot.slane %v4377_v22, 5  ;;  %v6509_v13 = vrot.slane %v6475_v43, 9  ;;  %v5088_v38 = vrot.slane %v6476_v18, 5  ;;  %v1205_v52 = vpop.f32.mrf.mxu1  ;;  %v1774_v18 = vpop.f32.mrf.mxu0 }
 0x114   : > { %v5091_v59 = vrot.slane %v6477_v56, 5  ;;  %v8978_v4 = vcombine.low %v8211_v30, %v8221_v5  ;;  %v4374_v19 = vor.u32 %v4373_v15, %v4370_v16  ;;  %v4383_v23 = vrot.slane %v4381_v31, 4  ;;  %v6399_v56 = vld [vmem:[%s7339_s25 + $0x80] sm:$0x1] }
 0x115   : > { %7141 = vmatmul.mubr.msk.bf16.vlgmr.msra.gmra.mxu0 %vm341_vm1, %v8977_v32  ;;  %v4389_v60 = vrot.slane %v4387_v57, 5  ;;  %v4392_v62 = vshrl.u32 %v6397_v8, 16  ;;  %v1330_v34 = vadd.f32 %v6916_v46, %v8162_v24  ;;  %v8411_v45 = vsel %vm7398_vm6, %v6509_v13, %v5088_v38  ;;  %v6478_v57 = vld [vmem:[%s7339_s25 + $0x78] sm:$0xe]  ;;  %v6479_v32 = vld [vmem:[%s7339_s25 + $0x7c] sm:$0xf]  ;;  %v6951_v46 = vpop.f32.mrf.mxu0 }
 0x116   : > { %7144 = vmatprep.mubr.msk.bf16.mxu0 %vm341_vm1, %v8978_v4  ;;  %7111 = vmatmul.mubr.msk.bf16.gmra.mxu1 %vm341_vm1, %v8274_v0  ;;  %v5090_v30 = vrot.slane %v5088_v38, 4  ;;  %v4395_v5 = vshll.u32 %v6397_v8, 16  ;;  %v4375_v43 = vrot.slane %v4374_v19, 4  ;;  %v4384_v16 = vor.u32 %v4383_v23, %v4379_v35  ;;  %v6917_v4 = vpop.f32.mrf.mxu1 }
 0x117   : > { %7114 = vmatprep.mubr.msk.bf16.mxu1 %vm341_vm1, %v8328_v37  ;;  %v4394_v22 = vrot.slane %v4392_v62, 4  ;;  %v4401_v0 = vshll.u32 %v6398_v58, 16  ;;  %v8416_v15 = vadd.f32 %v6950_v10, %v1330_v34  ;;  %v1328_v31 = vadd.f32 %v1205_v52, %v8177_v51  ;;  %v6480_v62 = vld [vmem:[%s7339_s25 + $0x80] sm:$0x1] }
 0x118   : > { %v8420_v24 = vsel %vm7398_vm6, %v5090_v30, %v5091_v59  ;;  %v4397_v8 = vrot.slane %v4395_v5, 5  ;;  %v4380_v37 = vsel %vm7412_vm7, %v4375_v43, %v4379_v35  ;;  %v4385_v13 = vrot.slane %v4384_v16, 4  ;;  %v1208_v34 = vpop.f32.mrf.mxu1  ;;  %v6400_v16 = vld [vmem:[%s7339_s25 + $0x84] sm:$0xf] }
 0x119   : > { %v6526_v38 = vcombine.low %v8411_v45, %v8420_v24  ;;  %v4403_v10 = vrot.slane %v4401_v0, 5  ;;  %v8429_v19 = vadd.f32 %v1774_v18, %v1328_v31  ;;  %v1331_v59 = vadd.f32 %v6917_v4, %v8194_v26  ;;  %v6481_v31 = vld [vmem:[%s7339_s25 + $0x84] sm:$0xe]  ;;  %v6483_v4 = vld [vmem:[%s7339_s25 + $0x8c] sm:$0x1] }
 0x11a   : > { %v4398_v51 = vor.u32 %v4397_v8, %v4394_v22  ;;  %v4405_v23 = vshrl.u32 %v6398_v58, 16  ;;  %v4390_v35 = vsel %vm7412_vm7, %v4385_v13, %v4389_v60  ;;  %v4411_v30 = vshll.u32 %v6399_v56, 16  ;;  %v6401_v22 = vld [vmem:[%s7339_s25 + $0x88] sm:$0xf]  ;;  %v6402_v60 = vld [vmem:[%s7339_s25 + $0x8c] sm:$0x1]  ;;  %v1777_v56 = vpop.f32.mrf.mxu0 }
 0x11b   : > { %v6510_v5 = vrot.slane %v6478_v57, 9  ;;  %v5095_v43 = vrot.slane %v6479_v32, 5  ;;  %v6429_v52 = vcombine.low %v4380_v37, %v4390_v35  ;;  %v8440_v26 = vadd.f32 %v6951_v46, %v1331_v59  ;;  %v6482_v8 = vld [vmem:[%s7339_s25 + $0x88] sm:$0xf] }
 0x11c   : > { %v1329_v58 = vadd.f32 %v1208_v34, %v8207_v9  ;;  %v4399_v18 = vrot.slane %v4398_v51, 4  ;;  %v4407_v0 = vrot.slane %v4405_v23, 4  ;;  %v4413_v48 = vrot.slane %v4411_v30, 5  ;;  %v6403_v23 = vld [vmem:[%s7339_s25 + $0x90] sm:$0xf]  ;;  %v6920_v34 = vpop.f32.mrf.mxu1 }
 0x11d   : > { %7145 = vmatmul.mubr.msk.bf16.gmra.mxu0 %vm341_vm1, %v6522_v3  ;;  %v8451_v21 = vsel %vm7398_vm6, %v6510_v5, %v5095_v43  ;;  %v5097_v3 = vrot.slane %v5095_v43, 4  ;;  %v5098_v49 = vrot.slane %v6480_v62, 5  ;;  %v4419_v32 = vshll.u32 %v6400_v16, 16 }
 0x11e   : > { %7148 = vmatprep.mubr.msk.bf16.mxu0 %vm341_vm1, %v6523_v17  ;;  %7115 = vmatmul.mubr.msk.bf16.gmra.mxu1 %vm341_vm1, %v8353_v50  ;;  %v8456_v9 = vadd.f32 %v1777_v56, %v1329_v58  ;;  %v4404_v25 = vsel %vm7412_vm7, %v4399_v18, %v4403_v10  ;;  %v4416_v17 = vshrl.u32 %v6400_v16, 16  ;;  %v4408_v57 = vor.u32 %v4407_v0, %v4403_v10  ;;  %v1221_v56 = vpop.f32.mrf.mxu1 }
 0x11f   : > { %7118 = vmatprep.mubr.msk.bf16.mxu1 %vm341_vm1, %v8388_v7  ;;  %v4425_v37 = vshll.u32 %v6401_v22, 16  ;;  %v4429_v13 = vshrl.u32 %v6401_v22, 16  ;;  %v8466_v50 = vsel %vm7398_vm6, %v5097_v3, %v5098_v49  ;;  %v4435_v59 = vshll.u32 %v6402_v60, 16  ;;  %v6954_v7 = vpop.f32.mrf.mxu0  ;;  %v6404_v3 = vld [vmem:[%s7339_s25 + $0x94] sm:$0xf] }
 0x120   : > { %v4418_v46 = vrot.slane %v4416_v17, 4  ;;  %v6511_v51 = vrot.slane %v6481_v31, 9  ;;  %v4409_v62 = vrot.slane %v4408_v57, 4  ;;  %v6527_v35 = vcombine.low %v8451_v21, %v8466_v50  ;;  %v6921_v27 = vpop.f32.mrf.mxu1  ;;  %v6488_v21 = vld [vmem:[%s7339_s25 + $0xa0] sm:$0xf] }
 0x121   : > { %v4421_v10 = vrot.slane %v4419_v32, 5  ;;  %v4427_v30 = vrot.slane %v4425_v37, 5  ;;  %v1334_v5 = vadd.f32 %v6920_v34, %v7962_v39  ;;  %v4431_v43 = vrot.slane %v4429_v13, 4  ;;  %v1790_v0 = vpop.f32.mrf.mxu0  ;;  %v6405_v13 = vld [vmem:[%s7339_s25 + $0x98] sm:$0x1]  ;;  %v8979_v34 = vld [vmem:[#allocation3_spill] sm:$0xff] }
 0x122   : > { %v4437_v16 = vrot.slane %v4435_v59, 5  ;;  %v5102_v58 = vrot.slane %v6482_v8, 5  ;;  %v4414_v18 = vsel %vm7412_vm7, %v4409_v62, %v4413_v48  ;;  %v5105_v60 = vrot.slane %v6483_v4, 5  ;;  %v6484_v59 = vld [vmem:[%s7339_s25 + $0x90] sm:$0xe] }
 0x123   : > { %v4422_v22 = vor.u32 %v4421_v10, %v4418_v46  ;;  %v4440_v31 = vshrl.u32 %v6403_v23, 16  ;;  %v6430_v49 = vcombine.low %v4404_v25, %v4414_v18  ;;  %v8479_v39 = vadd.f32 %v6954_v7, %v1334_v5  ;;  %v6486_v10 = vld [vmem:[%s7339_s25 + $0x98] sm:$0x1]  ;;  %v6489_v50 = vld [vmem:[%s7339_s25 + $0xa4] sm:$0x1] }
 0x124   : > { %v4432_v17 = vor.u32 %v4431_v43, %v4427_v30  ;;  %v8483_v8 = vsel %vm7398_vm6, %v6511_v51, %v5102_v58  ;;  %v5104_v57 = vrot.slane %v5102_v58, 4  ;;  %v1332_v11 = vadd.f32 %v1221_v56, %v7986_v53 }
 0x125   : > { %7149 = vmatmul.mubr.msk.bf16.gmra.mxu0 %vm341_vm1, %v6524_v28  ;;  %v4423_v48 = vrot.slane %v4422_v22, 4  ;;  %v6955_v28 = vpop.f32.mrf.mxu0  ;;  %v4442_v25 = vrot.slane %v4440_v31, 4  ;;  %v1335_v37 = vadd.f32 %v6921_v27, %v8007_v6  ;;  %v4443_v54 = vshll.u32 %v6403_v23, 16  ;;  %v6485_v6 = vld [vmem:[%s7339_s25 + $0x94] sm:$0xf] }
 0x126   : > { %7152 = vmatprep.mubr.msk.bf16.mxu0 %vm341_vm1, %v6525_v12  ;;  %7119 = vmatmul.mubr.msk.bf16.gmra.mxu1 %vm341_vm1, %v6429_v52  ;;  %v4433_v32 = vrot.slane %v4432_v17, 4  ;;  %v4449_v2 = vshll.u32 %v6404_v3, 16  ;;  %v8498_v12 = vsel %vm7398_vm6, %v5104_v57, %v5105_v60  ;;  %v8500_v4 = vadd.f32 %v1790_v0, %v1332_v11  ;;  %v1224_v52 = vpop.f32.mrf.mxu1 }
 0x127   : > { %7122 = vmatprep.mubr.msk.bf16.mxu1 %vm341_vm1, %v6430_v49  ;;  %v4428_v53 = vsel %vm7412_vm7, %v4423_v48, %v4427_v30  ;;  %v4453_v46 = vshrl.u32 %v6404_v3, 16  ;;  %v6528_v23 = vcombine.low %v8483_v8, %v8498_v12  ;;  %v8508_v62 = vadd.f32 %v6955_v28, %v1335_v37  ;;  %v6406_v30 = vld [vmem:[%s7339_s25 + $0x9c] sm:$0xf]  ;;  %v1793_v43 = vpop.f32.mrf.mxu0  ;;  %v6407_v3 = vld [vmem:[%s7339_s25 + $0xa0] sm:$0xf] }
 0x128   : > { %v4438_v51 = vsel %vm7412_vm7, %v4433_v32, %v4437_v16  ;;  %v1333_v7 = vadd.f32 %v1224_v52, %v8979_v34  ;;  %v4445_v58 = vrot.slane %v4443_v54, 5  ;;  %v4451_v18 = vrot.slane %v4449_v2, 5  ;;  %v6408_v28 = vld [vmem:[%s7339_s25 + $0xa4] sm:$0x1]  ;;  %v6487_v54 = vld [vmem:[%s7339_s25 + $0x9c] sm:$0xe] }
 0x129   : > { %v6431_v5 = vcombine.low %v4428_v53, %v4438_v51  ;;  %v4455_v22 = vrot.slane %v4453_v46, 4  ;;  %v4459_v56 = vshll.u32 %v6405_v13, 16  ;;  %v6512_v0 = vrot.slane %v6484_v59, 9  ;;  %v6924_v13 = vpop.f32.mrf.mxu1  ;;  %v6958_v45 = vpop.f32.mrf.mxu0  ;;  %v8980_v53 = vld [vmem:[#allocation4_spill] sm:$0xff] }
 0x12a   : > { %v8513_v60 = vadd.f32 %v1793_v43, %v1333_v7  ;;  %v5109_v16 = vrot.slane %v6485_v6, 5  ;;  %v4446_v31 = vor.u32 %v4445_v58, %v4442_v25  ;;  %v5112_v17 = vrot.slane %v6486_v10, 5 }
 0x12b   : > { %v4456_v49 = vor.u32 %v4455_v22, %v4451_v18  ;;  %v4464_v48 = vshrl.u32 %v6406_v30, 16  ;;  %v4461_v57 = vrot.slane %v4459_v56, 5  ;;  %v4467_v32 = vshll.u32 %v6406_v30, 16  ;;  %v1237_v7 = vpop.f32.mrf.mxu1  ;;  %v1806_v10 = vpop.f32.mrf.mxu0  ;;  %v6409_v22 = vld [vmem:[%s7339_s25 + $0xa8] sm:$0xf] }
 0x12c   : > { %v5110_v11 = vsel %vm7398_vm6, %v6512_v0, %v5109_v16  ;;  %v5111_v27 = vrot.slane %v5109_v16, 4  ;;  %v4447_v25 = vrot.slane %v4446_v31, 4  ;;  %v1338_v52 = vadd.f32 %v6924_v13, %v8980_v53  ;;  %v6410_v13 = vld [vmem:[%s7339_s25 + $0xac] sm:$0xf]  ;;  %v6411_v53 = vld [vmem:[%s7339_s25 + $0xb0] sm:$0x1] }
 0x12d   : > { %7153 = vmatmul.mubr.msk.bf16.gmra.mxu0 %vm341_vm1, %v6526_v38  ;;  %v4457_v37 = vrot.slane %v4456_v49, 4  ;;  %v4466_v24 = vrot.slane %v4464_v48, 4  ;;  %v4473_v38 = vshll.u32 %v6407_v3, 16  ;;  %v4469_v46 = vrot.slane %v4467_v32, 5  ;;  %v6925_v31 = vpop.f32.mrf.mxu1  ;;  %v8981_v48 = vld [vmem:[#allocation5_spill] sm:$0xff] }
 0x12e   : > { %7156 = vmatprep.mubr.msk.bf16.mxu0 %vm341_vm1, %v6527_v35  ;;  %7123 = vmatmul.mubr.msk.bf16.gmra.mxu1 %vm341_vm1, %v6431_v5  ;;  %v5113_v2 = vsel %vm7398_vm6, %v5111_v27, %v5112_v17  ;;  %v4477_v59 = vshrl.u32 %v6407_v3, 16  ;;  %v4452_v35 = vsel %vm7412_vm7, %v4447_v25, %v4451_v18  ;;  %v8538_v5 = vadd.f32 %v6958_v45, %v1338_v52  ;;  %v6959_v18 = vpop.f32.mrf.mxu0 }
 0x12f   : > { %v4462_v6 = vsel %vm7412_vm7, %v4457_v37, %v4461_v57  ;;  %v6529_v51 = vcombine.low %v5110_v11, %v5113_v2  ;;  %v4475_v34 = vrot.slane %v4473_v38, 5  ;;  %v4470_v43 = vor.u32 %v4469_v46, %v4466_v24  ;;  %v8982_v11 = vld [vmem:[#allocation6_spill] sm:$0xff]  ;;  %v8983_v46 = vld [vmem:[#allocation7_spill] sm:$0xff] }
 0x130   : > { %v6432_v30 = vcombine.low %v4452_v35, %v4462_v6  ;;  %v4479_v58 = vrot.slane %v4477_v59, 4  ;;  %v4483_v56 = vshll.u32 %v6408_v28, 16  ;;  %v6513_v0 = vrot.slane %v6487_v54, 9  ;;  %v1240_v28 = vpop.f32.mrf.mxu1  ;;  %v1809_v12 = vpop.f32.mrf.mxu0 }
 0x131   : > { %v5116_v16 = vrot.slane %v6488_v21, 5  ;;  %v5119_v3 = vrot.slane %v6489_v50, 5  ;;  %v4471_v49 = vrot.slane %v4470_v43, 4  ;;  %v1336_v57 = vadd.f32 %v1237_v7, %v8981_v48  ;;  %v6490_v21 = vld [vmem:[%s7339_s25 + $0xa8] sm:$0xe] }
 0x132   : > { %7126 = vmatprep.mubr.msk.bf16.mxu1 %vm341_vm1, %v6432_v30  ;;  %v4480_v17 = vor.u32 %v4479_v58, %v4475_v34  ;;  %v1339_v27 = vadd.f32 %v6925_v31, %v8982_v11  ;;  %v4485_v32 = vrot.slane %v4483_v56, 5  ;;  %v4488_v45 = vshrl.u32 %v6409_v22, 16  ;;  %v6491_v50 = vld [vmem:[%s7339_s25 + $0xac] sm:$0xf]  ;;  %v6412_v30 = vld [vmem:[%s7339_s25 + $0xb4] sm:$0xf]  ;;  %v6928_v48 = vpop.f32.mrf.mxu1 }
 0x133   : > { %v5117_v25 = vsel %vm7398_vm6, %v6513_v0, %v5116_v16  ;;  %v5118_v37 = vrot.slane %v5116_v16, 4  ;;  %v4476_v24 = vsel %vm7412_vm7, %v4471_v49, %v4475_v34  ;;  %v8553_v54 = vadd.f32 %v1806_v10, %v1336_v57  ;;  %v6492_v10 = vld [vmem:[%s7339_s25 + $0xb0] sm:$0x1]  ;;  %v6413_v31 = vld [vmem:[%s7339_s25 + $0xb8] sm:$0xf]  ;;  %v6962_v57 = vpop.f32.mrf.mxu0 }
 0x134   : > { %v4481_v38 = vrot.slane %v4480_v17, 4  ;;  %v8555_v2 = vadd.f32 %v6959_v18, %v1339_v27  ;;  %v1337_v8 = vadd.f32 %v1240_v28, %v8983_v46  ;;  %v4491_v59 = vshll.u32 %v6409_v22, 16  ;;  %v1253_v46 = vpop.f32.mrf.mxu1 }
 0x135   : > { %7157 = vmatmul.mubr.msk.bf16.gmra.mxu0 %vm341_vm1, %v6528_v23  ;;  %v5120_v52 = vsel %vm7398_vm6, %v5118_v37, %v5119_v3  ;;  %v4490_v23 = vrot.slane %v4488_v45, 4  ;;  %v4497_v34 = vshll.u32 %v6410_v13, 16  ;;  %v4501_v7 = vshrl.u32 %v6410_v13, 16  ;;  %v8984_v37 = vld [vmem:[#allocation8_spill] sm:$0xff]  ;;  %v6414_v13 = vld [vmem:[%s7339_s25 + $0xbc] sm:$0x1] }
 0x136   : > { %7160 = vmatprep.mubr.msk.bf16.mxu0 %vm341_vm1, %v6529_v51  ;;  %v4486_v35 = vsel %vm7412_vm7, %v4481_v38, %v4485_v32  ;;  %v6530_v6 = vcombine.low %v5117_v25, %v5120_v52  ;;  %v8568_v43 = vadd.f32 %v1809_v12, %v1337_v8  ;;  %v4493_v58 = vrot.slane %v4491_v59, 5  ;;  %v6493_v52 = vld [vmem:[%s7339_s25 + $0xb4] sm:$0xe]  ;;  %v1822_v8 = vpop.f32.mrf.mxu0 }
 0x137   : > { %v6433_v51 = vcombine.low %v4476_v24, %v4486_v35  ;;  %v4507_v56 = vshll.u32 %v6411_v53, 16  ;;  %v4499_v0 = vrot.slane %v4497_v34, 5  ;;  %v4503_v16 = vrot.slane %v4501_v7, 4  ;;  %v6495_v35 = vld [vmem:[%s7339_s25 + $0xbc] sm:$0x1] }
 0x138   : > { %v6514_v22 = vrot.slane %v6490_v21, 9  ;;  %v5123_v3 = vrot.slane %v6491_v50, 5  ;;  %v4494_v18 = vor.u32 %v4493_v58, %v4490_v23  ;;  %v5126_v17 = vrot.slane %v6492_v10, 5  ;;  %v6494_v50 = vld [vmem:[%s7339_s25 + $0xb8] sm:$0xf]  ;;  %v6963_v58 = vpop.f32.mrf.mxu0 }
 0x139   : > { %7127 = vmatmul.mubr.msk.bf16.gmra.mxu1 %vm341_vm1, %v6433_v51  ;;  %v4509_v49 = vrot.slane %v4507_v56, 5  ;;  %v4512_v11 = vshrl.u32 %v6412_v30, 16  ;;  %v4504_v27 = vor.u32 %v4503_v16, %v4499_v0  ;;  %v1342_v28 = vadd.f32 %v6928_v48, %v8984_v37  ;;  %v6929_v51 = vpop.f32.mrf.mxu1  ;;  %v6415_v48 = vld [vmem:[%s7339_s25 + $0xc0] sm:$0xf] }
 0x13a   : > { %v5124_v32 = vsel %vm7398_vm6, %v6514_v22, %v5123_v3  ;;  %v5125_v25 = vrot.slane %v5123_v3, 4  ;;  %v4495_v45 = vrot.slane %v4494_v18, 4  ;;  %v4515_v38 = vshll.u32 %v6412_v30, 16 }
 0x13b   : > { %v4514_v24 = vrot.slane %v4512_v11, 4  ;;  %v4521_v53 = vshll.u32 %v6413_v31, 16  ;;  %v4505_v12 = vrot.slane %v4504_v27, 4  ;;  %v8580_v59 = vadd.f32 %v6962_v57, %v1342_v28  ;;  %v8985_v27 = vld [vmem:[#allocation9_spill] sm:$0xff] }
 0x13c   : > { %v5127_v23 = vsel %vm7398_vm6, %v5125_v25, %v5126_v17  ;;  %v4525_v21 = vshrl.u32 %v6413_v31, 16  ;;  %v4500_v34 = vsel %vm7412_vm7, %v4495_v45, %v4499_v0  ;;  %v4517_v10 = vrot.slane %v4515_v38, 5  ;;  %v1256_v0 = vpop.f32.mrf.mxu1  ;;  %v8986_v25 = vld [vmem:[#allocation10_spill] sm:$0xff]  ;;  %v8987_v45 = vld [vmem:[#allocation11_spill] sm:$0xff]  ;;  %v1825_v38 = vpop.f32.mrf.mxu0 }
 0x13d   : > { %7161 = vmatmul.mubr.msk.bf16.gmra.mxu0 %vm341_vm1, %v6530_v6  ;;  %v6531_v7 = vcombine.low %v5124_v32, %v5127_v23  ;;  %v4523_v30 = vrot.slane %v4521_v53, 5  ;;  %v4510_v6 = vsel %vm7412_vm7, %v4505_v12, %v4509_v49  ;;  %v4531_v16 = vshll.u32 %v6414_v13, 16  ;;  %v6416_v53 = vld [vmem:[%s7339_s25 + $0xc4] sm:$0xf] }
 0x13e   : > { %v4527_v56 = vrot.slane %v4525_v21, 4  ;;  %v6515_v22 = vrot.slane %v6493_v52, 9  ;;  %v6434_v3 = vcombine.low %v4500_v34, %v4510_v6  ;;  %v4518_v31 = vor.u32 %v4517_v10, %v4514_v24  ;;  %v6498_v6 = vld [vmem:[%s7339_s25 + $0xc8] sm:$0x1] }
 0x13f   : > { %7164 = vmatprep.mubr.msk.bf16.mxu0 %vm341_vm1, %v6531_v7  ;;  %v5130_v18 = vrot.slane %v6494_v50, 5  ;;  %v5133_v17 = vrot.slane %v6495_v35, 5  ;;  %v4533_v11 = vrot.slane %v4531_v16, 5  ;;  %v1340_v32 = vadd.f32 %v1253_v46, %v8985_v27  ;;  %v6417_v46 = vld [vmem:[%s7339_s25 + $0xc8] sm:$0x1] }
 0x140   : > { %v4528_v57 = vor.u32 %v4527_v56, %v4523_v30  ;;  %v1343_v49 = vadd.f32 %v6929_v51, %v8986_v25  ;;  %7130 = vmatprep.mubr.msk.bf16.mxu1 %vm341_vm1, %v6434_v3  ;;  %v4519_v37 = vrot.slane %v4518_v31, 4  ;;  %v1341_v24 = vadd.f32 %v1256_v0, %v8987_v45  ;;  %v6496_v50 = vld [vmem:[%s7339_s25 + $0xc0] sm:$0xe]  ;;  %v6497_v51 = vld [vmem:[%s7339_s25 + $0xc4] sm:$0xf]  ;;  %v6966_v0 = vpop.f32.mrf.mxu0 }
 0x141   : > { %v5131_v28 = vsel %vm7398_vm6, %v6515_v22, %v5130_v18  ;;  %v5132_v13 = vrot.slane %v5130_v18, 4  ;;  %v8597_v12 = vadd.f32 %v1822_v8, %v1340_v32  ;;  %v4536_v21 = vshrl.u32 %v6415_v48, 16  ;;  %v6932_v18 = vpop.f32.mrf.mxu1  ;;  %v6419_v25 = vld [vmem:[%s7339_s25 + $0xd0] sm:$0xf] }
 0x142   : > { %v4529_v52 = vrot.slane %v4528_v57, 4  ;;  %v8599_v23 = vadd.f32 %v6963_v58, %v1343_v49  ;;  %v4524_v35 = vsel %vm7412_vm7, %v4519_v37, %v4523_v30  ;;  %v8607_v7 = vadd.f32 %v1825_v38, %v1341_v24  ;;  %v6418_v57 = vld [vmem:[%s7339_s25 + $0xcc] sm:$0xf]  ;;  %v1838_v24 = vpop.f32.mrf.mxu0 }
 0x143   : > { %v5134_v34 = vsel %vm7398_vm6, %v5132_v13, %v5133_v17  ;;  %v4539_v10 = vshll.u32 %v6415_v48, 16  ;;  %v4538_v56 = vrot.slane %v4536_v21, 4  ;;  %v4545_v16 = vshll.u32 %v6416_v53, 16  ;;  %v1269_v45 = vpop.f32.mrf.mxu1 }
 0x144   : > { %v4534_v8 = vsel %vm7412_vm7, %v4529_v52, %v4533_v11  ;;  %v6532_v58 = vcombine.low %v5131_v28, %v5134_v34  ;;  %v4549_v31 = vshrl.u32 %v6416_v53, 16  ;;  %v4555_v30 = vshll.u32 %v6417_v46, 16  ;;  %v8988_v28 = vld [vmem:[#allocation12_spill] sm:$0xff]  ;;  %v6420_v52 = vld [vmem:[%s7339_s25 + $0xd4] sm:$0x1] }
 0x145   : > { %v6435_v22 = vcombine.low %v4524_v35, %v4534_v8  ;;  %v4541_v3 = vrot.slane %v4539_v10, 5  ;;  %v4547_v17 = vrot.slane %v4545_v16, 5  ;;  %v6516_v48 = vrot.slane %v6496_v50, 9  ;;  %v6933_v8 = vpop.f32.mrf.mxu1 }
 0x146   : > { %7165 = vmatmul.mubr.msk.bf16.gmra.mxu0 %vm341_vm1, %v6532_v58  ;;  %v5137_v27 = vrot.slane %v6497_v51, 5  ;;  %v5140_v32 = vrot.slane %v6498_v6, 5  ;;  %v4551_v49 = vrot.slane %v4549_v31, 4  ;;  %v4557_v37 = vrot.slane %v4555_v30, 5  ;;  %v6499_v51 = vld [vmem:[%s7339_s25 + $0xcc] sm:$0xe]  ;;  %v6967_v58 = vpop.f32.mrf.mxu0 }
 0x147   : > { %7131 = vmatmul.mubr.msk.bf16.gmra.mxu1 %vm341_vm1, %v6435_v22  ;;  %v4542_v11 = vor.u32 %v4541_v3, %v4538_v56  ;;  %v1346_v13 = vadd.f32 %v6932_v18, %v8988_v28  ;;  %v4560_v46 = vshrl.u32 %v6418_v57, 16  ;;  %v4563_v21 = vshll.u32 %v6418_v57, 16  ;;  %v6500_v6 = vld [vmem:[%s7339_s25 + $0xd0] sm:$0xf]  ;;  %v6501_v31 = vld [vmem:[%s7339_s25 + $0xd4] sm:$0x1] }
 0x148   : > { %v5138_v38 = vsel %vm7398_vm6, %v6516_v48, %v5137_v27  ;;  %v5139_v53 = vrot.slane %v5137_v27, 4  ;;  %v4552_v35 = vor.u32 %v4551_v49, %v4547_v17  ;;  %v4569_v10 = vshll.u32 %v6419_v25, 16 }
 0x149   : > { %v4543_v50 = vrot.slane %v4542_v11, 4  ;;  %v8621_v34 = vadd.f32 %v6966_v0, %v1346_v13  ;;  %v4562_v16 = vrot.slane %v4560_v46, 4  ;;  %v4565_v22 = vrot.slane %v4563_v21, 5  ;;  %v1272_v0 = vpop.f32.mrf.mxu1  ;;  %v1841_v13 = vpop.f32.mrf.mxu0 }
 0x14a   : > { %v5141_v56 = vsel %vm7398_vm6, %v5139_v53, %v5140_v32  ;;  %v4573_v3 = vshrl.u32 %v6419_v25, 16  ;;  %v4553_v18 = vrot.slane %v4552_v35, 4  ;;  %v4571_v48 = vrot.slane %v4569_v10, 5  ;;  %v8990_v53 = vld [vmem:[#allocation13_spill] sm:$0xff] }
 0x14b   : > { %8989 = vst [vmem:[#allocation3_spill] sm:$0xff] %v8621_v34  ;;  %v4548_v30 = vsel %vm7412_vm7, %v4543_v50, %v4547_v17  ;;  %v6533_v57 = vcombine.low %v5138_v38, %v5141_v56  ;;  %v4566_v27 = vor.u32 %v4565_v22, %v4562_v16  ;;  %v4579_v49 = vshll.u32 %v6420_v52, 16  ;;  %v6972_v21 = vpop.f32.mrf.mxu1  ;;  %v8991_v56 = vld [vmem:[#allocation14_spill] sm:$0xff]  ;;  %v8992_v22 = vld [vmem:[#allocation15_spill] sm:$0xff] }
 0x14c   : > { %v4575_v11 = vrot.slane %v4573_v3, 4  ;;  %v6517_v28 = vrot.slane %v6499_v51, 9  ;;  %v4558_v34 = vsel %vm7412_vm7, %v4553_v18, %v4557_v37  ;;  %v5144_v32 = vrot.slane %v6500_v6, 5 }
 0x14d   : > { %7168 = vmatprep.mubr.msk.bf16.mxu0 %vm341_vm1, %v6533_v57  ;;  %v5147_v25 = vrot.slane %v6501_v31, 5  ;;  %v1344_v46 = vadd.f32 %v1269_v45, %v8990_v53  ;;  %v6436_v17 = vcombine.low %v4548_v30, %v4558_v34  ;;  %v4567_v50 = vrot.slane %v4566_v27, 4  ;;  %v2149_v37 = vpop.f32.mrf.mxu1  ;;  %v7006_v31 = vpop.f32.mrf.mxu0 }
 0x14e   : > { %v4576_v38 = vor.u32 %v4575_v11, %v4571_v48  ;;  %v4581_v35 = vrot.slane %v4579_v49, 5  ;;  %v5145_v10 = vsel %vm7398_vm6, %v6517_v28, %v5144_v32  ;;  %v5146_v52 = vrot.slane %v5144_v32, 4 }
 0x14f   : > { %v8636_v51 = vadd.f32 %v1838_v24, %v1344_v46  ;;  %v1347_v16 = vadd.f32 %v6933_v8, %v8991_v56  ;;  %7134 = vmatprep.mubr.msk.bf16.mxu1 %vm341_vm1, %v6436_v17  ;;  %v4572_v6 = vsel %vm7412_vm7, %v4567_v50, %v4571_v48  ;;  %v1345_v34 = vadd.f32 %v1272_v0, %v8992_v22  ;;  %v6973_v8 = vpop.f32.mrf.mxu1  ;;  %v2939_v0 = vpop.f32.mrf.mxu0 }
 0x150   : > { %v4577_v45 = vrot.slane %v4576_v38, 4  ;;  %v2310_v3 = vadd.f32 %v6972_v21, %v8243_v36  ;;  %v5148_v30 = vsel %vm7398_vm6, %v5146_v52, %v5147_v25  ;;  %v2308_v24 = vadd.f32 %v2149_v37, %v8252_v41 }
 0x151   : > { %v8646_v18 = vadd.f32 %v6967_v58, %v1347_v16  ;;  %v6534_v27 = vcombine.low %v5145_v10, %v5148_v30  ;;  %v8651_v11 = vadd.f32 %v1841_v13, %v1345_v34  ;;  %v2311_v42 = vadd.f32 %v6973_v8, %v8264_v63  ;;  %v2152_v28 = vpop.f32.mrf.mxu1  ;;  %v7007_v58 = vpop.f32.mrf.mxu0 }
 0x152   : > { %v4582_v57 = vsel %vm7412_vm7, %v4577_v45, %v4581_v35  ;;  %v8653_v48 = vadd.f32 %v7006_v31, %v2310_v3  ;;  %v8655_v36 = vadd.f32 %v2939_v0, %v2308_v24  ;;  %v2309_v41 = vadd.f32 %v2152_v28, %v8281_v29 }
 0x153   : > { %v6437_v49 = vcombine.low %v4572_v6, %v4582_v57  ;;  %7169 = vmatmul.mubr.msk.bf16.gmra.mxu0 %vm341_vm1, %v6534_v27  ;;  %v8661_v55 = vadd.f32 %v7007_v58, %v2311_v42  ;;  %v6976_v13 = vpop.f32.mrf.mxu1  ;;  %v2942_v32 = vpop.f32.mrf.mxu0 }
 0x154   : > { %v2314_v25 = vadd.f32 %v6976_v13, %v8289_v47  ;;  %v8664_v53 = vadd.f32 %v2942_v32, %v2309_v41 }
 0x155   : > { %7135 = vmatmul.mubr.msk.bf16.gmra.mxu1 %vm341_vm1, %v6437_v49  ;;  %v2165_v46 = vpop.f32.mrf.mxu1  ;;  %v7010_v21 = vpop.f32.mrf.mxu0 }
 0x156   : > { %v2312_v63 = vadd.f32 %v2165_v46, %v8300_v40  ;;  %v8667_v17 = vadd.f32 %v7010_v21, %v2314_v25 }
 0x157   : > { %v6977_v50 = vpop.f32.mrf.mxu1  ;;  %v2955_v38 = vpop.f32.mrf.mxu0 }
 0x158   : > { %v2315_v29 = vadd.f32 %v6977_v50, %v8311_v44  ;;  %v8670_v35 = vadd.f32 %v2955_v38, %v2312_v63 }
 0x159   : > { %v2168_v10 = vpop.f32.mrf.mxu1  ;;  %v7011_v52 = vpop.f32.mrf.mxu0 }
 0x15a   : > { %v2313_v56 = vadd.f32 %v2168_v10, %v8326_v33  ;;  %v8673_v16 = vadd.f32 %v7011_v52, %v2315_v29 }
 0x15b   : > { %v6980_v47 = vpop.f32.mrf.mxu1  ;;  %v2958_v37 = vpop.f32.mrf.mxu0 }
 0x15c   : > { %v2318_v6 = vadd.f32 %v6980_v47, %v8351_v61  ;;  %v8676_v45 = vadd.f32 %v2958_v37, %v2313_v56 }
 0x15d   : > { %v2181_v40 = vpop.f32.mrf.mxu1  ;;  %v7014_v3 = vpop.f32.mrf.mxu0 }
 0x15e   : > { %v2316_v22 = vadd.f32 %v2181_v40, %v8365_v14  ;;  %v8680_v31 = vadd.f32 %v7014_v3, %v2318_v6 }
 0x15f   : > { %v6981_v34 = vpop.f32.mrf.mxu1  ;;  %v2971_v24 = vpop.f32.mrf.mxu0 }
 0x160   : > { %v2319_v44 = vadd.f32 %v6981_v34, %v8371_v20  ;;  %v8683_v8 = vadd.f32 %v2971_v24, %v2316_v22 }
 0x161   : > { %v2184_v30 = vpop.f32.mrf.mxu1  ;;  %v7015_v27 = vpop.f32.mrf.mxu0 }
 0x162   : > { %v2317_v33 = vadd.f32 %v2184_v30, %v8386_v1  ;;  %v8686_v0 = vadd.f32 %v7015_v27, %v2319_v44 }
 0x163   : > { %v6984_v57 = vpop.f32.mrf.mxu1  ;;  %v2974_v14 = vpop.f32.mrf.mxu0 }
 0x164   : > { %v2322_v61 = vadd.f32 %v6984_v57, %v8416_v15  ;;  %v8689_v28 = vadd.f32 %v2974_v14, %v2317_v33 }
 0x165   : > { %v2197_v49 = vpop.f32.mrf.mxu1  ;;  %v7018_v58 = vpop.f32.mrf.mxu0 }
 0x166   : > { %v2320_v42 = vadd.f32 %v2197_v49, %v8429_v19  ;;  %v8692_v13 = vadd.f32 %v7018_v58, %v2322_v61 }
 0x167   : > { %v6985_v20 = vpop.f32.mrf.mxu1  ;;  %v2987_v32 = vpop.f32.mrf.mxu0 }
 0x168   : > { %v2323_v41 = vadd.f32 %v6985_v20, %v8440_v26  ;;  %v8695_v46 = vadd.f32 %v2987_v32, %v2320_v42 }
 0x169   : > { %v2200_v1 = vpop.f32.mrf.mxu1  ;;  %v7019_v21 = vpop.f32.mrf.mxu0 }
 0x16a   : > { %v2321_v25 = vadd.f32 %v2200_v1, %v8456_v9  ;;  %v8698_v50 = vadd.f32 %v7019_v21, %v2323_v41 }
 0x16b   : > { %v6988_v15 = vpop.f32.mrf.mxu1  ;;  %v2990_v38 = vpop.f32.mrf.mxu0 }
 0x16c   : > { %v2326_v63 = vadd.f32 %v6988_v15, %v8479_v39  ;;  %v8701_v10 = vadd.f32 %v2990_v38, %v2321_v25 }
 0x16d   : > { %v2213_v19 = vpop.f32.mrf.mxu1  ;;  %v7022_v52 = vpop.f32.mrf.mxu0 }
 0x16e   : > { %v2324_v29 = vadd.f32 %v2213_v19, %v8500_v4  ;;  %v8704_v47 = vadd.f32 %v7022_v52, %v2326_v63 }
 0x16f   : > { %v6989_v26 = vpop.f32.mrf.mxu1  ;;  %v3003_v37 = vpop.f32.mrf.mxu0 }
 0x170   : > { %v2327_v56 = vadd.f32 %v6989_v26, %v8508_v62  ;;  %v8707_v40 = vadd.f32 %v3003_v37, %v2324_v29 }
 0x171   : > { %v2216_v9 = vpop.f32.mrf.mxu1  ;;  %v7023_v22 = vpop.f32.mrf.mxu0 }
 0x172   : > { %v2325_v6 = vadd.f32 %v2216_v9, %v8513_v60  ;;  %v8710_v3 = vadd.f32 %v7023_v22, %v2327_v56 }
 0x173   : > { %v6992_v39 = vpop.f32.mrf.mxu1  ;;  %v3006_v44 = vpop.f32.mrf.mxu0 }
 0x174   : > { %v2330_v34 = vadd.f32 %v6992_v39, %v8538_v5  ;;  %v8713_v24 = vadd.f32 %v3006_v44, %v2325_v6 }
 0x175   : > { %v2229_v4 = vpop.f32.mrf.mxu1  ;;  %v7026_v33 = vpop.f32.mrf.mxu0 }
 0x176   : > { %v2328_v30 = vadd.f32 %v2229_v4, %v8553_v54  ;;  %v8716_v27 = vadd.f32 %v7026_v33, %v2330_v34 }
 0x177   : > { %v6993_v62 = vpop.f32.mrf.mxu1  ;;  %v3019_v61 = vpop.f32.mrf.mxu0 }
 0x178   : > { %v2331_v57 = vadd.f32 %v6993_v62, %v8555_v2  ;;  %v8719_v14 = vadd.f32 %v3019_v61, %v2328_v30 }
 0x179   : > { %v2232_v60 = vpop.f32.mrf.mxu1  ;;  %v7027_v42 = vpop.f32.mrf.mxu0 }
 0x17a   : > { %v2329_v49 = vadd.f32 %v2232_v60, %v8568_v43  ;;  %v8722_v58 = vadd.f32 %v7027_v42, %v2331_v57 }
 0x17b   : > { %v6996_v5 = vpop.f32.mrf.mxu1  ;;  %v3022_v41 = vpop.f32.mrf.mxu0 }
 0x17c   : > { %v2334_v20 = vadd.f32 %v6996_v5, %v8580_v59  ;;  %8993 = vst [vmem:[#allocation4_spill] sm:$0xff] %v8722_v58  ;;  %v8725_v32 = vadd.f32 %v3022_v41, %v2329_v49  ;;  %v8995_v59 = vld [vmem:[#allocation3_spill] sm:$0xff] }
 0x17d   : > { %v2245_v54 = vpop.f32.mrf.mxu1  ;;  %v7030_v21 = vpop.f32.mrf.mxu0 }
 0x17e   : > { %v2332_v1 = vadd.f32 %v2245_v54, %v8597_v12  ;;  %8994 = vst [vmem:[#allocation5_spill] sm:$0xff] %v8725_v32  ;;  %v8729_v63 = vadd.f32 %v7030_v21, %v2334_v20 }
 0x17f   : > { %v6997_v2 = vpop.f32.mrf.mxu1  ;;  %v3035_v38 = vpop.f32.mrf.mxu0 }
 0x180   : > { %v2335_v25 = vadd.f32 %v6997_v2, %v8599_v23  ;;  %v8732_v26 = vadd.f32 %v3035_v38, %v2332_v1 }
 0x181   : > { %v2248_v15 = vpop.f32.mrf.mxu1  ;;  %v7031_v56 = vpop.f32.mrf.mxu0 }
 0x182   : > { %v2333_v43 = vadd.f32 %v2248_v15, %v8607_v7  ;;  %v8735_v9 = vadd.f32 %v7031_v56, %v2335_v25 }
 0x183   : > { %v7000_v19 = vpop.f32.mrf.mxu1  ;;  %v3038_v23 = vpop.f32.mrf.mxu0 }
 0x184   : > { %v2338_v29 = vadd.f32 %v7000_v19, %v8995_v59  ;;  %v8738_v39 = vadd.f32 %v3038_v23, %v2333_v43 }
 0x185   : > { %v2261_v52 = vpop.f32.mrf.mxu1  ;;  %v7034_v22 = vpop.f32.mrf.mxu0 }
 0x186   : > { %v2336_v12 = vadd.f32 %v2261_v52, %v8636_v51  ;;  %v8741_v4 = vadd.f32 %v7034_v22, %v2338_v29 }
 0x187   : > { %v7001_v37 = vpop.f32.mrf.mxu1  ;;  %v3051_v30 = vpop.f32.mrf.mxu0 }
 0x188   : > { %v2339_v6 = vadd.f32 %v7001_v37, %v8646_v18  ;;  %v8744_v33 = vadd.f32 %v3051_v30, %v2336_v12 }
 0x189   : > { %v2264_v7 = vpop.f32.mrf.mxu1  ;;  %v7035_v57 = vpop.f32.mrf.mxu0 }
 0x18a   : > { %v2337_v34 = vadd.f32 %v2264_v7, %v8651_v11  ;;  %v8747_v61 = vadd.f32 %v7035_v57, %v2339_v6 }
 0x18b   : > { %v7040_v44 = vpop.f32.mrf.mxu1  ;;  %v3054_v49 = vpop.f32.mrf.mxu0 }
 0x18c   : > { %v3666_v62 = vadd.f32 %v7040_v44, %v8653_v48  ;;  %v8751_v5 = vadd.f32 %v3054_v49, %v2337_v34 }
 0x18d   : > { %v3505_v51 = vpop.f32.mrf.mxu1  ;;  %v7074_v42 = vpop.f32.mrf.mxu0 }
 0x18e   : > { %v3664_v60 = vadd.f32 %v3505_v51, %v8655_v36  ;;  %v8755_v20 = vadd.f32 %v7074_v42, %v3666_v62 }
 0x18f   : > { %v8749_v18 = vpop.f32.mrf.mxu1  ;;  %v3928_v54 = vpop.f32.mrf.mxu0 }
 0x190   : > { %v8757_v41 = vadd.f32 %v3928_v54, %v3664_v60 }
 0x191   : > { %v8753_v11 = vpop.f32.mrf.mxu1  ;;  %v8760_v2 = vpop.f32.mrf.mxu0 }
 0x193   : > { %v7044_v48 = vpop.f32.mrf.mxu1  ;;  %v8763_v15 = vpop.f32.mrf.mxu0 }
 0x194   : > { %v3670_v1 = vadd.f32 %v7044_v48, %v8667_v17 }
 0x195   : > { %v3521_v36 = vpop.f32.mrf.mxu1  ;;  %v7078_v43 = vpop.f32.mrf.mxu0 }
 0x196   : > { %v3668_v25 = vadd.f32 %v3521_v36, %v8670_v35  ;;  %v8769_v38 = vadd.f32 %v7078_v43, %v3670_v1 }
 0x197   : > { %v8765_v21 = vpop.f32.mrf.mxu1  ;;  %v3944_v59 = vpop.f32.mrf.mxu0 }
 0x198   : > { %v8771_v52 = vadd.f32 %v3944_v59, %v3668_v25 }
 0x199   : > { %v8767_v19 = vpop.f32.mrf.mxu1  ;;  %v8774_v56 = vpop.f32.mrf.mxu0 }
 0x19b   : > { %v7048_v29 = vpop.f32.mrf.mxu1  ;;  %v8777_v37 = vpop.f32.mrf.mxu0 }
 0x19c   : > { %v3674_v17 = vadd.f32 %v7048_v29, %v8680_v31 }
 0x19d   : > { %v3537_v12 = vpop.f32.mrf.mxu1  ;;  %v7082_v6 = vpop.f32.mrf.mxu0 }
 0x19e   : > { %v3672_v35 = vadd.f32 %v3537_v12, %v8683_v8  ;;  %v8783_v22 = vadd.f32 %v7082_v6, %v3674_v17 }
 0x19f   : > { %v8779_v23 = vpop.f32.mrf.mxu1  ;;  %v3960_v34 = vpop.f32.mrf.mxu0 }
 0x1a0   : > { %v8785_v30 = vadd.f32 %v3960_v34, %v3672_v35 }
 0x1a1   : > { %v8781_v7 = vpop.f32.mrf.mxu1  ;;  %v8788_v62 = vpop.f32.mrf.mxu0 }
 0x1a3   : > { %v7052_v44 = vpop.f32.mrf.mxu1  ;;  %v8791_v57 = vpop.f32.mrf.mxu0 }
 0x1a4   : > { %v3678_v31 = vadd.f32 %v7052_v44, %v8692_v13 }
 0x1a5   : > { %v3553_v51 = vpop.f32.mrf.mxu1  ;;  %v7086_v49 = vpop.f32.mrf.mxu0 }
 0x1a6   : > { %v3676_v8 = vadd.f32 %v3553_v51, %v8695_v46  ;;  %v8797_v54 = vadd.f32 %v7086_v49, %v3678_v31 }
 0x1a7   : > { %v8793_v60 = vpop.f32.mrf.mxu1  ;;  %v3976_v48 = vpop.f32.mrf.mxu0 }
 0x1a8   : > { %v8799_v36 = vadd.f32 %v3976_v48, %v3676_v8 }
 0x1a9   : > { %v8795_v42 = vpop.f32.mrf.mxu1  ;;  %v8802_v25 = vpop.f32.mrf.mxu0 }
 0x1ab   : > { %v7056_v1 = vpop.f32.mrf.mxu1  ;;  %v8805_v59 = vpop.f32.mrf.mxu0 }
 0x1ac   : > { %v3682_v13 = vadd.f32 %v7056_v1, %v8704_v47 }
 0x1ad   : > { %v3569_v43 = vpop.f32.mrf.mxu1  ;;  %v7090_v17 = vpop.f32.mrf.mxu0 }
 0x1ae   : > { %v3680_v46 = vadd.f32 %v3569_v43, %v8707_v40  ;;  %v8811_v35 = vadd.f32 %v7090_v17, %v3682_v13 }
 0x1af   : > { %v8807_v29 = vpop.f32.mrf.mxu1  ;;  %v3992_v6 = vpop.f32.mrf.mxu0 }
 0x1b0   : > { %v8813_v44 = vadd.f32 %v3992_v6, %v3680_v46 }
 0x1b1   : > { %v8809_v12 = vpop.f32.mrf.mxu1  ;;  %v8816_v31 = vpop.f32.mrf.mxu0 }
 0x1b3   : > { %v7060_v34 = vpop.f32.mrf.mxu1  ;;  %v8819_v8 = vpop.f32.mrf.mxu0 }
 0x1b4   : > { %v3686_v47 = vadd.f32 %v7060_v34, %v8716_v27 }
 0x1b5   : > { %v3585_v51 = vpop.f32.mrf.mxu1  ;;  %v7094_v48 = vpop.f32.mrf.mxu0 }
 0x1b6   : > { %v3684_v40 = vadd.f32 %v3585_v51, %v8719_v14  ;;  %v8825_v13 = vadd.f32 %v7094_v48, %v3686_v47 }
 0x1b7   : > { %v8821_v49 = vpop.f32.mrf.mxu1  ;;  %v4008_v43 = vpop.f32.mrf.mxu0 }
 0x1b8   : > { %8996 = vst [vmem:[#allocation6_spill] sm:$0xff] %v8821_v49  ;;  %8998 = vst [vmem:[#allocation8_spill] sm:$0xff] %v8825_v13  ;;  %v8827_v46 = vadd.f32 %v4008_v43, %v3684_v40 }
 0x1b9   : > { %v8823_v1 = vpop.f32.mrf.mxu1  ;;  %v8830_v6 = vpop.f32.mrf.mxu0 }
 0x1ba   : > { %8997 = vst [vmem:[#allocation7_spill] sm:$0xff] %v8823_v1  ;;  %8999 = vst [vmem:[#allocation9_spill] sm:$0xff] %v8827_v46 }
 0x1bb   : > { %v8833_v51 = vpop.f32.mrf.mxu0 }
 0x1bc   : > { %9000 = vst [vmem:[#allocation10_spill] sm:$0xff] %v8833_v51 }
 0x1bd   : > { %v7098_v58 = vpop.f32.mrf.mxu0 }
 0x1be   : > { %v7064_v17 = vpop.f32.mrf.mxu1 }
 0x1bf   : > { %v3690_v27 = vadd.f32 %v7064_v17, %v8729_v63  ;;  %v4024_v40 = vpop.f32.mrf.mxu0 }
 0x1c0   : > { %v3601_v34 = vpop.f32.mrf.mxu1 }
 0x1c1   : > { %v3688_v14 = vadd.f32 %v3601_v34, %v8732_v26  ;;  %v8836_v47 = vadd.f32 %v7098_v58, %v3690_v27  ;;  %v7099_v17 = vpop.f32.mrf.mxu0 }
 0x1c2   : > { %v7065_v32 = vpop.f32.mrf.mxu1 }
 0x1c3   : > { %v3691_v49 = vadd.f32 %v7065_v32, %v8735_v9  ;;  %v8839_v13 = vadd.f32 %v4024_v40, %v3688_v14  ;;  %v4027_v51 = vpop.f32.mrf.mxu0 }
 0x1c4   : > { %v3604_v1 = vpop.f32.mrf.mxu1 }
 0x1c5   : > { %v3689_v48 = vadd.f32 %v3604_v1, %v8738_v39  ;;  %v8842_v26 = vadd.f32 %v7099_v17, %v3691_v49  ;;  %v7102_v27 = vpop.f32.mrf.mxu0  ;;  %v3667_v49 = vadd.f32 %v8749_v18, %v8661_v55 }
 0x1c6   : > { %v7068_v43 = vpop.f32.mrf.mxu1 }
 0x1c7   : > { %v3694_v63 = vadd.f32 %v7068_v43, %v8741_v4  ;;  %v8845_v9 = vadd.f32 %v4027_v51, %v3689_v48  ;;  %v4040_v40 = vpop.f32.mrf.mxu0  ;;  %v3665_v51 = vadd.f32 %v8753_v11, %v8664_v53  ;;  %v4090_v17 = vadd.f32 %v8760_v2, %v3667_v49 }
 0x1c8   : > { %v3617_v46 = vpop.f32.mrf.mxu1  ;;  %v3671_v53 = vadd.f32 %v8765_v21, %v8673_v16 }
 0x1c9   : > { %v3692_v34 = vadd.f32 %v3617_v46, %v8744_v33  ;;  %v8848_v1 = vadd.f32 %v7102_v27, %v3694_v63  ;;  %v7103_v33 = vpop.f32.mrf.mxu0  ;;  %v4088_v18 = vadd.f32 %v8763_v15, %v3665_v51 }
 0x1ca   : > { %v7069_v32 = vpop.f32.mrf.mxu1  ;;  %v4094_v16 = vadd.f32 %v8774_v56, %v3671_v53  ;;  %v3675_v56 = vadd.f32 %v8779_v23, %v8686_v0 }
 0x1cb   : > { %v3695_v58 = vadd.f32 %v7069_v32, %v8747_v61  ;;  %v8853_v43 = vadd.f32 %v4040_v40, %v3692_v34  ;;  %v4043_v48 = vpop.f32.mrf.mxu0 }
 0x1cc   : > { %v3620_v39 = vpop.f32.mrf.mxu1  ;;  %v4098_v0 = vadd.f32 %v8788_v62, %v3675_v56 }
 0x1cd   : > { %v3693_v14 = vadd.f32 %v3620_v39, %v8751_v5  ;;  %9001 = vst [vmem:[#allocation11_spill] sm:$0xff] %v8853_v43  ;;  %v8857_v61 = vadd.f32 %v7103_v33, %v3695_v58 }
 0x1ce   : > { %v7108_v4 = vpop.f32.mrf.mxu1 }
 0x1cf   : > { %v8860_v5 = vadd.f32 %v4043_v48, %v3693_v14  ;;  %v4879_v34 = vadd.f32 %v7108_v4, %v8755_v20 }
 0x1d0   : > { %v4718_v46 = vpop.f32.mrf.mxu1 }
 0x1d1   : > { %v4877_v27 = vadd.f32 %v4718_v46, %v8757_v41  ;;  %v3669_v41 = vadd.f32 %v8767_v19, %v8676_v45 }
 0x1d2   : > { %v7109_v63 = vpop.f32.mrf.mxu1 }
 0x1d3   : > { %v4880_v39 = vadd.f32 %v7109_v63, %v4090_v17 }
 0x1d4   : > { %v4721_v55 = vpop.f32.mrf.mxu1 }
 0x1d5   : > { %v7142_v32 = vpop.f32.mrf.mxu0  ;;  %v4878_v11 = vadd.f32 %v4721_v55, %v4088_v18  ;;  %v4092_v55 = vadd.f32 %v8777_v37, %v3669_v41 }
 0x1d6   : > { %v7112_v43 = vpop.f32.mrf.mxu1  ;;  %v5445_v49 = vadd.f32 %v7142_v32, %v4879_v34 }
 0x1d7   : > { %v5284_v40 = vpop.f32.mrf.mxu0  ;;  %v4883_v48 = vadd.f32 %v7112_v43, %v8769_v38  ;;  %v3673_v38 = vadd.f32 %v8781_v7, %v8689_v28 }
 0x1d8   : > { %v5443_v58 = vadd.f32 %v5284_v40, %v4877_v27  ;;  %v4734_v14 = vpop.f32.mrf.mxu1 }
 0x1d9   : > { %v7143_v2 = vpop.f32.mrf.mxu0  ;;  %v4881_v46 = vadd.f32 %v4734_v14, %v8771_v52 }
 0x1da   : > { %v5446_v33 = vadd.f32 %v7143_v2, %v4880_v39  ;;  %v7113_v15 = vpop.f32.mrf.mxu1  ;;  %v5737_v51 = vmul.f32 %v5443_v58, %v5443_v58  ;;  %v5739_v39 = vmul.f32 %v5445_v49, %v5445_v49 }
 0x1db   : > { %v5287_v20 = vpop.f32.mrf.mxu0  ;;  %v4884_v27 = vadd.f32 %v7113_v15, %v4094_v16 }
 0x1dc   : > { %v6626_v21 = vpack.c.bf16 %v5446_v33, %v5445_v49  ;;  %v5444_v4 = vadd.f32 %v5287_v20, %v4878_v11  ;;  %v4737_v45 = vpop.f32.mrf.mxu1  ;;  %v5740_v43 = vmul.f32 %v5446_v33, %v5446_v33 }
 0x1dd   : > { %v7146_v63 = vpop.f32.mrf.mxu0 }
 0x1de   : > { %6698 = vst [vmem:[%s8873_s18 + $0x8] sm:$0xff] %v6626_v21   ;;  %v6621_v19 = vpack.c.bf16 %v5444_v4, %v5443_v58  ;;  %v5699_v17 = vadd.f32 %v5444_v4, %v5443_v58  ;;  %v5738_v32 = vmul.f32 %v5444_v4, %v5444_v4  ;;  %v7116_v34 = vpop.f32.mrf.mxu1  ;;  %v4882_v58 = vadd.f32 %v4737_v45, %v4092_v55 }
 0x1df   : > { %v5300_v18 = vpop.f32.mrf.mxu0  ;;  %v5449_v20 = vadd.f32 %v7146_v63, %v4883_v48  ;;  %v4096_v45 = vadd.f32 %v8791_v57, %v3673_v38  ;;  %v3679_v55 = vadd.f32 %v8793_v60, %v8698_v50 }
 0x1e0   : > { %6622 = vst [vmem:[%s8873_s18] sm:$0xff] %v6621_v19   ;;  %v5700_v52 = vadd.f32 %v5699_v17, %v5445_v49  ;;  %v5769_v40 = vadd.f32 %v5738_v32, %v5737_v51  ;;  %v5447_v53 = vadd.f32 %v5300_v18, %v4881_v46  ;;  %v4750_v2 = vpop.f32.mrf.mxu1 }
 0x1e1   : > { %v7147_v11 = vpop.f32.mrf.mxu0  ;;  %v4885_v28 = vadd.f32 %v4750_v2, %v8785_v30  ;;  %v3677_v30 = vadd.f32 %v8795_v42, %v8701_v10  ;;  %v5743_v18 = vmul.f32 %v5449_v20, %v5449_v20  ;;  %v4102_v50 = vadd.f32 %v8802_v25, %v3679_v55 }
 0x1e2   : > { %v5770_v14 = vadd.f32 %v5769_v40, %v5739_v39  ;;  %v5701_v37 = vadd.f32 %v5700_v52, %v5446_v33  ;;  %v5450_v41 = vadd.f32 %v7147_v11, %v4884_v27  ;;  %v7117_v15 = vpop.f32.mrf.mxu1  ;;  %v5741_v49 = vmul.f32 %v5447_v53, %v5447_v53 }
 0x1e3   : > { %v5303_v23 = vpop.f32.mrf.mxu0  ;;  %v4887_v33 = vadd.f32 %v7116_v34, %v8783_v22  ;;  %v4888_v63 = vadd.f32 %v7117_v15, %v4098_v0  ;;  %v4100_v10 = vadd.f32 %v8805_v59, %v3677_v30 }
 0x1e4   : > { %v5702_v16 = vadd.f32 %v5701_v37, %v5447_v53  ;;  %v5771_v21 = vadd.f32 %v5770_v14, %v5740_v43  ;;  %v6636_v4 = vpack.c.bf16 %v5450_v41, %v5449_v20  ;;  %v5448_v46 = vadd.f32 %v5303_v23, %v4882_v58  ;;  %v4753_v7 = vpop.f32.mrf.mxu1 }
 0x1e5   : > { %v7150_v51 = vpop.f32.mrf.mxu0  ;;  %v4886_v56 = vadd.f32 %v4753_v7, %v4096_v45  ;;  %v5744_v38 = vmul.f32 %v5450_v41, %v5450_v41 }
 0x1e6   : > { %v5772_v48 = vadd.f32 %v5771_v21, %v5741_v49  ;;  %6700 = vst [vmem:[%s8873_s18 + $0x18] sm:$0xff] %v6636_v4   ;;  %v6631_v62 = vpack.c.bf16 %v5448_v46, %v5447_v53  ;;  %v5703_v19 = vadd.f32 %v5702_v16, %v5448_v46  ;;  %v5742_v17 = vmul.f32 %v5448_v46, %v5448_v46  ;;  %v7120_v27 = vpop.f32.mrf.mxu1 }
 0x1e7   : > { %v5316_v32 = vpop.f32.mrf.mxu0  ;;  %v5453_v34 = vadd.f32 %v7150_v51, %v4887_v33  ;;  %v3683_v51 = vadd.f32 %v8807_v29, %v8710_v3 }
 0x1e8   : > { %6699 = vst [vmem:[%s8873_s18 + $0x10] sm:$0xff] %v6631_v62   ;;  %v5704_v57 = vadd.f32 %v5703_v19, %v5449_v20  ;;  %v5773_v39 = vadd.f32 %v5772_v48, %v5742_v17  ;;  %v5451_v52 = vadd.f32 %v5316_v32, %v4885_v28  ;;  %v4766_v22 = vpop.f32.mrf.mxu1  ;;  %v3681_v28 = vadd.f32 %v8809_v12, %v8713_v24 }
 0x1e9   : > { %v7151_v40 = vpop.f32.mrf.mxu0  ;;  %v4889_v23 = vadd.f32 %v4766_v22, %v8799_v36  ;;  %v5747_v36 = vmul.f32 %v5453_v34, %v5453_v34  ;;  %v4106_v3 = vadd.f32 %v8816_v31, %v3683_v51 }
 0x1ea   : > { %v5454_v53 = vadd.f32 %v7151_v40, %v4888_v63  ;;  %v5774_v43 = vadd.f32 %v5773_v39, %v5743_v18  ;;  %v5705_v11 = vadd.f32 %v5704_v57, %v5450_v41  ;;  %v7121_v2 = vpop.f32.mrf.mxu1  ;;  %v5745_v20 = vmul.f32 %v5451_v52, %v5451_v52 }
 0x1eb   : > { %v5319_v58 = vpop.f32.mrf.mxu0  ;;  %v4891_v41 = vadd.f32 %v7120_v27, %v8797_v54  ;;  %v4892_v21 = vadd.f32 %v7121_v2, %v4102_v50  ;;  %v4104_v24 = vadd.f32 %v8819_v8, %v3681_v28  ;;  %v9002_v8 = vld [vmem:[#allocation4_spill] sm:$0xff] }
 0x1ec   : > { %v6646_v60 = vpack.c.bf16 %v5454_v53, %v5453_v34  ;;  %v5452_v42 = vadd.f32 %v5319_v58, %v4886_v56  ;;  %v5706_v14 = vadd.f32 %v5705_v11, %v5451_v52  ;;  %v5775_v37 = vadd.f32 %v5774_v43, %v5744_v38  ;;  %v4769_v15 = vpop.f32.mrf.mxu1  ;;  %v9003_v58 = vld [vmem:[#allocation6_spill] sm:$0xff] }
 0x1ed   : > { %v7154_v0 = vpop.f32.mrf.mxu0  ;;  %v4890_v7 = vadd.f32 %v4769_v15, %v4100_v10  ;;  %v5748_v17 = vmul.f32 %v5454_v53, %v5454_v53  ;;  %v3687_v2 = vadd.f32 %v9003_v58, %v9002_v8 }
 0x1ee   : > { %6702 = vst [vmem:[%s8873_s18 + $0x28] sm:$0xff] %v6646_v60   ;;  %v6641_v16 = vpack.c.bf16 %v5452_v42, %v5451_v52  ;;  %v5746_v49 = vmul.f32 %v5452_v42, %v5452_v42  ;;  %v5776_v4 = vadd.f32 %v5775_v37, %v5745_v20  ;;  %v5707_v25 = vadd.f32 %v5706_v14, %v5452_v42  ;;  %v7124_v59 = vpop.f32.mrf.mxu1 }
 0x1ef   : > { %v5332_v46 = vpop.f32.mrf.mxu0  ;;  %v5457_v54 = vadd.f32 %v7154_v0, %v4891_v41 }
 0x1f0   : > { %6701 = vst [vmem:[%s8873_s18 + $0x20] sm:$0xff] %v6641_v16   ;;  %v5708_v45 = vadd.f32 %v5707_v25, %v5453_v34  ;;  %v5777_v48 = vadd.f32 %v5776_v4, %v5746_v49  ;;  %v5455_v33 = vadd.f32 %v5332_v46, %v4889_v23  ;;  %v4782_v62 = vpop.f32.mrf.mxu1  ;;  %v9004_v23 = vld [vmem:[#allocation5_spill] sm:$0xff]  ;;  %v4110_v4 = vadd.f32 %v8830_v6, %v3687_v2 }
 0x1f1   : > { %v7155_v63 = vpop.f32.mrf.mxu0  ;;  %v4893_v52 = vadd.f32 %v4782_v62, %v8813_v44  ;;  %v5751_v10 = vmul.f32 %v5457_v54, %v5457_v54  ;;  %v9007_v62 = vld [vmem:[#allocation8_spill] sm:$0xff] }
 0x1f2   : > { %v5458_v19 = vadd.f32 %v7155_v63, %v4892_v21  ;;  %v5778_v32 = vadd.f32 %v5777_v48, %v5747_v36  ;;  %v5709_v27 = vadd.f32 %v5708_v45, %v5454_v53  ;;  %v7125_v30 = vpop.f32.mrf.mxu1  ;;  %v5749_v18 = vmul.f32 %v5455_v33, %v5455_v33  ;;  %v9006_v45 = vld [vmem:[#allocation9_spill] sm:$0xff] }
 0x1f3   : > { %v5335_v55 = vpop.f32.mrf.mxu0  ;;  %v4895_v53 = vadd.f32 %v7124_v59, %v8811_v35  ;;  %v4896_v38 = vadd.f32 %v7125_v30, %v4106_v3  ;;  %v9005_v35 = vld [vmem:[#allocation7_spill] sm:$0xff] }
 0x1f4   : > { %v6656_v29 = vpack.c.bf16 %v5458_v19, %v5457_v54  ;;  %v5456_v12 = vadd.f32 %v5335_v55, %v4890_v7  ;;  %v5710_v56 = vadd.f32 %v5709_v27, %v5455_v33  ;;  %v5779_v57 = vadd.f32 %v5778_v32, %v5748_v17  ;;  %v4785_v40 = vpop.f32.mrf.mxu1 }
 0x1f5   : > { %v7158_v39 = vpop.f32.mrf.mxu0  ;;  %v4894_v50 = vadd.f32 %v4785_v40, %v4104_v24  ;;  %v3685_v15 = vadd.f32 %v9005_v35, %v9004_v23  ;;  %v5752_v16 = vmul.f32 %v5458_v19, %v5458_v19 }
 0x1f6   : > { %6704 = vst [vmem:[%s8873_s18 + $0x38] sm:$0xff] %v6656_v29   ;;  %v6651_v22 = vpack.c.bf16 %v5456_v12, %v5455_v33  ;;  %v5750_v34 = vmul.f32 %v5456_v12, %v5456_v12  ;;  %v5780_v43 = vadd.f32 %v5779_v57, %v5749_v18  ;;  %v5711_v31 = vadd.f32 %v5710_v56, %v5456_v12 }
 0x1f7   : > { %v5348_v11 = vpop.f32.mrf.mxu0  ;;  %v5461_v20 = vadd.f32 %v7158_v39, %v4895_v53 }
 0x1f8   : > { %6703 = vst [vmem:[%s8873_s18 + $0x30] sm:$0xff] %v6651_v22   ;;  %v5712_v60 = vadd.f32 %v5711_v31, %v5457_v54  ;;  %v5781_v42 = vadd.f32 %v5780_v43, %v5750_v34  ;;  %v5459_v14 = vadd.f32 %v5348_v11, %v4893_v52 }
 0x1f9   : > { %v7159_v44 = vpop.f32.mrf.mxu0  ;;  %v7128_v0 = vpop.f32.mrf.mxu1  ;;  %v5755_v3 = vmul.f32 %v5461_v20, %v5461_v20 }
 0x1fa   : > { %v5462_v37 = vadd.f32 %v7159_v44, %v4896_v38  ;;  %v5782_v49 = vadd.f32 %v5781_v42, %v5751_v10  ;;  %v5713_v41 = vadd.f32 %v5712_v60, %v5458_v19  ;;  %v5753_v28 = vmul.f32 %v5459_v14, %v5459_v14  ;;  %v9008_v19 = vld [vmem:[#allocation10_spill] sm:$0xff] }
 0x1fb   : > { %v5351_v21 = vpop.f32.mrf.mxu0  ;;  %v4798_v59 = vpop.f32.mrf.mxu1  ;;  %v4899_v54 = vadd.f32 %v7128_v0, %v9007_v62  ;;  %v4108_v32 = vadd.f32 %v9008_v19, %v3685_v15 }
 0x1fc   : > { %v6666_v25 = vpack.c.bf16 %v5462_v37, %v5461_v20  ;;  %v5460_v46 = vadd.f32 %v5351_v21, %v4894_v50  ;;  %v5714_v51 = vadd.f32 %v5713_v41, %v5459_v14  ;;  %v5783_v7 = vadd.f32 %v5782_v49, %v5752_v16 }
 0x1fd   : > { %v7162_v36 = vpop.f32.mrf.mxu0  ;;  %v4897_v48 = vadd.f32 %v4798_v59, %v9006_v45  ;;  %v7129_v17 = vpop.f32.mrf.mxu1  ;;  %v5756_v40 = vmul.f32 %v5462_v37, %v5462_v37 }
 0x1fe   : > { %6706 = vst [vmem:[%s8873_s18 + $0x48] sm:$0xff] %v6666_v25   ;;  %v6661_v33 = vpack.c.bf16 %v5460_v46, %v5459_v14  ;;  %v5754_v63 = vmul.f32 %v5460_v46, %v5460_v46  ;;  %v5784_v27 = vadd.f32 %v5783_v7, %v5753_v28  ;;  %v5715_v6 = vadd.f32 %v5714_v51, %v5460_v46 }
 0x1ff   : > { %v5364_v55 = vpop.f32.mrf.mxu0  ;;  %v4900_v30 = vadd.f32 %v7129_v17, %v4110_v4  ;;  %v4801_v24 = vpop.f32.mrf.mxu1  ;;  %v5465_v39 = vadd.f32 %v7162_v36, %v4899_v54 }
 0x200   : > { %6705 = vst [vmem:[%s8873_s18 + $0x40] sm:$0xff] %v6661_v33   ;;  %v5716_v29 = vadd.f32 %v5715_v6, %v5461_v20  ;;  %v5785_v12 = vadd.f32 %v5784_v27, %v5754_v63  ;;  %v5463_v56 = vadd.f32 %v5364_v55, %v4897_v48  ;;  %v4898_v57 = vadd.f32 %v4801_v24, %v4108_v32 }
 0x201   : > { %v7163_v18 = vpop.f32.mrf.mxu0  ;;  %v5759_v14 = vmul.f32 %v5465_v39, %v5465_v39 }
 0x202   : > { %v5466_v52 = vadd.f32 %v7163_v18, %v4900_v30  ;;  %v5786_v22 = vadd.f32 %v5785_v12, %v5755_v3  ;;  %v5717_v34 = vadd.f32 %v5716_v29, %v5462_v37  ;;  %v5757_v11 = vmul.f32 %v5463_v56, %v5463_v56  ;;  %v9009_v29 = vld [vmem:[#allocation11_spill] sm:$0xff] }
 0x203   : > { %v5367_v53 = vpop.f32.mrf.mxu0 }
 0x204   : > { %v6676_v38 = vpack.c.bf16 %v5466_v52, %v5465_v39  ;;  %v5464_v43 = vadd.f32 %v5367_v53, %v4898_v57  ;;  %v5718_v31 = vadd.f32 %v5717_v34, %v5463_v56  ;;  %v5787_v8 = vadd.f32 %v5786_v22, %v5756_v40 }
 0x205   : > { %v5760_v35 = vmul.f32 %v5466_v52, %v5466_v52 }
 0x206   : > { %6708 = vst [vmem:[%s8873_s18 + $0x58] sm:$0xff] %v6676_v38   ;;  %v6671_v58 = vpack.c.bf16 %v5464_v43, %v5463_v56  ;;  %v5758_v2 = vmul.f32 %v5464_v43, %v5464_v43  ;;  %v5788_v50 = vadd.f32 %v5787_v8, %v5757_v11  ;;  %v5719_v10 = vadd.f32 %v5718_v31, %v5464_v43  ;;  %v7166_v60 = vpop.f32.mrf.mxu0 }
 0x207   : > { %v7132_v42 = vpop.f32.mrf.mxu1 }
 0x208   : > { %6707 = vst [vmem:[%s8873_s18 + $0x50] sm:$0xff] %v6671_v58   ;;  %v5720_v44 = vadd.f32 %v5719_v10, %v5465_v39  ;;  %v5789_v20 = vadd.f32 %v5788_v50, %v5758_v2  ;;  %v5380_v0 = vpop.f32.mrf.mxu0  ;;  %v4903_v37 = vadd.f32 %v7132_v42, %v8836_v47 }
 0x209   : > { %v4814_v23 = vpop.f32.mrf.mxu1 }
 0x20a   : > { %v5790_v15 = vadd.f32 %v5789_v20, %v5759_v14  ;;  %v4901_v16 = vadd.f32 %v4814_v23, %v8839_v13  ;;  %v5721_v49 = vadd.f32 %v5720_v44, %v5466_v52  ;;  %v7167_v21 = vpop.f32.mrf.mxu0  ;;  %v5469_v59 = vadd.f32 %v7166_v60, %v4903_v37 }
 0x20b   : > { %v7133_v41 = vpop.f32.mrf.mxu1 }
 0x20c   : > { %v5467_v4 = vadd.f32 %v5380_v0, %v4901_v16  ;;  %v5791_v25 = vadd.f32 %v5790_v15, %v5760_v35  ;;  %v4904_v46 = vadd.f32 %v7133_v41, %v8842_v26  ;;  %v5383_v45 = vpop.f32.mrf.mxu0  ;;  %v5763_v17 = vmul.f32 %v5469_v59, %v5469_v59 }
 0x20d   : > { %v4817_v51 = vpop.f32.mrf.mxu1 }
 0x20e   : > { %v5722_v28 = vadd.f32 %v5721_v49, %v5467_v4  ;;  %v5761_v7 = vmul.f32 %v5467_v4, %v5467_v4  ;;  %v5470_v36 = vadd.f32 %v7167_v21, %v4904_v46  ;;  %v4902_v47 = vadd.f32 %v4817_v51, %v8845_v9 }
 0x210   : > { %v5792_v48 = vadd.f32 %v5791_v25, %v5761_v7  ;;  %v6686_v33 = vpack.c.bf16 %v5470_v36, %v5469_v59  ;;  %v5468_v13 = vadd.f32 %v5383_v45, %v4902_v47  ;;  %v5764_v6 = vmul.f32 %v5470_v36, %v5470_v36 }
 0x212   : > { %6710 = vst [vmem:[%s8873_s18 + $0x68] sm:$0xff] %v6686_v33   ;;  %v6681_v63 = vpack.c.bf16 %v5468_v13, %v5467_v4  ;;  %v5723_v62 = vadd.f32 %v5722_v28, %v5468_v13  ;;  %v5762_v54 = vmul.f32 %v5468_v13, %v5468_v13 }
 0x213   : > { %v7170_v32 = vpop.f32.mrf.mxu0 }
 0x214   : > { %6709 = vst [vmem:[%s8873_s18 + $0x60] sm:$0xff] %v6681_v63   ;;  %v5724_v19 = vadd.f32 %v5723_v62, %v5469_v59  ;;  %v5793_v26 = vadd.f32 %v5792_v48, %v5762_v54 }
 0x215   : > { %v7136_v27 = vpop.f32.mrf.mxu1  ;;  %v5396_v30 = vpop.f32.mrf.mxu0 }
 0x216   : > { %v5794_v55 = vadd.f32 %v5793_v26, %v5763_v17  ;;  %v5725_v3 = vadd.f32 %v5724_v19, %v5470_v36  ;;  %v4907_v9 = vadd.f32 %v7136_v27, %v8848_v1 }
 0x217   : > { %v4830_v24 = vpop.f32.mrf.mxu1  ;;  %v7171_v57 = vpop.f32.mrf.mxu0 }
 0x218   : > { %v4905_v12 = vadd.f32 %v4830_v24, %v9009_v29  ;;  %v5795_v56 = vadd.f32 %v5794_v55, %v5764_v6  ;;  %v5473_v40 = vadd.f32 %v7170_v32, %v4907_v9 }
 0x219   : > { %v7137_v18 = vpop.f32.mrf.mxu1  ;;  %v5399_v31 = vpop.f32.mrf.mxu0 }
 0x21a   : > { %v5471_v39 = vadd.f32 %v5396_v30, %v4905_v12  ;;  %v4908_v52 = vadd.f32 %v7137_v18, %v8857_v61  ;;  %v5767_v10 = vmul.f32 %v5473_v40, %v5473_v40 }
 0x21b   : > { %v4833_v22 = vpop.f32.mrf.mxu1 }
 0x21c   : > { %v5726_v34 = vadd.f32 %v5725_v3, %v5471_v39  ;;  %v5765_v53 = vmul.f32 %v5471_v39, %v5471_v39  ;;  %v5474_v38 = vadd.f32 %v7171_v57, %v4908_v52  ;;  %v4906_v43 = vadd.f32 %v4833_v22, %v8860_v5 }
 0x21e   : > { %v5796_v1 = vadd.f32 %v5795_v56, %v5765_v53  ;;  %v6696_v11 = vpack.c.bf16 %v5474_v38, %v5473_v40  ;;  %v5472_v8 = vadd.f32 %v5399_v31, %v4906_v43  ;;  %v5768_v42 = vmul.f32 %v5474_v38, %v5474_v38 }
 0x220   : > { %6712 = vst [vmem:[%s8873_s18 + $0x78] sm:$0xff] %v6696_v11   ;;  %v6691_v58 = vpack.c.bf16 %v5472_v8, %v5471_v39  ;;  %v5727_v2 = vadd.f32 %v5726_v34, %v5472_v8  ;;  %v5766_v50 = vmul.f32 %v5472_v8, %v5472_v8 }
 0x222   : > { %6711 = vst [vmem:[%s8873_s18 + $0x70] sm:$0xff] %v6691_v58   ;;  %v5728_v61 = vadd.f32 %v5727_v2, %v5473_v40  ;;  %v5797_v60 = vadd.f32 %v5796_v1, %v5766_v50 }
 0x224   : > { %v5729_v14 = vadd.f32 %v5728_v61, %v5474_v38  ;;  %v5798_v44 = vadd.f32 %v5797_v60, %v5767_v10 }
 0x226   : > { %v5730_v20 = vrot.slane %v5729_v14, 4  ;;  %v5799_v0 = vadd.f32 %v5798_v44, %v5768_v42 }
 0x228   : > { %v5731_v37 = vadd.f32 %v5730_v20, %v5729_v14  ;;  %v5800_v5 = vrot.slane %v5799_v0, 4 }
 0x22a   : > { %v5732_v23 = vrot.slane %v5731_v37, 2  ;;  %v5801_v35 = vadd.f32 %v5800_v5, %v5799_v0 }
 0x22c   : > { %v5733_v15 = vadd.f32 %v5732_v23, %v5731_v37  ;;  %v5802_v16 = vrot.slane %v5801_v35, 2 }
 0x22e   : > { %v5734_v49 = vrot.slane %v5733_v15, 1  ;;  %v5803_v41 = vadd.f32 %v5802_v16, %v5801_v35 }
 0x230   : > { %v5735_v21 = vadd.f32 %v5734_v49, %v5733_v15  ;;  %v5804_v4 = vrot.slane %v5803_v41, 1 }
 0x232   : > { %5736 = vst [vmem:[%s226_s22] sm:$0x1] %v5735_v21  ;;  %v5805_v25 = vadd.f32 %v5804_v4, %v5803_v41 }
 0x234   : > { %5806 = vst [vmem:[%s226_s22 + $0x1] sm:$0x1] %v5805_v25 }
 0x235 PF: > { %s14_s14 = sadd.s32 1, %s7279_s14   ;;  %s9010_s12 = smov %s7275_s13 }
 0x236   : > { %p11_p5 = scmp.ge.s32.totalorder %s14_s14, 4   ;;  %s9011_s13 = smov %s9013_s15 }
 0x238   :  { %13 = sbr.rel (!%p11_p5) target bundleno = 2 (0x2), region = 83 }

</bundles_post_ra>
